<compile_context>
chip_gen: v7x
topology: tpu7x:2x2x1
jax: 0.10.0
libtpu: 0.0.40
codegen_flags: <defaults>
</compile_context>

<pallas_src>
import math

import jax
import jax.numpy as jnp
from jax.experimental import pallas as pl
from jax.experimental.pallas import tpu as pltpu


# --------------------------------------------------------------------------------------
# Geometry constants (what the PyTorch module precomputes in __init__)
# --------------------------------------------------------------------------------------
def _geometry(nramps):
    edges = [-math.pi + 2.0 * math.pi * i / nramps for i in range(nramps + 1)]
    centers = [(edges[i] + edges[i + 1]) / 2.0 for i in range(nramps)]
    rcenter = (nramps + 1) ** (-0.5)
    dcenter = (rcenter + 1.0) / 2.0
    return edges, centers, rcenter, dcenter


def _sector_selects(kx, ky, nramps, edges, centers, rc_raw):
    """Per-ramp (theta-wedge AND radial) masks on raw (un-normalized) kx/ky.

    theta in [edges[r], edges[r+1]) is tested with two half-plane cross products
    cross(e) = cos(e)*ky - sin(e)*kx  (= |k| * sin(theta - e)).  For even nramps the
    edge/center directions of ramp r and ramp r + nramps/2 are exact negatives, so only
    nramps/2 projections of each kind are materialized; the opposite ramp reuses them
    with a flipped comparison (no extra VPU ops).
    """
    half = nramps // 2
    even = (nramps % 2 == 0) and nramps >= 2

    if even:
        cross = [math.cos(edges[k]) * ky - math.sin(edges[k]) * kx for k in range(half)]

        def cross_ge0(k):
            k = k % nramps
            return (cross[k] >= 0.0) if k < half else (cross[k - half] <= 0.0)

        def cross_lt0(k):
            k = k % nramps
            return (cross[k] < 0.0) if k < half else (cross[k - half] > 0.0)

        rad = [math.cos(centers[r]) * kx + math.sin(centers[r]) * ky for r in range(half)]

        def rad_gt(r):
            return (rad[r] > rc_raw) if r < half else (rad[r - half] < -rc_raw)

    else:
        cross = [math.cos(edges[k]) * ky - math.sin(edges[k]) * kx for k in range(nramps)]

        def cross_ge0(k):
            return cross[k % nramps] >= 0.0

        def cross_lt0(k):
            return cross[k % nramps] < 0.0

        rad = [math.cos(centers[r]) * kx + math.sin(centers[r]) * ky for r in range(nramps)]

        def rad_gt(r):
            return rad[r] > rc_raw

    return [cross_ge0(r) & cross_lt0(r + 1) & rad_gt(r) for r in range(nramps)]


# --------------------------------------------------------------------------------------
# Pass 1: per-ramp geometric sums (parameter independent)
# --------------------------------------------------------------------------------------
def _make_sums_kernel(nramps, fNA):
    edges, centers, rcenter, _ = _geometry(nramps)
    rc_raw = rcenter * fNA
    fna2 = fNA * fNA

    def kernel(kx_ref, ky_ref, acc_ref):
        # acc_ref: (acc_rows, W) VMEM-resident output block; row 4*r+q holds per-lane
        # partial sums of q in {kx, ky, r2, 1} over sector r.  Cross-lane reduction is
        # deferred to plain XLA in the wrapper (tiny array).
        @pl.when(pl.program_id(1) == 0)
        def _init():
            acc_ref[...] = jnp.zeros_like(acc_ref)

        kx = kx_ref[...]
        ky = ky_ref[...]
        r2 = kx * kx + ky * ky
        in_circle = r2 < fna2  # must be part of sel here (it affects sums/counts)

        sels = _sector_selects(kx, ky, nramps, edges, centers, rc_raw)
        for r in range(nramps):
            sel = sels[r] & in_circle
            row = 4 * r
            acc_ref[row + 0:row + 1, :] += jnp.sum(jnp.where(sel, kx, 0.0), axis=0, keepdims=True)
            acc_ref[row + 1:row + 2, :] += jnp.sum(jnp.where(sel, ky, 0.0), axis=0, keepdims=True)
            acc_ref[row + 2:row + 3, :] += jnp.sum(jnp.where(sel, r2, 0.0), axis=0, keepdims=True)
            acc_ref[row + 3:row + 4, :] += jnp.sum(jnp.where(sel, 1.0, 0.0), axis=0, keepdims=True)

    return kernel


# --------------------------------------------------------------------------------------
# Pass 2: single map over the pupil with precomputed per-ramp affine coefficients
# --------------------------------------------------------------------------------------
def _make_apply_kernel(nramps, fNA):
    edges, centers, rcenter, _ = _geometry(nramps)
    rc_raw = rcenter * fNA
    fna2 = fNA * fNA

    def kernel(coef_ref, kx_ref, ky_ref, out_ref):
        # coef_ref: SMEM (4, nramps), rows = A, B, D, C (see wrapper).
        kx = kx_ref[...]
        ky = ky_ref[...]
        r2 = kx * kx + ky * ky

        # The per-ramp circle test is deliberately dropped here (the final in-circle
        # mask below zeroes those pixels, matching the reference output exactly).
        sels = _sector_selects(kx, ky, nramps, edges, centers, rc_raw)

        zero = jnp.zeros_like(kx)
        A = zero
        B = zero
        D = zero
        C = zero
        for r in range(nramps):  # sectors disjoint -> pure selects, no accumulation
            sel = sels[r]
            A = jnp.where(sel, coef_ref[0, r], A)
            B = jnp.where(sel, coef_ref[1, r], B)
            D = jnp.where(sel, coef_ref[2, r], D)
            C = jnp.where(sel, coef_ref[3, r], C)

        P = A * kx + B * ky + D * r2 + C
        out_ref[...] = jnp.where(r2 < fna2, P, 0.0)

    return kernel


# --------------------------------------------------------------------------------------
# Tiling plan
# --------------------------------------------------------------------------------------
def _plan_tiles(H, W):
    """Row/lane tiling: multiple-of-8 row tiles capped at ~1 MiB/array, W padded to a
    multiple of 128 (lane-dense stores), cdiv grid with >= 2 row tiles when possible."""
    Wp = ((W + 127) // 128) * 128
    cap = max(8, (((1 << 20) // (4 * Wp)) // 8) * 8)          # ~1 MiB per f32 input tile
    half_rows = max(8, (((max(H, 16) + 1) // 2 + 7) // 8) * 8)  # ~ceil(H/2), multiple of 8
    tr = max(8, min(cap, half_rows))
    n_tiles = (H + tr - 1) // tr
    n_par = 2 if n_tiles >= 2 else 1
    if n_par == 2 and n_tiles % 2 == 1:
        n_tiles += 1  # even tile count so pass 1 splits cleanly across 2 cores
    Hp = n_tiles * tr
    return tr, n_tiles, n_par, Hp, Wp


# --------------------------------------------------------------------------------------
# Forward wrapper
# --------------------------------------------------------------------------------------
def defocused_ramps_forward(kx, ky, delta, defocus, fNA=0.8 / 0.55, nramps=6):
    """Pallas TPU implementation of DefocusedRamps.forward().

    kx, ky are the raw pupil-plane coordinates (the PyTorch module divides them by fNA
    in __init__); that normalization is folded into scalar coefficients/thresholds, so
    no elementwise XLA pre-pass runs over the arrays and no theta array is materialized.
    """
    fNA = float(fNA)
    edges, centers, rcenter, dcenter = _geometry(nramps)

    kx = jnp.asarray(kx, jnp.float32)
    ky = jnp.asarray(ky, jnp.float32)
    H, W = kx.shape
    tr, n_tiles, n_par, Hp, Wp = _plan_tiles(H, W)

    if (Hp, Wp) != (H, W):
        pad = ((0, Hp - H), (0, Wp - W))
        sentinel = 2.0 * fNA + 1.0  # guaranteed outside the pupil circle -> excluded everywhere
        kx_p = jnp.pad(kx, pad, constant_values=sentinel)
        ky_p = jnp.pad(ky, pad, constant_values=sentinel)
    else:
        kx_p, ky_p = kx, ky

    n_inner = n_tiles // n_par
    acc_rows = ((4 * nramps + 7) // 8) * 8
    vmem_limit = 40 * 1024 * 1024

    row_spec1 = pl.BlockSpec((tr, Wp), lambda p, i: (p * n_inner + i, 0))

    # ---- pass 1: parameter-independent per-ramp geometric sums (cacheable) ----
    partial = pl.pallas_call(
        _make_sums_kernel(nramps, fNA),
        out_shape=jax.ShapeDtypeStruct((n_par, acc_rows, Wp), jnp.float32),
        grid=(n_par, n_inner),
        in_specs=[row_spec1, row_spec1],
        out_specs=pl.BlockSpec((None, acc_rows, Wp), lambda p, i: (p, 0, 0)),
        compiler_params=pltpu.CompilerParams(
            dimension_semantics=("parallel", "arbitrary"),
            vmem_limit_bytes=vmem_limit),
    )(kx_p, ky_p)

    sums = jnp.sum(partial, axis=(0, 2))[: 4 * nramps].reshape(nramps, 4)
    s_kx, s_ky, s_r2, count = sums[:, 0], sums[:, 1], sums[:, 2], sums[:, 3]

    # ---- scalar phase: fold delta/defocus/trig/1/fNA/mean into per-ramp coefficients ----
    delta = jnp.asarray(delta, jnp.float32)
    defocus = jnp.asarray(defocus, jnp.float32)
    cr = jnp.asarray([math.cos(c) for c in centers], jnp.float32)
    sr = jnp.asarray([math.sin(c) for c in centers], jnp.float32)
    A = (-delta * sr - 2.0 * dcenter * defocus * cr) / fNA
    B = (delta * cr - 2.0 * dcenter * defocus * sr) / fNA
    D = defocus / (fNA * fNA)
    # For a pixel in sector r: value = A*kx + B*ky + D*r2 + defocus*d^2; subtracting the
    # sector mean cancels the defocus*d^2 term, leaving C = -(A*Skx + B*Sky + D*Sr2)/N.
    sector_sum = A * s_kx + B * s_ky + D * s_r2
    # Guard empty sectors (the original module would propagate NaN in that degenerate case).
    C = -jnp.where(count > 0.0, sector_sum / jnp.maximum(count, 1.0), 0.0)
    coefs = jnp.stack([A, B, D, C], axis=0)  # (4, nramps) -> SMEM inside pass 2

    # ---- pass 2: single lane-dense map over the pupil, fully parallel ----
    row_spec2 = pl.BlockSpec((tr, Wp), lambda i: (i, 0))
    out = pl.pallas_call(
        _make_apply_kernel(nramps, fNA),
        out_shape=jax.ShapeDtypeStruct((Hp, Wp), jnp.float32),
        grid=(n_tiles,),
        in_specs=[pl.BlockSpec(memory_space=pltpu.MemorySpace.SMEM),
                  row_spec2, row_spec2],
        out_specs=row_spec2,
        compiler_params=pltpu.CompilerParams(
            dimension_semantics=("parallel",),
            vmem_limit_bytes=vmem_limit),
    )(coefs, kx_p, ky_p)

    if (Hp, Wp) != (H, W):
        out = out[:H, :W]
    return out


# --------------------------------------------------------------------------------------
# Pure-jnp reference (mirrors the PyTorch forward) for verification
# --------------------------------------------------------------------------------------
def defocused_ramps_reference(kx, ky, delta, defocus, fNA=0.8 / 0.55, nramps=6):
    kxn = jnp.asarray(kx, jnp.float32) / fNA
    kyn = jnp.asarray(ky, jnp.float32) / fNA
    theta = jnp.arctan2(kyn, kxn)
    edges, centers, rcenter, dcenter = _geometry(nramps)
    delta = jnp.asarray(delta, jnp.float32)
    defocus = jnp.asarray(defocus, jnp.float32)

    in_circle = (kxn ** 2 + kyn ** 2) < 1.0
    P = jnp.zeros_like(kxn)
    for r in range(nramps):
        c, s = math.cos(centers[r]), math.sin(centers[r])
        sel = (
            (theta >= edges[r])
            & (theta < edges[r + 1])
            & (kyn * s + kxn * c > rcenter)
            & in_circle
        ).astype(jnp.float32)
        P = P + sel * (delta[r] * (kyn * c - kxn * s))
        P = P + sel * (defocus[r] * ((kxn - c * dcenter) ** 2 + (kyn - s * dcenter) ** 2))
        P = P - sel * (jnp.sum(P * sel) / jnp.sum(sel))
    return P * in_circle.astype(jnp.float32)


if __name__ == "__main__":
    H, W = 128, 128
    nramps = 6
    fNA = 0.8 / 0.55

    # Deterministic example inputs (pupil-plane spatial-frequency coordinates).
    key = jax.random.PRNGKey(0)
    kx_key, ky_key = jax.random.split(key)
    kx = jax.random.uniform(kx_key, (H, W), jnp.float32, minval=-fNA, maxval=fNA)
    ky = jax.random.uniform(ky_key, (H, W), jnp.float32, minval=-fNA, maxval=fNA)

    # Deterministic parameter init (matches nn.Parameter defaults in __init__).
    delta = jnp.full((nramps,), 2374.0, dtype=jnp.float32)
    defocus = jnp.array([-50.0, 150.0, -100.0, 50.0, -150.0, 100.0], dtype=jnp.float32)

    P = defocused_ramps_forward(kx, ky, delta, defocus, fNA=fNA, nramps=nramps)
    P = jax.block_until_ready(P)
    assert P.shape == (H, W) and P.dtype == jnp.float32
    assert bool(jnp.all(jnp.isfinite(P)))

    # Reference check.  The Pallas kernels classify pixels with algebraically equivalent
    # but differently-rounded tests (raw-coordinate cross products instead of arctan2 on
    # normalized coordinates), so pixels within float-epsilon of a sector/radial/circle
    # decision boundary may legitimately land in the neighboring region; exclude that
    # measure-zero band from the strict comparison.
    P_ref = defocused_ramps_reference(kx, ky, delta, defocus, fNA=fNA, nramps=nramps)
    edges, centers, rcenter, _ = _geometry(nramps)
    kxn, kyn = kx / fNA, ky / fNA
    theta = jnp.arctan2(kyn, kxn)
    band = 1e-5
    near_edge = jnp.min(jnp.abs(theta[..., None] - jnp.asarray(edges, jnp.float32)), axis=-1) < band
    projs = jnp.stack([kxn * math.cos(c) + kyn * math.sin(c) for c in centers], axis=-1)
    near_rad = jnp.min(jnp.abs(projs - rcenter), axis=-1) < band
    near_circle = jnp.abs(kxn * kxn + kyn * kyn - 1.0) < band
    safe = ~(near_edge | near_rad | near_circle)
    assert float(jnp.mean(safe.astype(jnp.float32))) > 0.99
    diff_ok = jnp.abs(P - P_ref) <= (1e-1 + 5e-4 * jnp.abs(P_ref))
    assert bool(jnp.all(diff_ok | ~safe)), "Pallas kernel does not match reference"

    print("KERNEL_OK")
</pallas_src>

<mosaic_0001>
module attributes {stable_mosaic.version = 11 : i64} {
  func.func @kernel(%arg0: i32, %arg1: i32, %arg2: memref<64x128xf32, #tpu.memory_space<vmem>>, %arg3: memref<64x128xf32, #tpu.memory_space<vmem>>, %arg4: memref<1x24x128xf32, #tpu.memory_space<vmem>>) attributes {dimension_semantics = [#tpu.dimension_semantics<parallel>, #tpu.dimension_semantics<arbitrary>], iteration_bounds = array<i64: 2, 1>, scalar_prefetch = 0 : i64, scratch_operands = 0 : i64, tpu.core_type = #tpu.core_type<tc>, window_params = [{transform_indices = @transform_0, window_bounds = array<i64: 64, 128>}, {transform_indices = @transform_1, window_bounds = array<i64: 64, 128>}, {transform_indices = @transform_2, window_bounds = array<i64: 1, 24, 128>}]} {
    %c0_i32 = arith.constant 0 : i32
    %0 = arith.cmpi eq, %arg1, %c0_i32 : i32
    %1 = arith.extui %0 : i1 to i32
    %c0_i32_0 = arith.constant 0 : i32
    %2 = arith.cmpi ne, %1, %c0_i32_0 : i32
    scf.if %2 {
      %cst_209 = arith.constant 0.000000e+00 : f32
      %340 = vector.broadcast %cst_209 : f32 to vector<24x128xf32>
      %c0_210 = arith.constant 0 : index
      %c0_211 = arith.constant 0 : index
      %c0_212 = arith.constant 0 : index
      %341 = vector.load %arg4[%c0_210, %c0_211, %c0_212] : memref<1x24x128xf32, #tpu.memory_space<vmem>>, vector<1x24x128xf32>
      %342 = vector.shape_cast %341 : vector<1x24x128xf32> to vector<24x128xf32>
      %343 = vector.shape_cast %340 : vector<24x128xf32> to vector<1x24x128xf32>
      tpu.vector_store %arg4[%c0_210, %c0_211, %c0_212], %343 {strides = array<i32>} : memref<1x24x128xf32, #tpu.memory_space<vmem>>, vector<1x24x128xf32>,
    } else {
    }
    %c0 = arith.constant 0 : index
    %c0_1 = arith.constant 0 : index
    %3 = vector.load %arg2[%c0, %c0_1] : memref<64x128xf32, #tpu.memory_space<vmem>>, vector<64x128xf32>
    %c0_2 = arith.constant 0 : index
    %c0_3 = arith.constant 0 : index
    %4 = vector.load %arg3[%c0_2, %c0_3] : memref<64x128xf32, #tpu.memory_space<vmem>>, vector<64x128xf32>
    %5 = arith.mulf %3, %3 : vector<64x128xf32>
    %6 = arith.mulf %4, %4 : vector<64x128xf32>
    %7 = arith.addf %5, %6 : vector<64x128xf32>
    %cst = arith.constant 2.11570239 : f32
    %8 = vector.broadcast %cst : f32 to vector<64x128xf32>
    %9 = arith.cmpf olt, %7, %8 : vector<64x128xf32>
    %cst_4 = arith.constant -1.000000e+00 : f32
    %10 = vector.broadcast %cst_4 : f32 to vector<64x128xf32>
    %11 = arith.mulf %10, %4 : vector<64x128xf32>
    %cst_5 = arith.constant -1.22464685E-16 : f32
    %12 = vector.broadcast %cst_5 : f32 to vector<64x128xf32>
    %13 = arith.mulf %12, %3 : vector<64x128xf32>
    %14 = arith.subf %11, %13 : vector<64x128xf32>
    %cst_6 = arith.constant -5.000000e-01 : f32
    %15 = vector.broadcast %cst_6 : f32 to vector<64x128xf32>
    %16 = arith.mulf %15, %4 : vector<64x128xf32>
    %cst_7 = arith.constant -0.866025388 : f32
    %17 = vector.broadcast %cst_7 : f32 to vector<64x128xf32>
    %18 = arith.mulf %17, %3 : vector<64x128xf32>
    %19 = arith.subf %16, %18 : vector<64x128xf32>
    %cst_8 = arith.constant 5.000000e-01 : f32
    %20 = vector.broadcast %cst_8 : f32 to vector<64x128xf32>
    %21 = arith.mulf %20, %4 : vector<64x128xf32>
    %cst_9 = arith.constant -0.866025388 : f32
    %22 = vector.broadcast %cst_9 : f32 to vector<64x128xf32>
    %23 = arith.mulf %22, %3 : vector<64x128xf32>
    %24 = arith.subf %21, %23 : vector<64x128xf32>
    %cst_10 = arith.constant -0.866025388 : f32
    %25 = vector.broadcast %cst_10 : f32 to vector<64x128xf32>
    %26 = arith.mulf %25, %3 : vector<64x128xf32>
    %cst_11 = arith.constant -5.000000e-01 : f32
    %27 = vector.broadcast %cst_11 : f32 to vector<64x128xf32>
    %28 = arith.mulf %27, %4 : vector<64x128xf32>
    %29 = arith.addf %26, %28 : vector<64x128xf32>
    %cst_12 = arith.constant -1.60812262E-16 : f32
    %30 = vector.broadcast %cst_12 : f32 to vector<64x128xf32>
    %31 = arith.mulf %30, %3 : vector<64x128xf32>
    %cst_13 = arith.constant -1.000000e+00 : f32
    %32 = vector.broadcast %cst_13 : f32 to vector<64x128xf32>
    %33 = arith.mulf %32, %4 : vector<64x128xf32>
    %34 = arith.addf %31, %33 : vector<64x128xf32>
    %cst_14 = arith.constant 0.866025388 : f32
    %35 = vector.broadcast %cst_14 : f32 to vector<64x128xf32>
    %36 = arith.mulf %35, %3 : vector<64x128xf32>
    %cst_15 = arith.constant -5.000000e-01 : f32
    %37 = vector.broadcast %cst_15 : f32 to vector<64x128xf32>
    %38 = arith.mulf %37, %4 : vector<64x128xf32>
    %39 = arith.addf %36, %38 : vector<64x128xf32>
    %cst_16 = arith.constant 0.000000e+00 : f32
    %40 = vector.broadcast %cst_16 : f32 to vector<64x128xf32>
    %41 = arith.cmpf oge, %14, %40 : vector<64x128xf32>
    %cst_17 = arith.constant 0.000000e+00 : f32
    %42 = vector.broadcast %cst_17 : f32 to vector<64x128xf32>
    %43 = arith.cmpf olt, %19, %42 : vector<64x128xf32>
    %44 = arith.andi %41, %43 : vector<64x128xi1>
    %cst_18 = arith.constant 0.549766481 : f32
    %45 = vector.broadcast %cst_18 : f32 to vector<64x128xf32>
    %46 = arith.cmpf ogt, %29, %45 : vector<64x128xf32>
    %47 = arith.andi %44, %46 : vector<64x128xi1>
    %cst_19 = arith.constant 0.000000e+00 : f32
    %48 = vector.broadcast %cst_19 : f32 to vector<64x128xf32>
    %49 = arith.cmpf oge, %19, %48 : vector<64x128xf32>
    %cst_20 = arith.constant 0.000000e+00 : f32
    %50 = vector.broadcast %cst_20 : f32 to vector<64x128xf32>
    %51 = arith.cmpf olt, %24, %50 : vector<64x128xf32>
    %52 = arith.andi %49, %51 : vector<64x128xi1>
    %cst_21 = arith.constant 0.549766481 : f32
    %53 = vector.broadcast %cst_21 : f32 to vector<64x128xf32>
    %54 = arith.cmpf ogt, %34, %53 : vector<64x128xf32>
    %55 = arith.andi %52, %54 : vector<64x128xi1>
    %cst_22 = arith.constant 0.000000e+00 : f32
    %56 = vector.broadcast %cst_22 : f32 to vector<64x128xf32>
    %57 = arith.cmpf oge, %24, %56 : vector<64x128xf32>
    %cst_23 = arith.constant 0.000000e+00 : f32
    %58 = vector.broadcast %cst_23 : f32 to vector<64x128xf32>
    %59 = arith.cmpf ogt, %14, %58 : vector<64x128xf32>
    %60 = arith.andi %57, %59 : vector<64x128xi1>
    %cst_24 = arith.constant 0.549766481 : f32
    %61 = vector.broadcast %cst_24 : f32 to vector<64x128xf32>
    %62 = arith.cmpf ogt, %39, %61 : vector<64x128xf32>
    %63 = arith.andi %60, %62 : vector<64x128xi1>
    %cst_25 = arith.constant 0.000000e+00 : f32
    %64 = vector.broadcast %cst_25 : f32 to vector<64x128xf32>
    %65 = arith.cmpf ole, %14, %64 : vector<64x128xf32>
    %cst_26 = arith.constant 0.000000e+00 : f32
    %66 = vector.broadcast %cst_26 : f32 to vector<64x128xf32>
    %67 = arith.cmpf ogt, %19, %66 : vector<64x128xf32>
    %68 = arith.andi %65, %67 : vector<64x128xi1>
    %cst_27 = arith.constant -0.549766481 : f32
    %69 = vector.broadcast %cst_27 : f32 to vector<64x128xf32>
    %70 = arith.cmpf olt, %29, %69 : vector<64x128xf32>
    %71 = arith.andi %68, %70 : vector<64x128xi1>
    %cst_28 = arith.constant 0.000000e+00 : f32
    %72 = vector.broadcast %cst_28 : f32 to vector<64x128xf32>
    %73 = arith.cmpf ole, %19, %72 : vector<64x128xf32>
    %cst_29 = arith.constant 0.000000e+00 : f32
    %74 = vector.broadcast %cst_29 : f32 to vector<64x128xf32>
    %75 = arith.cmpf ogt, %24, %74 : vector<64x128xf32>
    %76 = arith.andi %73, %75 : vector<64x128xi1>
    %cst_30 = arith.constant -0.549766481 : f32
    %77 = vector.broadcast %cst_30 : f32 to vector<64x128xf32>
    %78 = arith.cmpf olt, %34, %77 : vector<64x128xf32>
    %79 = arith.andi %76, %78 : vector<64x128xi1>
    %cst_31 = arith.constant 0.000000e+00 : f32
    %80 = vector.broadcast %cst_31 : f32 to vector<64x128xf32>
    %81 = arith.cmpf ole, %24, %80 : vector<64x128xf32>
    %cst_32 = arith.constant 0.000000e+00 : f32
    %82 = vector.broadcast %cst_32 : f32 to vector<64x128xf32>
    %83 = arith.cmpf olt, %14, %82 : vector<64x128xf32>
    %84 = arith.andi %81, %83 : vector<64x128xi1>
    %cst_33 = arith.constant -0.549766481 : f32
    %85 = vector.broadcast %cst_33 : f32 to vector<64x128xf32>
    %86 = arith.cmpf olt, %39, %85 : vector<64x128xf32>
    %87 = arith.andi %84, %86 : vector<64x128xi1>
    %88 = arith.andi %47, %9 : vector<64x128xi1>
    %c0_34 = arith.constant 0 : index
    %c0_35 = arith.constant 0 : index
    %c0_36 = arith.constant 0 : index
    %89 = vector.load %arg4[%c0_34, %c0_35, %c0_36] : memref<1x24x128xf32, #tpu.memory_space<vmem>>, vector<1x1x128xf32>
    %90 = vector.shape_cast %89 : vector<1x1x128xf32> to vector<1x128xf32>
    %cst_37 = arith.constant 0.000000e+00 : f32
    %91 = vector.broadcast %cst_37 : f32 to vector<64x128xf32>
    %92 = arith.select %88, %3, %91 : vector<64x128xi1>, vector<64x128xf32>
    %cst_38 = arith.constant dense<0.000000e+00> : vector<128xf32>
    %93 = vector.multi_reduction <add>, %92, %cst_38 [0] : vector<64x128xf32> to vector<128xf32>
    %94 = vector.shape_cast %93 : vector<128xf32> to vector<1x128xf32>
    %95 = arith.addf %90, %94 : vector<1x128xf32>
    %c0_39 = arith.constant 0 : index
    %c0_40 = arith.constant 0 : index
    %c0_41 = arith.constant 0 : index
    %96 = vector.load %arg4[%c0_39, %c0_40, %c0_41] : memref<1x24x128xf32, #tpu.memory_space<vmem>>, vector<1x1x128xf32>
    %97 = vector.shape_cast %96 : vector<1x1x128xf32> to vector<1x128xf32>
    %98 = vector.shape_cast %95 : vector<1x128xf32> to vector<1x1x128xf32>
    tpu.vector_store %arg4[%c0_39, %c0_40, %c0_41], %98 {strides = array<i32>} : memref<1x24x128xf32, #tpu.memory_space<vmem>>, vector<1x1x128xf32>,
    %c0_42 = arith.constant 0 : index
    %c1 = arith.constant 1 : index
    %c0_43 = arith.constant 0 : index
    %99 = vector.load %arg4[%c0_42, %c1, %c0_43] : memref<1x24x128xf32, #tpu.memory_space<vmem>>, vector<1x1x128xf32>
    %100 = vector.shape_cast %99 : vector<1x1x128xf32> to vector<1x128xf32>
    %cst_44 = arith.constant 0.000000e+00 : f32
    %101 = vector.broadcast %cst_44 : f32 to vector<64x128xf32>
    %102 = arith.select %88, %4, %101 : vector<64x128xi1>, vector<64x128xf32>
    %cst_45 = arith.constant dense<0.000000e+00> : vector<128xf32>
    %103 = vector.multi_reduction <add>, %102, %cst_45 [0] : vector<64x128xf32> to vector<128xf32>
    %104 = vector.shape_cast %103 : vector<128xf32> to vector<1x128xf32>
    %105 = arith.addf %100, %104 : vector<1x128xf32>
    %c0_46 = arith.constant 0 : index
    %c1_47 = arith.constant 1 : index
    %c0_48 = arith.constant 0 : index
    %106 = vector.load %arg4[%c0_46, %c1_47, %c0_48] : memref<1x24x128xf32, #tpu.memory_space<vmem>>, vector<1x1x128xf32>
    %107 = vector.shape_cast %106 : vector<1x1x128xf32> to vector<1x128xf32>
    %108 = vector.shape_cast %105 : vector<1x128xf32> to vector<1x1x128xf32>
    tpu.vector_store %arg4[%c0_46, %c1_47, %c0_48], %108 {strides = array<i32>} : memref<1x24x128xf32, #tpu.memory_space<vmem>>, vector<1x1x128xf32>,
    %c0_49 = arith.constant 0 : index
    %c2 = arith.constant 2 : index
    %c0_50 = arith.constant 0 : index
    %109 = vector.load %arg4[%c0_49, %c2, %c0_50] : memref<1x24x128xf32, #tpu.memory_space<vmem>>, vector<1x1x128xf32>
    %110 = vector.shape_cast %109 : vector<1x1x128xf32> to vector<1x128xf32>
    %cst_51 = arith.constant 0.000000e+00 : f32
    %111 = vector.broadcast %cst_51 : f32 to vector<64x128xf32>
    %112 = arith.select %88, %7, %111 : vector<64x128xi1>, vector<64x128xf32>
    %cst_52 = arith.constant dense<0.000000e+00> : vector<128xf32>
    %113 = vector.multi_reduction <add>, %112, %cst_52 [0] : vector<64x128xf32> to vector<128xf32>
    %114 = vector.shape_cast %113 : vector<128xf32> to vector<1x128xf32>
    %115 = arith.addf %110, %114 : vector<1x128xf32>
    %c0_53 = arith.constant 0 : index
    %c2_54 = arith.constant 2 : index
    %c0_55 = arith.constant 0 : index
    %116 = vector.load %arg4[%c0_53, %c2_54, %c0_55] : memref<1x24x128xf32, #tpu.memory_space<vmem>>, vector<1x1x128xf32>
    %117 = vector.shape_cast %116 : vector<1x1x128xf32> to vector<1x128xf32>
    %118 = vector.shape_cast %115 : vector<1x128xf32> to vector<1x1x128xf32>
    tpu.vector_store %arg4[%c0_53, %c2_54, %c0_55], %118 {strides = array<i32>} : memref<1x24x128xf32, #tpu.memory_space<vmem>>, vector<1x1x128xf32>,
    %c0_56 = arith.constant 0 : index
    %c3 = arith.constant 3 : index
    %c0_57 = arith.constant 0 : index
    %119 = vector.load %arg4[%c0_56, %c3, %c0_57] : memref<1x24x128xf32, #tpu.memory_space<vmem>>, vector<1x1x128xf32>
    %120 = vector.shape_cast %119 : vector<1x1x128xf32> to vector<1x128xf32>
    %cst_58 = arith.constant 1.000000e+00 : f32
    %cst_59 = arith.constant 0.000000e+00 : f32
    %121 = vector.broadcast %cst_58 : f32 to vector<64x128xf32>
    %122 = vector.broadcast %cst_59 : f32 to vector<64x128xf32>
    %123 = arith.select %88, %121, %122 : vector<64x128xi1>, vector<64x128xf32>
    %cst_60 = arith.constant dense<0.000000e+00> : vector<128xf32>
    %124 = vector.multi_reduction <add>, %123, %cst_60 [0] : vector<64x128xf32> to vector<128xf32>
    %125 = vector.shape_cast %124 : vector<128xf32> to vector<1x128xf32>
    %126 = arith.addf %120, %125 : vector<1x128xf32>
    %c0_61 = arith.constant 0 : index
    %c3_62 = arith.constant 3 : index
    %c0_63 = arith.constant 0 : index
    %127 = vector.load %arg4[%c0_61, %c3_62, %c0_63] : memref<1x24x128xf32, #tpu.memory_space<vmem>>, vector<1x1x128xf32>
    %128 = vector.shape_cast %127 : vector<1x1x128xf32> to vector<1x128xf32>
    %129 = vector.shape_cast %126 : vector<1x128xf32> to vector<1x1x128xf32>
    tpu.vector_store %arg4[%c0_61, %c3_62, %c0_63], %129 {strides = array<i32>} : memref<1x24x128xf32, #tpu.memory_space<vmem>>, vector<1x1x128xf32>,
    %130 = arith.andi %55, %9 : vector<64x128xi1>
    %c0_64 = arith.constant 0 : index
    %c4 = arith.constant 4 : index
    %c0_65 = arith.constant 0 : index
    %131 = vector.load %arg4[%c0_64, %c4, %c0_65] : memref<1x24x128xf32, #tpu.memory_space<vmem>>, vector<1x1x128xf32>
    %132 = vector.shape_cast %131 : vector<1x1x128xf32> to vector<1x128xf32>
    %cst_66 = arith.constant 0.000000e+00 : f32
    %133 = vector.broadcast %cst_66 : f32 to vector<64x128xf32>
    %134 = arith.select %130, %3, %133 : vector<64x128xi1>, vector<64x128xf32>
    %cst_67 = arith.constant dense<0.000000e+00> : vector<128xf32>
    %135 = vector.multi_reduction <add>, %134, %cst_67 [0] : vector<64x128xf32> to vector<128xf32>
    %136 = vector.shape_cast %135 : vector<128xf32> to vector<1x128xf32>
    %137 = arith.addf %132, %136 : vector<1x128xf32>
    %c0_68 = arith.constant 0 : index
    %c4_69 = arith.constant 4 : index
    %c0_70 = arith.constant 0 : index
    %138 = vector.load %arg4[%c0_68, %c4_69, %c0_70] : memref<1x24x128xf32, #tpu.memory_space<vmem>>, vector<1x1x128xf32>
    %139 = vector.shape_cast %138 : vector<1x1x128xf32> to vector<1x128xf32>
    %140 = vector.shape_cast %137 : vector<1x128xf32> to vector<1x1x128xf32>
    tpu.vector_store %arg4[%c0_68, %c4_69, %c0_70], %140 {strides = array<i32>} : memref<1x24x128xf32, #tpu.memory_space<vmem>>, vector<1x1x128xf32>,
    %c0_71 = arith.constant 0 : index
    %c5 = arith.constant 5 : index
    %c0_72 = arith.constant 0 : index
    %141 = vector.load %arg4[%c0_71, %c5, %c0_72] : memref<1x24x128xf32, #tpu.memory_space<vmem>>, vector<1x1x128xf32>
    %142 = vector.shape_cast %141 : vector<1x1x128xf32> to vector<1x128xf32>
    %cst_73 = arith.constant 0.000000e+00 : f32
    %143 = vector.broadcast %cst_73 : f32 to vector<64x128xf32>
    %144 = arith.select %130, %4, %143 : vector<64x128xi1>, vector<64x128xf32>
    %cst_74 = arith.constant dense<0.000000e+00> : vector<128xf32>
    %145 = vector.multi_reduction <add>, %144, %cst_74 [0] : vector<64x128xf32> to vector<128xf32>
    %146 = vector.shape_cast %145 : vector<128xf32> to vector<1x128xf32>
    %147 = arith.addf %142, %146 : vector<1x128xf32>
    %c0_75 = arith.constant 0 : index
    %c5_76 = arith.constant 5 : index
    %c0_77 = arith.constant 0 : index
    %148 = vector.load %arg4[%c0_75, %c5_76, %c0_77] : memref<1x24x128xf32, #tpu.memory_space<vmem>>, vector<1x1x128xf32>
    %149 = vector.shape_cast %148 : vector<1x1x128xf32> to vector<1x128xf32>
    %150 = vector.shape_cast %147 : vector<1x128xf32> to vector<1x1x128xf32>
    tpu.vector_store %arg4[%c0_75, %c5_76, %c0_77], %150 {strides = array<i32>} : memref<1x24x128xf32, #tpu.memory_space<vmem>>, vector<1x1x128xf32>,
    %c0_78 = arith.constant 0 : index
    %c6 = arith.constant 6 : index
    %c0_79 = arith.constant 0 : index
    %151 = vector.load %arg4[%c0_78, %c6, %c0_79] : memref<1x24x128xf32, #tpu.memory_space<vmem>>, vector<1x1x128xf32>
    %152 = vector.shape_cast %151 : vector<1x1x128xf32> to vector<1x128xf32>
    %cst_80 = arith.constant 0.000000e+00 : f32
    %153 = vector.broadcast %cst_80 : f32 to vector<64x128xf32>
    %154 = arith.select %130, %7, %153 : vector<64x128xi1>, vector<64x128xf32>
    %cst_81 = arith.constant dense<0.000000e+00> : vector<128xf32>
    %155 = vector.multi_reduction <add>, %154, %cst_81 [0] : vector<64x128xf32> to vector<128xf32>
    %156 = vector.shape_cast %155 : vector<128xf32> to vector<1x128xf32>
    %157 = arith.addf %152, %156 : vector<1x128xf32>
    %c0_82 = arith.constant 0 : index
    %c6_83 = arith.constant 6 : index
    %c0_84 = arith.constant 0 : index
    %158 = vector.load %arg4[%c0_82, %c6_83, %c0_84] : memref<1x24x128xf32, #tpu.memory_space<vmem>>, vector<1x1x128xf32>
    %159 = vector.shape_cast %158 : vector<1x1x128xf32> to vector<1x128xf32>
    %160 = vector.shape_cast %157 : vector<1x128xf32> to vector<1x1x128xf32>
    tpu.vector_store %arg4[%c0_82, %c6_83, %c0_84], %160 {strides = array<i32>} : memref<1x24x128xf32, #tpu.memory_space<vmem>>, vector<1x1x128xf32>,
    %c0_85 = arith.constant 0 : index
    %c7 = arith.constant 7 : index
    %c0_86 = arith.constant 0 : index
    %161 = vector.load %arg4[%c0_85, %c7, %c0_86] : memref<1x24x128xf32, #tpu.memory_space<vmem>>, vector<1x1x128xf32>
    %162 = vector.shape_cast %161 : vector<1x1x128xf32> to vector<1x128xf32>
    %cst_87 = arith.constant 1.000000e+00 : f32
    %cst_88 = arith.constant 0.000000e+00 : f32
    %163 = vector.broadcast %cst_87 : f32 to vector<64x128xf32>
    %164 = vector.broadcast %cst_88 : f32 to vector<64x128xf32>
    %165 = arith.select %130, %163, %164 : vector<64x128xi1>, vector<64x128xf32>
    %cst_89 = arith.constant dense<0.000000e+00> : vector<128xf32>
    %166 = vector.multi_reduction <add>, %165, %cst_89 [0] : vector<64x128xf32> to vector<128xf32>
    %167 = vector.shape_cast %166 : vector<128xf32> to vector<1x128xf32>
    %168 = arith.addf %162, %167 : vector<1x128xf32>
    %c0_90 = arith.constant 0 : index
    %c7_91 = arith.constant 7 : index
    %c0_92 = arith.constant 0 : index
    %169 = vector.load %arg4[%c0_90, %c7_91, %c0_92] : memref<1x24x128xf32, #tpu.memory_space<vmem>>, vector<1x1x128xf32>
    %170 = vector.shape_cast %169 : vector<1x1x128xf32> to vector<1x128xf32>
    %171 = vector.shape_cast %168 : vector<1x128xf32> to vector<1x1x128xf32>
    tpu.vector_store %arg4[%c0_90, %c7_91, %c0_92], %171 {strides = array<i32>} : memref<1x24x128xf32, #tpu.memory_space<vmem>>, vector<1x1x128xf32>,
    %172 = arith.andi %63, %9 : vector<64x128xi1>
    %c0_93 = arith.constant 0 : index
    %c8 = arith.constant 8 : index
    %c0_94 = arith.constant 0 : index
    %173 = vector.load %arg4[%c0_93, %c8, %c0_94] : memref<1x24x128xf32, #tpu.memory_space<vmem>>, vector<1x1x128xf32>
    %174 = vector.shape_cast %173 : vector<1x1x128xf32> to vector<1x128xf32>
    %cst_95 = arith.constant 0.000000e+00 : f32
    %175 = vector.broadcast %cst_95 : f32 to vector<64x128xf32>
    %176 = arith.select %172, %3, %175 : vector<64x128xi1>, vector<64x128xf32>
    %cst_96 = arith.constant dense<0.000000e+00> : vector<128xf32>
    %177 = vector.multi_reduction <add>, %176, %cst_96 [0] : vector<64x128xf32> to vector<128xf32>
    %178 = vector.shape_cast %177 : vector<128xf32> to vector<1x128xf32>
    %179 = arith.addf %174, %178 : vector<1x128xf32>
    %c0_97 = arith.constant 0 : index
    %c8_98 = arith.constant 8 : index
    %c0_99 = arith.constant 0 : index
    %180 = vector.load %arg4[%c0_97, %c8_98, %c0_99] : memref<1x24x128xf32, #tpu.memory_space<vmem>>, vector<1x1x128xf32>
    %181 = vector.shape_cast %180 : vector<1x1x128xf32> to vector<1x128xf32>
    %182 = vector.shape_cast %179 : vector<1x128xf32> to vector<1x1x128xf32>
    tpu.vector_store %arg4[%c0_97, %c8_98, %c0_99], %182 {strides = array<i32>} : memref<1x24x128xf32, #tpu.memory_space<vmem>>, vector<1x1x128xf32>,
    %c0_100 = arith.constant 0 : index
    %c9 = arith.constant 9 : index
    %c0_101 = arith.constant 0 : index
    %183 = vector.load %arg4[%c0_100, %c9, %c0_101] : memref<1x24x128xf32, #tpu.memory_space<vmem>>, vector<1x1x128xf32>
    %184 = vector.shape_cast %183 : vector<1x1x128xf32> to vector<1x128xf32>
    %cst_102 = arith.constant 0.000000e+00 : f32
    %185 = vector.broadcast %cst_102 : f32 to vector<64x128xf32>
    %186 = arith.select %172, %4, %185 : vector<64x128xi1>, vector<64x128xf32>
    %cst_103 = arith.constant dense<0.000000e+00> : vector<128xf32>
    %187 = vector.multi_reduction <add>, %186, %cst_103 [0] : vector<64x128xf32> to vector<128xf32>
    %188 = vector.shape_cast %187 : vector<128xf32> to vector<1x128xf32>
    %189 = arith.addf %184, %188 : vector<1x128xf32>
    %c0_104 = arith.constant 0 : index
    %c9_105 = arith.constant 9 : index
    %c0_106 = arith.constant 0 : index
    %190 = vector.load %arg4[%c0_104, %c9_105, %c0_106] : memref<1x24x128xf32, #tpu.memory_space<vmem>>, vector<1x1x128xf32>
    %191 = vector.shape_cast %190 : vector<1x1x128xf32> to vector<1x128xf32>
    %192 = vector.shape_cast %189 : vector<1x128xf32> to vector<1x1x128xf32>
    tpu.vector_store %arg4[%c0_104, %c9_105, %c0_106], %192 {strides = array<i32>} : memref<1x24x128xf32, #tpu.memory_space<vmem>>, vector<1x1x128xf32>,
    %c0_107 = arith.constant 0 : index
    %c10 = arith.constant 10 : index
    %c0_108 = arith.constant 0 : index
    %193 = vector.load %arg4[%c0_107, %c10, %c0_108] : memref<1x24x128xf32, #tpu.memory_space<vmem>>, vector<1x1x128xf32>
    %194 = vector.shape_cast %193 : vector<1x1x128xf32> to vector<1x128xf32>
    %cst_109 = arith.constant 0.000000e+00 : f32
    %195 = vector.broadcast %cst_109 : f32 to vector<64x128xf32>
    %196 = arith.select %172, %7, %195 : vector<64x128xi1>, vector<64x128xf32>
    %cst_110 = arith.constant dense<0.000000e+00> : vector<128xf32>
    %197 = vector.multi_reduction <add>, %196, %cst_110 [0] : vector<64x128xf32> to vector<128xf32>
    %198 = vector.shape_cast %197 : vector<128xf32> to vector<1x128xf32>
    %199 = arith.addf %194, %198 : vector<1x128xf32>
    %c0_111 = arith.constant 0 : index
    %c10_112 = arith.constant 10 : index
    %c0_113 = arith.constant 0 : index
    %200 = vector.load %arg4[%c0_111, %c10_112, %c0_113] : memref<1x24x128xf32, #tpu.memory_space<vmem>>, vector<1x1x128xf32>
    %201 = vector.shape_cast %200 : vector<1x1x128xf32> to vector<1x128xf32>
    %202 = vector.shape_cast %199 : vector<1x128xf32> to vector<1x1x128xf32>
    tpu.vector_store %arg4[%c0_111, %c10_112, %c0_113], %202 {strides = array<i32>} : memref<1x24x128xf32, #tpu.memory_space<vmem>>, vector<1x1x128xf32>,
    %c0_114 = arith.constant 0 : index
    %c11 = arith.constant 11 : index
    %c0_115 = arith.constant 0 : index
    %203 = vector.load %arg4[%c0_114, %c11, %c0_115] : memref<1x24x128xf32, #tpu.memory_space<vmem>>, vector<1x1x128xf32>
    %204 = vector.shape_cast %203 : vector<1x1x128xf32> to vector<1x128xf32>
    %cst_116 = arith.constant 1.000000e+00 : f32
    %cst_117 = arith.constant 0.000000e+00 : f32
    %205 = vector.broadcast %cst_116 : f32 to vector<64x128xf32>
    %206 = vector.broadcast %cst_117 : f32 to vector<64x128xf32>
    %207 = arith.select %172, %205, %206 : vector<64x128xi1>, vector<64x128xf32>
    %cst_118 = arith.constant dense<0.000000e+00> : vector<128xf32>
    %208 = vector.multi_reduction <add>, %207, %cst_118 [0] : vector<64x128xf32> to vector<128xf32>
    %209 = vector.shape_cast %208 : vector<128xf32> to vector<1x128xf32>
    %210 = arith.addf %204, %209 : vector<1x128xf32>
    %c0_119 = arith.constant 0 : index
    %c11_120 = arith.constant 11 : index
    %c0_121 = arith.constant 0 : index
    %211 = vector.load %arg4[%c0_119, %c11_120, %c0_121] : memref<1x24x128xf32, #tpu.memory_space<vmem>>, vector<1x1x128xf32>
    %212 = vector.shape_cast %211 : vector<1x1x128xf32> to vector<1x128xf32>
    %213 = vector.shape_cast %210 : vector<1x128xf32> to vector<1x1x128xf32>
    tpu.vector_store %arg4[%c0_119, %c11_120, %c0_121], %213 {strides = array<i32>} : memref<1x24x128xf32, #tpu.memory_space<vmem>>, vector<1x1x128xf32>,
    %214 = arith.andi %71, %9 : vector<64x128xi1>
    %c0_122 = arith.constant 0 : index
    %c12 = arith.constant 12 : index
    %c0_123 = arith.constant 0 : index
    %215 = vector.load %arg4[%c0_122, %c12, %c0_123] : memref<1x24x128xf32, #tpu.memory_space<vmem>>, vector<1x1x128xf32>
    %216 = vector.shape_cast %215 : vector<1x1x128xf32> to vector<1x128xf32>
    %cst_124 = arith.constant 0.000000e+00 : f32
    %217 = vector.broadcast %cst_124 : f32 to vector<64x128xf32>
    %218 = arith.select %214, %3, %217 : vector<64x128xi1>, vector<64x128xf32>
    %cst_125 = arith.constant dense<0.000000e+00> : vector<128xf32>
    %219 = vector.multi_reduction <add>, %218, %cst_125 [0] : vector<64x128xf32> to vector<128xf32>
    %220 = vector.shape_cast %219 : vector<128xf32> to vector<1x128xf32>
    %221 = arith.addf %216, %220 : vector<1x128xf32>
    %c0_126 = arith.constant 0 : index
    %c12_127 = arith.constant 12 : index
    %c0_128 = arith.constant 0 : index
    %222 = vector.load %arg4[%c0_126, %c12_127, %c0_128] : memref<1x24x128xf32, #tpu.memory_space<vmem>>, vector<1x1x128xf32>
    %223 = vector.shape_cast %222 : vector<1x1x128xf32> to vector<1x128xf32>
    %224 = vector.shape_cast %221 : vector<1x128xf32> to vector<1x1x128xf32>
    tpu.vector_store %arg4[%c0_126, %c12_127, %c0_128], %224 {strides = array<i32>} : memref<1x24x128xf32, #tpu.memory_space<vmem>>, vector<1x1x128xf32>,
    %c0_129 = arith.constant 0 : index
    %c13 = arith.constant 13 : index
    %c0_130 = arith.constant 0 : index
    %225 = vector.load %arg4[%c0_129, %c13, %c0_130] : memref<1x24x128xf32, #tpu.memory_space<vmem>>, vector<1x1x128xf32>
    %226 = vector.shape_cast %225 : vector<1x1x128xf32> to vector<1x128xf32>
    %cst_131 = arith.constant 0.000000e+00 : f32
    %227 = vector.broadcast %cst_131 : f32 to vector<64x128xf32>
    %228 = arith.select %214, %4, %227 : vector<64x128xi1>, vector<64x128xf32>
    %cst_132 = arith.constant dense<0.000000e+00> : vector<128xf32>
    %229 = vector.multi_reduction <add>, %228, %cst_132 [0] : vector<64x128xf32> to vector<128xf32>
    %230 = vector.shape_cast %229 : vector<128xf32> to vector<1x128xf32>
    %231 = arith.addf %226, %230 : vector<1x128xf32>
    %c0_133 = arith.constant 0 : index
    %c13_134 = arith.constant 13 : index
    %c0_135 = arith.constant 0 : index
    %232 = vector.load %arg4[%c0_133, %c13_134, %c0_135] : memref<1x24x128xf32, #tpu.memory_space<vmem>>, vector<1x1x128xf32>
    %233 = vector.shape_cast %232 : vector<1x1x128xf32> to vector<1x128xf32>
    %234 = vector.shape_cast %231 : vector<1x128xf32> to vector<1x1x128xf32>
    tpu.vector_store %arg4[%c0_133, %c13_134, %c0_135], %234 {strides = array<i32>} : memref<1x24x128xf32, #tpu.memory_space<vmem>>, vector<1x1x128xf32>,
    %c0_136 = arith.constant 0 : index
    %c14 = arith.constant 14 : index
    %c0_137 = arith.constant 0 : index
    %235 = vector.load %arg4[%c0_136, %c14, %c0_137] : memref<1x24x128xf32, #tpu.memory_space<vmem>>, vector<1x1x128xf32>
    %236 = vector.shape_cast %235 : vector<1x1x128xf32> to vector<1x128xf32>
    %cst_138 = arith.constant 0.000000e+00 : f32
    %237 = vector.broadcast %cst_138 : f32 to vector<64x128xf32>
    %238 = arith.select %214, %7, %237 : vector<64x128xi1>, vector<64x128xf32>
    %cst_139 = arith.constant dense<0.000000e+00> : vector<128xf32>
    %239 = vector.multi_reduction <add>, %238, %cst_139 [0] : vector<64x128xf32> to vector<128xf32>
    %240 = vector.shape_cast %239 : vector<128xf32> to vector<1x128xf32>
    %241 = arith.addf %236, %240 : vector<1x128xf32>
    %c0_140 = arith.constant 0 : index
    %c14_141 = arith.constant 14 : index
    %c0_142 = arith.constant 0 : index
    %242 = vector.load %arg4[%c0_140, %c14_141, %c0_142] : memref<1x24x128xf32, #tpu.memory_space<vmem>>, vector<1x1x128xf32>
    %243 = vector.shape_cast %242 : vector<1x1x128xf32> to vector<1x128xf32>
    %244 = vector.shape_cast %241 : vector<1x128xf32> to vector<1x1x128xf32>
    tpu.vector_store %arg4[%c0_140, %c14_141, %c0_142], %244 {strides = array<i32>} : memref<1x24x128xf32, #tpu.memory_space<vmem>>, vector<1x1x128xf32>,
    %c0_143 = arith.constant 0 : index
    %c15 = arith.constant 15 : index
    %c0_144 = arith.constant 0 : index
    %245 = vector.load %arg4[%c0_143, %c15, %c0_144] : memref<1x24x128xf32, #tpu.memory_space<vmem>>, vector<1x1x128xf32>
    %246 = vector.shape_cast %245 : vector<1x1x128xf32> to vector<1x128xf32>
    %cst_145 = arith.constant 1.000000e+00 : f32
    %cst_146 = arith.constant 0.000000e+00 : f32
    %247 = vector.broadcast %cst_145 : f32 to vector<64x128xf32>
    %248 = vector.broadcast %cst_146 : f32 to vector<64x128xf32>
    %249 = arith.select %214, %247, %248 : vector<64x128xi1>, vector<64x128xf32>
    %cst_147 = arith.constant dense<0.000000e+00> : vector<128xf32>
    %250 = vector.multi_reduction <add>, %249, %cst_147 [0] : vector<64x128xf32> to vector<128xf32>
    %251 = vector.shape_cast %250 : vector<128xf32> to vector<1x128xf32>
    %252 = arith.addf %246, %251 : vector<1x128xf32>
    %c0_148 = arith.constant 0 : index
    %c15_149 = arith.constant 15 : index
    %c0_150 = arith.constant 0 : index
    %253 = vector.load %arg4[%c0_148, %c15_149, %c0_150] : memref<1x24x128xf32, #tpu.memory_space<vmem>>, vector<1x1x128xf32>
    %254 = vector.shape_cast %253 : vector<1x1x128xf32> to vector<1x128xf32>
    %255 = vector.shape_cast %252 : vector<1x128xf32> to vector<1x1x128xf32>
    tpu.vector_store %arg4[%c0_148, %c15_149, %c0_150], %255 {strides = array<i32>} : memref<1x24x128xf32, #tpu.memory_space<vmem>>, vector<1x1x128xf32>,
    %256 = arith.andi %79, %9 : vector<64x128xi1>
    %c0_151 = arith.constant 0 : index
    %c16 = arith.constant 16 : index
    %c0_152 = arith.constant 0 : index
    %257 = vector.load %arg4[%c0_151, %c16, %c0_152] : memref<1x24x128xf32, #tpu.memory_space<vmem>>, vector<1x1x128xf32>
    %258 = vector.shape_cast %257 : vector<1x1x128xf32> to vector<1x128xf32>
    %cst_153 = arith.constant 0.000000e+00 : f32
    %259 = vector.broadcast %cst_153 : f32 to vector<64x128xf32>
    %260 = arith.select %256, %3, %259 : vector<64x128xi1>, vector<64x128xf32>
    %cst_154 = arith.constant dense<0.000000e+00> : vector<128xf32>
    %261 = vector.multi_reduction <add>, %260, %cst_154 [0] : vector<64x128xf32> to vector<128xf32>
    %262 = vector.shape_cast %261 : vector<128xf32> to vector<1x128xf32>
    %263 = arith.addf %258, %262 : vector<1x128xf32>
    %c0_155 = arith.constant 0 : index
    %c16_156 = arith.constant 16 : index
    %c0_157 = arith.constant 0 : index
    %264 = vector.load %arg4[%c0_155, %c16_156, %c0_157] : memref<1x24x128xf32, #tpu.memory_space<vmem>>, vector<1x1x128xf32>
    %265 = vector.shape_cast %264 : vector<1x1x128xf32> to vector<1x128xf32>
    %266 = vector.shape_cast %263 : vector<1x128xf32> to vector<1x1x128xf32>
    tpu.vector_store %arg4[%c0_155, %c16_156, %c0_157], %266 {strides = array<i32>} : memref<1x24x128xf32, #tpu.memory_space<vmem>>, vector<1x1x128xf32>,
    %c0_158 = arith.constant 0 : index
    %c17 = arith.constant 17 : index
    %c0_159 = arith.constant 0 : index
    %267 = vector.load %arg4[%c0_158, %c17, %c0_159] : memref<1x24x128xf32, #tpu.memory_space<vmem>>, vector<1x1x128xf32>
    %268 = vector.shape_cast %267 : vector<1x1x128xf32> to vector<1x128xf32>
    %cst_160 = arith.constant 0.000000e+00 : f32
    %269 = vector.broadcast %cst_160 : f32 to vector<64x128xf32>
    %270 = arith.select %256, %4, %269 : vector<64x128xi1>, vector<64x128xf32>
    %cst_161 = arith.constant dense<0.000000e+00> : vector<128xf32>
    %271 = vector.multi_reduction <add>, %270, %cst_161 [0] : vector<64x128xf32> to vector<128xf32>
    %272 = vector.shape_cast %271 : vector<128xf32> to vector<1x128xf32>
    %273 = arith.addf %268, %272 : vector<1x128xf32>
    %c0_162 = arith.constant 0 : index
    %c17_163 = arith.constant 17 : index
    %c0_164 = arith.constant 0 : index
    %274 = vector.load %arg4[%c0_162, %c17_163, %c0_164] : memref<1x24x128xf32, #tpu.memory_space<vmem>>, vector<1x1x128xf32>
    %275 = vector.shape_cast %274 : vector<1x1x128xf32> to vector<1x128xf32>
    %276 = vector.shape_cast %273 : vector<1x128xf32> to vector<1x1x128xf32>
    tpu.vector_store %arg4[%c0_162, %c17_163, %c0_164], %276 {strides = array<i32>} : memref<1x24x128xf32, #tpu.memory_space<vmem>>, vector<1x1x128xf32>,
    %c0_165 = arith.constant 0 : index
    %c18 = arith.constant 18 : index
    %c0_166 = arith.constant 0 : index
    %277 = vector.load %arg4[%c0_165, %c18, %c0_166] : memref<1x24x128xf32, #tpu.memory_space<vmem>>, vector<1x1x128xf32>
    %278 = vector.shape_cast %277 : vector<1x1x128xf32> to vector<1x128xf32>
    %cst_167 = arith.constant 0.000000e+00 : f32
    %279 = vector.broadcast %cst_167 : f32 to vector<64x128xf32>
    %280 = arith.select %256, %7, %279 : vector<64x128xi1>, vector<64x128xf32>
    %cst_168 = arith.constant dense<0.000000e+00> : vector<128xf32>
    %281 = vector.multi_reduction <add>, %280, %cst_168 [0] : vector<64x128xf32> to vector<128xf32>
    %282 = vector.shape_cast %281 : vector<128xf32> to vector<1x128xf32>
    %283 = arith.addf %278, %282 : vector<1x128xf32>
    %c0_169 = arith.constant 0 : index
    %c18_170 = arith.constant 18 : index
    %c0_171 = arith.constant 0 : index
    %284 = vector.load %arg4[%c0_169, %c18_170, %c0_171] : memref<1x24x128xf32, #tpu.memory_space<vmem>>, vector<1x1x128xf32>
    %285 = vector.shape_cast %284 : vector<1x1x128xf32> to vector<1x128xf32>
    %286 = vector.shape_cast %283 : vector<1x128xf32> to vector<1x1x128xf32>
    tpu.vector_store %arg4[%c0_169, %c18_170, %c0_171], %286 {strides = array<i32>} : memref<1x24x128xf32, #tpu.memory_space<vmem>>, vector<1x1x128xf32>,
    %c0_172 = arith.constant 0 : index
    %c19 = arith.constant 19 : index
    %c0_173 = arith.constant 0 : index
    %287 = vector.load %arg4[%c0_172, %c19, %c0_173] : memref<1x24x128xf32, #tpu.memory_space<vmem>>, vector<1x1x128xf32>
    %288 = vector.shape_cast %287 : vector<1x1x128xf32> to vector<1x128xf32>
    %cst_174 = arith.constant 1.000000e+00 : f32
    %cst_175 = arith.constant 0.000000e+00 : f32
    %289 = vector.broadcast %cst_174 : f32 to vector<64x128xf32>
    %290 = vector.broadcast %cst_175 : f32 to vector<64x128xf32>
    %291 = arith.select %256, %289, %290 : vector<64x128xi1>, vector<64x128xf32>
    %cst_176 = arith.constant dense<0.000000e+00> : vector<128xf32>
    %292 = vector.multi_reduction <add>, %291, %cst_176 [0] : vector<64x128xf32> to vector<128xf32>
    %293 = vector.shape_cast %292 : vector<128xf32> to vector<1x128xf32>
    %294 = arith.addf %288, %293 : vector<1x128xf32>
    %c0_177 = arith.constant 0 : index
    %c19_178 = arith.constant 19 : index
    %c0_179 = arith.constant 0 : index
    %295 = vector.load %arg4[%c0_177, %c19_178, %c0_179] : memref<1x24x128xf32, #tpu.memory_space<vmem>>, vector<1x1x128xf32>
    %296 = vector.shape_cast %295 : vector<1x1x128xf32> to vector<1x128xf32>
    %297 = vector.shape_cast %294 : vector<1x128xf32> to vector<1x1x128xf32>
    tpu.vector_store %arg4[%c0_177, %c19_178, %c0_179], %297 {strides = array<i32>} : memref<1x24x128xf32, #tpu.memory_space<vmem>>, vector<1x1x128xf32>,
    %298 = arith.andi %87, %9 : vector<64x128xi1>
    %c0_180 = arith.constant 0 : index
    %c20 = arith.constant 20 : index
    %c0_181 = arith.constant 0 : index
    %299 = vector.load %arg4[%c0_180, %c20, %c0_181] : memref<1x24x128xf32, #tpu.memory_space<vmem>>, vector<1x1x128xf32>
    %300 = vector.shape_cast %299 : vector<1x1x128xf32> to vector<1x128xf32>
    %cst_182 = arith.constant 0.000000e+00 : f32
    %301 = vector.broadcast %cst_182 : f32 to vector<64x128xf32>
    %302 = arith.select %298, %3, %301 : vector<64x128xi1>, vector<64x128xf32>
    %cst_183 = arith.constant dense<0.000000e+00> : vector<128xf32>
    %303 = vector.multi_reduction <add>, %302, %cst_183 [0] : vector<64x128xf32> to vector<128xf32>
    %304 = vector.shape_cast %303 : vector<128xf32> to vector<1x128xf32>
    %305 = arith.addf %300, %304 : vector<1x128xf32>
    %c0_184 = arith.constant 0 : index
    %c20_185 = arith.constant 20 : index
    %c0_186 = arith.constant 0 : index
    %306 = vector.load %arg4[%c0_184, %c20_185, %c0_186] : memref<1x24x128xf32, #tpu.memory_space<vmem>>, vector<1x1x128xf32>
    %307 = vector.shape_cast %306 : vector<1x1x128xf32> to vector<1x128xf32>
    %308 = vector.shape_cast %305 : vector<1x128xf32> to vector<1x1x128xf32>
    tpu.vector_store %arg4[%c0_184, %c20_185, %c0_186], %308 {strides = array<i32>} : memref<1x24x128xf32, #tpu.memory_space<vmem>>, vector<1x1x128xf32>,
    %c0_187 = arith.constant 0 : index
    %c21 = arith.constant 21 : index
    %c0_188 = arith.constant 0 : index
    %309 = vector.load %arg4[%c0_187, %c21, %c0_188] : memref<1x24x128xf32, #tpu.memory_space<vmem>>, vector<1x1x128xf32>
    %310 = vector.shape_cast %309 : vector<1x1x128xf32> to vector<1x128xf32>
    %cst_189 = arith.constant 0.000000e+00 : f32
    %311 = vector.broadcast %cst_189 : f32 to vector<64x128xf32>
    %312 = arith.select %298, %4, %311 : vector<64x128xi1>, vector<64x128xf32>
    %cst_190 = arith.constant dense<0.000000e+00> : vector<128xf32>
    %313 = vector.multi_reduction <add>, %312, %cst_190 [0] : vector<64x128xf32> to vector<128xf32>
    %314 = vector.shape_cast %313 : vector<128xf32> to vector<1x128xf32>
    %315 = arith.addf %310, %314 : vector<1x128xf32>
    %c0_191 = arith.constant 0 : index
    %c21_192 = arith.constant 21 : index
    %c0_193 = arith.constant 0 : index
    %316 = vector.load %arg4[%c0_191, %c21_192, %c0_193] : memref<1x24x128xf32, #tpu.memory_space<vmem>>, vector<1x1x128xf32>
    %317 = vector.shape_cast %316 : vector<1x1x128xf32> to vector<1x128xf32>
    %318 = vector.shape_cast %315 : vector<1x128xf32> to vector<1x1x128xf32>
    tpu.vector_store %arg4[%c0_191, %c21_192, %c0_193], %318 {strides = array<i32>} : memref<1x24x128xf32, #tpu.memory_space<vmem>>, vector<1x1x128xf32>,
    %c0_194 = arith.constant 0 : index
    %c22 = arith.constant 22 : index
    %c0_195 = arith.constant 0 : index
    %319 = vector.load %arg4[%c0_194, %c22, %c0_195] : memref<1x24x128xf32, #tpu.memory_space<vmem>>, vector<1x1x128xf32>
    %320 = vector.shape_cast %319 : vector<1x1x128xf32> to vector<1x128xf32>
    %cst_196 = arith.constant 0.000000e+00 : f32
    %321 = vector.broadcast %cst_196 : f32 to vector<64x128xf32>
    %322 = arith.select %298, %7, %321 : vector<64x128xi1>, vector<64x128xf32>
    %cst_197 = arith.constant dense<0.000000e+00> : vector<128xf32>
    %323 = vector.multi_reduction <add>, %322, %cst_197 [0] : vector<64x128xf32> to vector<128xf32>
    %324 = vector.shape_cast %323 : vector<128xf32> to vector<1x128xf32>
    %325 = arith.addf %320, %324 : vector<1x128xf32>
    %c0_198 = arith.constant 0 : index
    %c22_199 = arith.constant 22 : index
    %c0_200 = arith.constant 0 : index
    %326 = vector.load %arg4[%c0_198, %c22_199, %c0_200] : memref<1x24x128xf32, #tpu.memory_space<vmem>>, vector<1x1x128xf32>
    %327 = vector.shape_cast %326 : vector<1x1x128xf32> to vector<1x128xf32>
    %328 = vector.shape_cast %325 : vector<1x128xf32> to vector<1x1x128xf32>
    tpu.vector_store %arg4[%c0_198, %c22_199, %c0_200], %328 {strides = array<i32>} : memref<1x24x128xf32, #tpu.memory_space<vmem>>, vector<1x1x128xf32>,
    %c0_201 = arith.constant 0 : index
    %c23 = arith.constant 23 : index
    %c0_202 = arith.constant 0 : index
    %329 = vector.load %arg4[%c0_201, %c23, %c0_202] : memref<1x24x128xf32, #tpu.memory_space<vmem>>, vector<1x1x128xf32>
    %330 = vector.shape_cast %329 : vector<1x1x128xf32> to vector<1x128xf32>
    %cst_203 = arith.constant 1.000000e+00 : f32
    %cst_204 = arith.constant 0.000000e+00 : f32
    %331 = vector.broadcast %cst_203 : f32 to vector<64x128xf32>
    %332 = vector.broadcast %cst_204 : f32 to vector<64x128xf32>
    %333 = arith.select %298, %331, %332 : vector<64x128xi1>, vector<64x128xf32>
    %cst_205 = arith.constant dense<0.000000e+00> : vector<128xf32>
    %334 = vector.multi_reduction <add>, %333, %cst_205 [0] : vector<64x128xf32> to vector<128xf32>
    %335 = vector.shape_cast %334 : vector<128xf32> to vector<1x128xf32>
    %336 = arith.addf %330, %335 : vector<1x128xf32>
    %c0_206 = arith.constant 0 : index
    %c23_207 = arith.constant 23 : index
    %c0_208 = arith.constant 0 : index
    %337 = vector.load %arg4[%c0_206, %c23_207, %c0_208] : memref<1x24x128xf32, #tpu.memory_space<vmem>>, vector<1x1x128xf32>
    %338 = vector.shape_cast %337 : vector<1x1x128xf32> to vector<1x128xf32>
    %339 = vector.shape_cast %336 : vector<1x128xf32> to vector<1x1x128xf32>
    tpu.vector_store %arg4[%c0_206, %c23_207, %c0_208], %339 {strides = array<i32>} : memref<1x24x128xf32, #tpu.memory_space<vmem>>, vector<1x1x128xf32>,
    return
  }
  func.func @transform_0(%arg0: i32, %arg1: i32) -> (i32, i32) {
    %c1_i32 = arith.constant 1 : i32
    %0 = arith.muli %arg0, %c1_i32 : i32
    %1 = arith.addi %0, %arg1 : i32
    %c0_i32 = arith.constant 0 : i32
    %c0_i32_0 = arith.constant 0 : i32
    return %1, %c0_i32 : i32, i32
  }
  func.func @transform_1(%arg0: i32, %arg1: i32) -> (i32, i32) {
    %c1_i32 = arith.constant 1 : i32
    %0 = arith.muli %arg0, %c1_i32 : i32
    %1 = arith.addi %0, %arg1 : i32
    %c0_i32 = arith.constant 0 : i32
    %c0_i32_0 = arith.constant 0 : i32
    return %1, %c0_i32 : i32, i32
  }
  func.func @transform_2(%arg0: i32, %arg1: i32) -> (i32, i32, i32) {
    %c0_i32 = arith.constant 0 : i32
    %c0_i32_0 = arith.constant 0 : i32
    %c0_i32_1 = arith.constant 0 : i32
    return %arg0, %c0_i32, %c0_i32_0 : i32, i32, i32
  }
}

</mosaic_0001>

<bundles_post_ra>
// kernel: tpu_custom_call.1
= control target key start
LH: loop header
LB: loop body
LE: loop exit
PB: predicated region body
PF: predicated region fallthrough
CT: control target
= control target key end

     0   :  { %7 = vsyncpa [#allocation3], 0  ;;  %s4184_s0 = inlined_call_operand.hbm [shape: f32[128,128], index: 0, kind: input, shape index: {}]   ;;  %s4185_s1 = inlined_call_operand.hbm [shape: f32[128,128], index: 1, kind: input, shape index: {}]   ;;  %s4186_s2 = inlined_call_operand.hbm [shape: f32[2,24,128], index: 2, kind: output, shape index: {}]  }
   0x1   :  { %9 = vsyncpa [#allocation3 + $0x1], 0 }
   0x2   :  { %10 = vsyncpa [#allocation6], 0 }
   0x3   :  { %12 = vsyncpa [#allocation6 + $0x1], 0 }
   0x4   :  { %13 = vsyncpa [#allocation4], 0 }
   0x5   :  { %15 = vsyncpa [#allocation4 + $0x1], 0  ;;  %s1647_s9 = smov 0   ;;  %s1649_s10 = smov 0  }
   0x6   :  { %s1651_s11 = smov 0   ;;  %s1653_s12 = smov 0  }
   0x7   :  { %s1655_s13 = smov 0   ;;  %s1657_s14 = smov 0  }
   0x8 LB: > { %s1367_s15 = sadd.s32 4294967295, %s1622_s14   ;;  %s1368_s16 = sadd.s32 4294967294, %s1622_s14   ;;  %s1622_s14 = sphi %s1657_s14, %s21_s14   ;;  %s1618_s13 = sphi %s1655_s13, %s4909_s13   ;;  %s1614_s12 = sphi %s1653_s12, %s4908_s12   ;;  %s1610_s11 = sphi %s1651_s11, %s4907_s11   ;;  %s1606_s10 = sphi %s1649_s10, %s4906_s10   ;;  %s1602_s9 = sphi %s1647_s9, %s4905_s9  }
   0x9   : > { %s33_s17 = sadd.s32 1, %s1618_s13  ;;  %s42_s18 = sadd.s32 1, %s1610_s11 }
   0xa   : > { %p35_p0 = scmp.ge.s32.totalorder %s33_s17, 2  ;;  %p49_p1 = scmp.ne.s32.totalorder %s1610_s11, %s1606_s10 }
   0xb   : > { %p50_p2 = scmp.eq.s32.totalorder %s1622_s14, 0  ;;  %p55_p3 = scmp.ne.s32.totalorder %s1606_s10, %s1602_s9 }
   0xc   : > { %s4911_s17 = smov (%p35_p0, %s33_s17), 0  ;;  %p56_p5 = scmp.eq.s32.totalorder %s1367_s15, 0 }
   0xd   : > { %p1688_p4 = por %p50_p2, %p49_p1  ;;  %s39_s20 = ssub.s32 %s1618_s13, %s4911_s17 }
   0xe   : > { %p107_p6 = scmp.eq.s32.totalorder %s1367_s15, 1  ;;  %p40_p7 = scmp.eq.s32.totalorder %s39_s20, 0 }
   0xf   : > { %p1694_p8 = por %p56_p5, %p55_p3  ;;  %p113_p10 = scmp.eq.s32.totalorder %s1368_s16, 1 }
  0x10   : > { %p1698_p9 = por %p107_p6, %p49_p1  ;;  %p1404_p13 = scmp.lt.s32.totalorder %s1622_s14, 2 }
  0x11   : > { %s4323_s21 = scalar_select %p1694_p8, 1, 0 }
  0x12   : > { %s4324_s22 = scalar_select %p1698_p9, 1, 0 }
  0x13   : > { %s1703_s23 = scalar_select %p40_p7, %s1610_s11, %s42_s18  }
  0x14   : > { %p1705_p11 = por %p113_p10, %p55_p3  ;;  %s1712_s25 = sand.u32 1, %s1610_s11  }
  0x15   : > { %s1371_s26 = sshll.u32 %s1712_s25, 6  ;;  %s1383_s27 = sshll.u32 %s1618_s13, 10 }
  0x16   : > { %s4325_s24 = scalar_select %p1705_p11, 1, 0 }
  0x17   : > { %s1721_s30 = scalar_lea.hbm %s4184_s0, %s1383_s27  ;;  %s137_s3 = scalar_lea.vmem [#allocation2], %s1371_s26 }
  0x18   : > { %s145_s4 = sshll.u32 %s137_s3, 4  ;;  %p1729_p0 = pnand %p1404_p13, %p1688_p4  ;;  %s1725_s4 = int_to_ptr.vmem [resolvable:$true] %s145_s4 }
  0x19   : > { %s134_s6 = scalar_lea.sflag [#allocation3], %s1712_s25  ;;  %s1476_s7 = scalar_lea.hbm %s1721_s30, 1024 }
  0x1a   : > { %p1477_p2 = scmp.ne.s32.totalorder %s1721_s30, %s1476_s7  ;;  %p1478_p3 = pneg %p1729_p0 }
  0x1b   : > { %s1481_s16 = scalar_lea.hbm %s4184_s0, 2048  ;;  %p1482_p4 = scmp.lt.u32.totalorder %s1721_s30, %s4184_s0 }
  0x1c   : > { %p1479_p5 = pnand %p1478_p3, %p1477_p2  ;;  %p1483_p7 = scmp.lt.u32.totalorder %s1481_s16, %s1476_s7 }
  0x1d   : > { %p1485_p13 = scmp.lt.u32.totalorder %s1476_s7, %s1721_s30 }
  0x1e   : > { %p1480_p6 = pneg %p1479_p5  ;;  %p1484_p10 = por %p1483_p7, %p1482_p4 }
  0x20   : > { %p1486_p12 = por %p1485_p13, %p1484_p10 }
  0x22   : > { %p1487_p1 = pnand %p1486_p12, %p1480_p6 }
  0x24   : > { %1490 = shalt.err (!%p1487_p1)
}
  0x25   : > { %s1491_s20 = scalar_lea.vmem %s1725_s4, 1024  ;;  %s1624_s28 = smov [#allocation2]  }
  0x26   : > { %p1492_p2 = scmp.ne.s32.totalorder %s1725_s4, %s1491_s20  ;;  %s1496_s29 = sshll.u32 %s1624_s28, 4  ;;  %s1497_s29 = int_to_ptr.vmem [resolvable:$false] %s1496_s29 }
  0x27   : > { %s1498_s3 = scalar_lea.vmem %s1497_s29, 2048  ;;  %p1499_p9 = scmp.lt.s32.totalorder %s1725_s4, %s1497_s29 }
  0x28   : > { %p1494_p5 = pnand %p1492_p2, %p1478_p3  ;;  %p1500_p4 = scmp.lt.s32.totalorder %s1498_s3, %s1491_s20 }
  0x2a   : > { %p1495_p11 = pneg %p1494_p5  ;;  %p1501_p7 = por %p1500_p4, %p1499_p9 }
  0x2c   : > { %p1502_p10 = pnand %p1501_p7, %p1495_p11 }
  0x2e   : > { %1505 = shalt.err (!%p1502_p10)
}
  0x2f   : > { %s1625_s7 = smov 128   ;;  %s1626_s8 = smov 8  }
  0x30   : > { %1396 = dma.hbm_to_vmem [thread:$0]  (!%p1729_p0), %s1721_s30, 1024, %s1725_s4, %s134_s6, %s1625_s7, %s1625_s7, %s1626_s8  }
  0x31   : > { %p175_p9 = scmp.lt.s32.totalorder %s1622_s14, 3  ;;  %s1771_s18 = scalar_lea.hbm %s4185_s1, %s1383_s27 }
  0x32   : > { %p4327_p11 = scmp.ge.s32.totalorder %s1622_s14, 1  ;;  %s159_s20 = scalar_lea.vmem [#allocation5], %s1371_s26 }
  0x33   : > { %s167_s28 = sshll.u32 %s159_s20, 4  ;;  %s156_s30 = scalar_lea.sflag [#allocation6], %s1712_s25  ;;  %s1781_s28 = int_to_ptr.vmem [resolvable:$true] %s167_s28 }
  0x34   : > { %p1775_p12 = pnand %p4327_p11, %p175_p9  ;;  %s1506_s4 = scalar_lea.hbm %s1771_s18, 1024 }
  0x35   : > { %p1507_p1 = scmp.ne.s32.totalorder %s1771_s18, %s1506_s4  ;;  %s1511_s29 = scalar_lea.hbm %s4185_s1, 2048 }
  0x36   : > { %p1512_p2 = scmp.lt.u32.totalorder %s1771_s18, %s4185_s1  ;;  %p1513_p5 = scmp.lt.u32.totalorder %s1511_s29, %s1506_s4 }
  0x37   : > { %p1509_p6 = pnand %p1507_p1, %p1478_p3  ;;  %p1515_p7 = scmp.lt.u32.totalorder %s1506_s4, %s1771_s18 }
  0x38   : > { %p1514_p4 = por %p1513_p5, %p1512_p2 }
  0x39   : > { %p1510_p13 = pneg %p1509_p6 }
  0x3a   : > { %p1516_p10 = por %p1515_p7, %p1514_p4 }
  0x3c   : > { %p1517_p9 = pnand %p1516_p10, %p1510_p13 }
  0x3e   : > { %1520 = shalt.err (!%p1517_p9)
}
  0x3f   : > { %s1521_s26 = scalar_lea.vmem %s1781_s28, 1024  ;;  %s1627_s16 = smov [#allocation5]  }
  0x40   : > { %p1522_p11 = scmp.ne.s32.totalorder %s1781_s28, %s1521_s26  ;;  %s1526_s20 = sshll.u32 %s1627_s16, 4  ;;  %s1527_s20 = int_to_ptr.vmem [resolvable:$false] %s1526_s20 }
  0x41   : > { %s1528_s27 = scalar_lea.vmem %s1527_s20, 2048  ;;  %p1529_p8 = scmp.lt.s32.totalorder %s1781_s28, %s1527_s20 }
  0x42   : > { %p1524_p1 = pnand %p1522_p11, %p1478_p3  ;;  %p1530_p2 = scmp.lt.s32.totalorder %s1528_s27, %s1521_s26 }
  0x44   : > { %p1525_p6 = pneg %p1524_p1  ;;  %p1531_p5 = por %p1530_p2, %p1529_p8 }
  0x46   : > { %p1532_p4 = pnand %p1531_p5, %p1525_p6 }
  0x48   : > { %1535 = shalt.err (!%p1532_p4)
}
  0x49   : > { %1399 = dma.hbm_to_vmem [thread:$0]  (!%p1729_p0), %s1771_s18, 1024, %s1781_s28, %s156_s30, %s1625_s7, %s1625_s7, %s1626_s8  }
  0x4a   : > { %179 = sbr.rel (%p1775_p12) target bundleno = 351 (0x15f), region = 28 }
  0x51   : > { %s1815_s4 = sand.u32 1, %s1606_s10   ;;  %p4329_p8 = scmp.ne.s32.totalorder %s4323_s21, 0 }
  0x52   : > { %s1378_s6 = sshll.u32 %s1815_s4, 6  ;;  %s182_s29 = scalar_lea.sflag [#allocation3], %s1815_s4 }
  0x53   : > { %s1819_s5 = scalar_lea.vmem [#allocation2], %s1378_s6 }
  0x54   : > { %1589 = dma.done.wait (%p4329_p8), %s182_s29, 1024  }
  0x55   : > { %1591 = vsyncadd (%p4329_p8), %s182_s29, 4294966272  ;;  %s191_s25 = scalar_lea.sflag [#allocation6], %s1815_s4  ;;  %s1826_s7 = scalar_lea.vmem [#allocation5], %s1378_s6 }
  0x56   : > { %1593 = dma.done.wait (%p4329_p8), %s191_s25, 1024  }
  0x57   : > { %1595 = vsyncadd (%p4329_p8), %s191_s25, 4294966272  ;;  %s1385_s8 = smul.u32 24, %s1815_s4  ;;  %v4189_v0 = vmov 0.0   ;;  %v1842_v1 = vld [vmem:[%s1819_s5] sm:$0xff]  ;;  %v1845_v2 = vld [vmem:[%s1819_s5 + $0x8] sm:$0xff]  ;;  %s1248_s15 = scalar_lea.sflag [#allocation4], %s1815_s4 }
  0x58   : > { %v1848_v3 = vld [vmem:[%s1819_s5 + $0x10] sm:$0xff]  ;;  %v1851_v4 = vld [vmem:[%s1819_s5 + $0x18] sm:$0xff]  ;;  %v1854_v5 = vld [vmem:[%s1826_s7] sm:$0xff]  ;;  %v247_v7 = vmul.f32 %v1842_v1, %v1842_v1  ;;  %v248_v8 = vmul.f32 %v1845_v2, %v1845_v2  ;;  %v287_v15 = vmul.f32 -1.2246469e-16, %v1842_v1  ;;  %s1386_s21 = smul.u32 384, %s1614_s12 }
  0x59   : > { %s1833_s18 = scalar_lea.vmem [#allocation7], %s1385_s8  ;;  %4330 = vst [vmem:[#allocation11_spill] sm:$0xff] %v1851_v4  ;;  %v1857_v6 = vld [vmem:[%s1826_s7 + $0x8] sm:$0xff]  ;;  %v1864_v9 = vld [vmem:[%s1819_s5 + $0x20] sm:$0xff]  ;;  %v1867_v10 = vld [vmem:[%s1826_s7 + $0x10] sm:$0xff]  ;;  %v249_v12 = vmul.f32 %v1848_v3, %v1848_v3  ;;  %v255_v13 = vmul.f32 %v1854_v5, %v1854_v5  ;;  %v250_v19 = vmul.f32 %v1851_v4, %v1851_v4  ;;  %v1932_v33 = vmul.f32 -1.0, %v1854_v5 }
  0x5a   : > { %228 = vst [vmem:[%s1833_s18] sm:$0xff] %v4189_v0  ;;  %229 = vst [vmem:[%s1833_s18 + $0x8] sm:$0xff] %v4189_v0  ;;  %v1870_v11 = vld [vmem:[%s1826_s7 + $0x18] sm:$0xff]  ;;  %v256_v14 = vmul.f32 %v1857_v6, %v1857_v6  ;;  %v1880_v16 = vld [vmem:[%s1819_s5 + $0x28] sm:$0xff]  ;;  %v1892_v20 = vmul.f32 %v1864_v9, %v1864_v9  ;;  %v257_v21 = vmul.f32 %v1867_v10, %v1867_v10  ;;  %v288_v28 = vmul.f32 -1.2246469e-16, %v1845_v2  ;;  %s1261_s19 = sshll.u32 %s1833_s18, 4  ;;  %s4132_s3 = scalar_lea.hbm %s4186_s2, %s1386_s21  ;;  %s4134_s19 = int_to_ptr.vmem [resolvable:$true] %s1261_s19 }
  0x5b   : > { %230 = vst [vmem:[%s1833_s18 + $0x10] sm:$0xff] %v4189_v0  ;;  %4331 = vst [vmem:[#allocation12_spill] sm:$0xff] %v1857_v6  ;;  %v1883_v17 = vld [vmem:[%s1819_s5 + $0x30] sm:$0xff]  ;;  %v1886_v18 = vld [vmem:[%s1819_s5 + $0x38] sm:$0xff]  ;;  %v258_v22 = vmul.f32 %v1870_v11, %v1870_v11  ;;  %v1906_v25 = vmul.f32 %v1880_v16, %v1880_v16  ;;  %v1935_v34 = vmul.f32 -1.0, %v1857_v6  ;;  %v1945_v37 = vadd.f32 %v255_v13, %v247_v7  ;;  %s1536_s12 = scalar_lea.vmem %s4134_s19, 384 }
  0x5c   : > { %4332 = vst [vmem:[#allocation13_spill] sm:$0xff] %v1864_v9  ;;  %4333 = vst [vmem:[#allocation14_spill] sm:$0xff] %v1867_v10  ;;  %v1899_v23 = vld [vmem:[%s1826_s7 + $0x20] sm:$0xff]  ;;  %v1902_v24 = vld [vmem:[%s1826_s7 + $0x28] sm:$0xff]  ;;  %v1910_v26 = vmul.f32 %v1883_v17, %v1883_v17  ;;  %v1914_v27 = vmul.f32 %v1886_v18, %v1886_v18  ;;  %v1947_v38 = vadd.f32 %v256_v14, %v248_v8  ;;  %v1954_v41 = vmul.f32 -1.0, %v1867_v10  ;;  %p1537_p0 = scmp.ne.s32.totalorder %s4134_s19, %s1536_s12  ;;  %p4902_p3 = scmp.ne.s32.totalorder %s4324_s22, 0 }
  0x5d   : > { %4334 = vst [vmem:[#allocation15_spill] sm:$0xff] %v1870_v11  ;;  %4335 = vst [vmem:[#allocation16_spill] sm:$0xff] %v1880_v16  ;;  %v1918_v29 = vld [vmem:[%s1826_s7 + $0x30] sm:$0xff]  ;;  %v1921_v30 = vld [vmem:[%s1826_s7 + $0x38] sm:$0xff]  ;;  %v1925_v31 = vmul.f32 %v1899_v23, %v1899_v23  ;;  %v1929_v32 = vmul.f32 %v1902_v24, %v1902_v24  ;;  %v1949_v39 = vadd.f32 %v257_v21, %v249_v12  ;;  %v1957_v42 = vmul.f32 -1.0, %v1870_v11  ;;  %s1629_s26 = smov [#allocation7]  }
  0x5e   : > { %4336 = vst [vmem:[#allocation17_spill] sm:$0xff] %v1883_v17  ;;  %4337 = vst [vmem:[#allocation18_spill] sm:$0xff] %v1886_v18  ;;  %v1939_v35 = vmul.f32 %v1918_v29, %v1918_v29  ;;  %v1943_v36 = vmul.f32 %v1921_v30, %v1921_v30  ;;  %v1951_v40 = vadd.f32 %v258_v22, %v250_v19  ;;  %v1960_v43 = vmul.f32 -1.0, %v1899_v23  ;;  %p1538_p12 = pnand %p1537_p0, %p4902_p3  ;;  %s1540_s16 = sshll.u32 %s1629_s26, 4  ;;  %s1541_s16 = int_to_ptr.vmem [resolvable:$false] %s1540_s16 }
  0x5f   : > { %4338 = vst [vmem:[#allocation19_spill] sm:$0xff] %v1899_v23  ;;  %4339 = vst [vmem:[#allocation20_spill] sm:$0xff] %v1902_v24  ;;  %v1963_v44 = vmul.f32 -1.0, %v1902_v24  ;;  %v1966_v45 = vmul.f32 -1.0, %v1918_v29  ;;  %v289_v46 = vmul.f32 -1.2246469e-16, %v1848_v3  ;;  %v1973_v50 = vsub.f32 %v1932_v33, %v287_v15  ;;  %p1543_p7 = scmp.lt.s32.totalorder %s4134_s19, %s1541_s16 }
  0x60   : > { %4340 = vst [vmem:[#allocation21_spill] sm:$0xff] %v1918_v29  ;;  %4341 = vst [vmem:[#allocation22_spill] sm:$0xff] %v1921_v30  ;;  %v290_v47 = vmul.f32 -1.2246469e-16, %v1851_v4  ;;  %v291_v48 = vmul.f32 -1.2246469e-16, %v1864_v9  ;;  %v2020_v13 = vsub.f32 %v1935_v34, %v288_v28  ;;  %p1539_p13 = pneg %p1538_p12 }
  0x61   : > { %4342 = vst [vmem:[#allocation23_spill] sm:$0xff] %v1932_v33  ;;  %4343 = vst [vmem:[#allocation24_spill] sm:$0xff] %v1935_v34  ;;  %v292_v49 = vmul.f32 -1.2246469e-16, %v1880_v16  ;;  %v1976_v51 = vmul.f32 -1.0, %v1921_v30  ;;  %v1981_v54 = vmul.f32 -0.5, %v1854_v5  ;;  %v2032_v21 = vsub.f32 %v1954_v41, %v289_v46 }
  0x62   : > { %4344 = vst [vmem:[#allocation25_spill] sm:$0xff] %v1954_v41  ;;  %4345 = vst [vmem:[#allocation26_spill] sm:$0xff] %v1957_v42  ;;  %v293_v52 = vmul.f32 -1.2246469e-16, %v1883_v17  ;;  %v294_v53 = vmul.f32 -1.2246469e-16, %v1886_v18  ;;  %v2035_v22 = vsub.f32 %v1957_v42, %v290_v47  ;;  %v2046_v34 = vsub.f32 %v1960_v43, %v291_v48 }
  0x63   : > { %4346 = vst [vmem:[#allocation27_spill] sm:$0xff] %v1963_v44  ;;  %4347 = vst [vmem:[#allocation28_spill] sm:$0xff] %v1973_v50  ;;  %v1984_v55 = vmul.f32 -0.5, %v1857_v6  ;;  %v1987_v56 = vmul.f32 -0.5, %v1867_v10  ;;  %v1990_v57 = vmul.f32 -0.8660254, %v1842_v1  ;;  %v2049_v33 = vsub.f32 %v1963_v44, %v292_v49 }
  0x64   : > { %4348 = vst [vmem:[#allocation29_spill] sm:$0xff] %v1981_v54  ;;  %v1993_v58 = vmul.f32 -0.8660254, %v1845_v2  ;;  %v1996_v59 = vmul.f32 -0.5, %v1870_v11  ;;  %v1999_v60 = vmul.f32 -0.5, %v1899_v23  ;;  %v2008_v63 = vmul.f32 -0.5, %v1902_v24 }
  0x65   : > { %4349 = vst [vmem:[#allocation30_spill] sm:$0xff] %v1984_v55  ;;  %4350 = vst [vmem:[#allocation31_spill] sm:$0xff] %v1987_v56  ;;  %v2002_v61 = vmul.f32 -0.8660254, %v1848_v3  ;;  %v2005_v62 = vmul.f32 -0.8660254, %v1851_v4  ;;  %v2039_v0 = vsub.f32 %v1981_v54, %v1990_v57  ;;  %v2060_v42 = vsub.f32 %v1966_v45, %v293_v52 }
  0x66   : > { %4351 = vst [vmem:[#allocation32_spill] sm:$0xff] %v1996_v59  ;;  %4352 = vst [vmem:[#allocation33_spill] sm:$0xff] %v1999_v60  ;;  %v2011_v7 = vmul.f32 -0.5, %v1918_v29  ;;  %v2014_v8 = vmul.f32 -0.5, %v1921_v30  ;;  %v2017_v12 = vmul.f32 -0.8660254, %v1864_v9  ;;  %v2043_v28 = vsub.f32 %v1984_v55, %v1993_v58 }
  0x67   : > { %4353 = vst [vmem:[#allocation34_spill] sm:$0xff] %v2008_v63  ;;  %4356 = vst [vmem:[#allocation37_spill] sm:$0xff] %v2020_v13  ;;  %v2023_v14 = vmul.f32 -0.8660254, %v1880_v16  ;;  %v2026_v15 = vmul.f32 -0.8660254, %v1883_v17  ;;  %v2053_v46 = vsub.f32 %v1987_v56, %v2002_v61  ;;  %v2057_v47 = vsub.f32 %v1996_v59, %v2005_v62 }
  0x68   : > { %4354 = vst [vmem:[#allocation35_spill] sm:$0xff] %v2011_v7  ;;  %4355 = vst [vmem:[#allocation36_spill] sm:$0xff] %v2014_v8  ;;  %v2029_v19 = vmul.f32 -0.8660254, %v1886_v18  ;;  %v2063_v41 = vsub.f32 %v1976_v51, %v294_v53  ;;  %v2067_v48 = vsub.f32 %v1999_v60, %v2017_v12  ;;  %vm383_vm0 = vcmp.ge.f32.partialorder %v1973_v50, 0.0  ;;  %s1542_s20 = scalar_lea.vmem %s1541_s16, 768 }
  0x69   : > { %4357 = vst [vmem:[#allocation38_spill] sm:$0xff] %v2032_v21  ;;  %4358 = vst [vmem:[#allocation39_spill] sm:$0xff] %v2035_v22  ;;  %v2072_v49 = vsub.f32 %v2008_v63, %v2023_v14  ;;  %v2076_v44 = vsub.f32 %v2011_v7, %v2026_v15  ;;  %vm384_vm1 = vcmp.ge.f32.partialorder %v2020_v13, 0.0  ;;  %v2085_v53 = vadd.f32 %v1990_v57, %v1981_v54  ;;  %p1544_p10 = scmp.lt.s32.totalorder %s1542_s20, %s1536_s12 }
  0x6a   : > { %4359 = vst [vmem:[#allocation40_spill] sm:$0xff] %v2039_v0  ;;  %4360 = vst [vmem:[#allocation41_spill] sm:$0xff] %v2043_v28  ;;  %v2080_v52 = vsub.f32 %v2014_v8, %v2029_v19  ;;  %vm385_vm2 = vcmp.ge.f32.partialorder %v2032_v21, 0.0  ;;  %vm391_vm3 = vcmp.lt.f32.partialorder %v2039_v0, 0.0  ;;  %vm392_vm4 = vcmp.lt.f32.partialorder %v2043_v28, 0.0 }
  0x6b   : > { %4361 = vst [vmem:[#allocation42_spill] sm:$0xff] %v2046_v34  ;;  %4362 = vst [vmem:[#allocation43_spill] sm:$0xff] %v2049_v33  ;;  %v2092_v50 = vadd.f32 %v1993_v58, %v1984_v55  ;;  %vm386_vm5 = vcmp.ge.f32.partialorder %v2035_v22, 0.0  ;;  %vm393_vm6 = vcmp.lt.f32.partialorder %v2053_v46, 0.0  ;;  %vm394_vm7 = vcmp.lt.f32.partialorder %v2057_v47, 0.0  ;;  %p1545_p9 = por %p1544_p10, %p1543_p7 }
  0x6c   : > { %4363 = vst [vmem:[#allocation44_spill] sm:$0xff] %v2053_v46  ;;  %4364 = vst [vmem:[#allocation45_spill] sm:$0xff] %v2057_v47  ;;  %v2103_v54 = vadd.f32 %v2002_v61, %v1987_v56  ;;  %v2107_v28 = vadd.f32 %v2005_v62, %v1996_v59  ;;  %vm387_vm9 = vcmp.ge.f32.partialorder %v2046_v34, 0.0  ;;  %vm395_vm10 = vcmp.lt.f32.partialorder %v2067_v48, 0.0 }
  0x6d   : > { %4365 = vst [vmem:[#allocation46_spill] sm:$0xff] %v2060_v42  ;;  %4366 = vst [vmem:[#allocation47_spill] sm:$0xff] %v2063_v41  ;;  %v2117_v46 = vadd.f32 %v2017_v12, %v1999_v60  ;;  %v2121_v56 = vadd.f32 %v2023_v14, %v2008_v63  ;;  %vm388_vm12 = vcmp.ge.f32.partialorder %v2049_v33, 0.0  ;;  %vm396_vm13 = vcmp.lt.f32.partialorder %v2072_v49, 0.0  ;;  %p1546_p11 = pnand %p1545_p9, %p1539_p13 }
  0x6e   : > { %4367 = vst [vmem:[#allocation48_spill] sm:$0xff] %v2067_v48  ;;  %4368 = vst [vmem:[#allocation49_spill] sm:$0xff] %v2072_v49  ;;  %v2133_v0 = vadd.f32 %v2026_v15, %v2011_v7  ;;  %v2137_v60 = vadd.f32 %v2029_v19, %v2014_v8  ;;  %vm389_vm15 = vcmp.ge.f32.partialorder %v2060_v42, 0.0  ;;  %v2151_v7 = vadd.f32 %v1925_v31, %v1892_v20 }
  0x6f   : > { %4369 = vst [vmem:[#allocation50_spill] sm:$0xff] %v2076_v44  ;;  %4370 = vst [vmem:[#allocation51_spill] sm:$0xff] %v2080_v52  ;;  %v2155_v8 = vadd.f32 %v1929_v32, %v1906_v25  ;;  %v2169_v20 = vadd.f32 %v1939_v35, %v1910_v26  ;;  %v2183_v31 = vadd.f32 %v1943_v36, %v1914_v27  ;;  %v327_v32 = vmul.f32 0.5, %v1854_v5  ;;  %v4432_v25 = vld [vmem:[#allocation27_spill] sm:$0xff] }
  0x70   : > { %4371 = vst [vmem:[#allocation52_spill] sm:$0xff] %v2085_v53  ;;  %4372 = vst [vmem:[#allocation53_spill] sm:$0xff] %v2092_v50  ;;  %v328_v35 = vmul.f32 0.5, %v1857_v6  ;;  %v330_v42 = vmul.f32 0.5, %v1870_v11  ;;  %v331_v33 = vmul.f32 0.5, %v1899_v23  ;;  %v332_v34 = vmul.f32 0.5, %v1902_v24 }
  0x71   : > { %vm2097_vm8 = vmand %vm383_vm0, %vm391_vm3  ;;  %4375 = vst [vmem:[#allocation54_spill] sm:$0xff] %v2103_v54  ;;  %vm397_vm0 = vcmp.lt.f32.partialorder %v2076_v44, 0.0  ;;  %vm398_vm3 = vcmp.lt.f32.partialorder %v2080_v52, 0.0  ;;  %v334_v63 = vmul.f32 0.5, %v1921_v30  ;;  %v351_v52 = vmul.f32 -1.6081226e-16, %v1842_v1 }
  0x72   : > { %4376 = vst [vmem:[#allocation55_spill] sm:$0xff] %v2107_v28  ;;  %vm2111_vm11 = vmand %vm384_vm1, %vm392_vm4  ;;  %v352_v23 = vmul.f32 -1.6081226e-16, %v1845_v2  ;;  %v355_v30 = vmul.f32 -1.6081226e-16, %v1864_v9  ;;  %v2270_v21 = vsub.f32 %v327_v32, %v1990_v57  ;;  %v2273_v9 = vsub.f32 %v328_v35, %v1993_v58  ;;  %v4439_v27 = vld [vmem:[#allocation40_spill] sm:$0xff] }
  0x73   : > { %4379 = vst [vmem:[#allocation56_spill] sm:$0xff] %v2117_v46  ;;  %4380 = vst [vmem:[#allocation57_spill] sm:$0xff] %v2121_v56  ;;  %v356_v59 = vmul.f32 -1.6081226e-16, %v1880_v16  ;;  %v357_v24 = vmul.f32 -1.6081226e-16, %v1883_v17  ;;  %v2290_v57 = vsub.f32 %v331_v33, %v2017_v12  ;;  %v2293_v58 = vsub.f32 %v332_v34, %v2023_v14 }
  0x74   : > { %vm2127_vm14 = vmand %vm385_vm2, %vm393_vm6  ;;  %4383 = vst [vmem:[#allocation58_spill] sm:$0xff] %v2133_v0  ;;  %vm4397_vm2 = vcmp.gt.f32.partialorder %v2085_v53, 0.5497665  ;;  %v333_v53 = vmul.f32 0.5, %v1918_v29  ;;  %v354_v29 = vmul.f32 -1.6081226e-16, %v1851_v4 }
  0x75   : > { %4384 = vst [vmem:[#allocation59_spill] sm:$0xff] %v2137_v60  ;;  %vm2145_vm1 = vmand %vm386_vm5, %vm394_vm7  ;;  %v4423_v12 = vld [vmem:[#allocation24_spill] sm:$0xff]  ;;  %v4425_v14 = vld [vmem:[#allocation25_spill] sm:$0xff] }
  0x76   : > { %4387 = vst [vmem:[#allocation60_spill] sm:$0xff] %v2155_v8  ;;  %vm2163_vm4 = vmand %vm387_vm9, %vm395_vm10  ;;  %vm4394_vm10 = vcmp.ge.f32.partialorder %v2063_v41, 0.0  ;;  %v329_v41 = vmul.f32 0.5, %v1867_v10  ;;  %v358_v8 = vmul.f32 -1.6081226e-16, %v1886_v18  ;;  %v2279_v18 = vsub.f32 %v330_v42, %v2005_v62  ;;  %v4421_v62 = vld [vmem:[#allocation23_spill] sm:$0xff] }
  0x77   : > { %vm2174_vm6 = vmand %vm388_vm12, %vm396_vm13  ;;  %vm410_vm13 = vcmp.gt.f32.partialorder %v2107_v28, 0.5497665  ;;  %4411 = vst [vmem:[#allocation61_spill] sm:$0xff] %v2270_v21  ;;  %v2299_v42 = vsub.f32 %v334_v63, %v2029_v19  ;;  %v2310_v33 = vadd.f32 %v351_v52, %v4421_v62  ;;  %v2313_v34 = vadd.f32 %v352_v23, %v4423_v12 }
  0x78   : > { %vm2190_vm12 = vmand %vm389_vm15, %vm397_vm0  ;;  %vm413_vm15 = vcmp.gt.f32.partialorder %v2133_v0, 0.5497665  ;;  %vm414_vm0 = vcmp.gt.f32.partialorder %v2137_v60, 0.5497665  ;;  %4412 = vst [vmem:[#allocation62_spill] sm:$0xff] %v2273_v9  ;;  %v2276_v17 = vsub.f32 %v329_v41, %v2002_v61  ;;  %v2296_v41 = vsub.f32 %v333_v53, %v2026_v15  ;;  %v4427_v53 = vld [vmem:[#allocation26_spill] sm:$0xff] }
  0x79   : > { %vm2202_vm7 = vmand %vm4394_vm10, %vm398_vm3  ;;  %vm4400_vm10 = vcmp.gt.f32.partialorder %v2092_v50, 0.5497665  ;;  %v353_v50 = vmul.f32 -1.6081226e-16, %v1848_v3  ;;  %4414 = vst [vmem:[#allocation64_spill] sm:$0xff] %v2279_v18  ;;  %v2319_v63 = vadd.f32 %v354_v29, %v4427_v53  ;;  %v2330_v52 = vadd.f32 %v355_v30, %v1960_v43  ;;  %v4440_v30 = vld [vmem:[#allocation41_spill] sm:$0xff] }
  0x7a   : > { %vm2215_vm5 = vmand %vm2097_vm8, %vm4397_vm2  ;;  %vm4403_vm2 = vcmp.gt.f32.partialorder %v2103_v54, 0.5497665  ;;  %4413 = vst [vmem:[#allocation63_spill] sm:$0xff] %v2276_v17  ;;  %v2333_v23 = vadd.f32 %v356_v59, %v4432_v25  ;;  %v2339_v29 = vadd.f32 %v358_v8, %v1976_v51  ;;  %v4441_v43 = vld [vmem:[#allocation44_spill] sm:$0xff]  ;;  %v4454_v53 = vld [vmem:[#allocation51_spill] sm:$0xff] }
  0x7b   : > { %vm2228_vm9 = vmand %vm2111_vm11, %vm4400_vm10  ;;  %4418 = vst [vmem:[#allocation65_spill] sm:$0xff] %v2290_v57  ;;  %v2316_v15 = vadd.f32 %v353_v50, %v4425_v14  ;;  %v2336_v50 = vadd.f32 %v357_v24, %v1966_v45  ;;  %v4463_v60 = vld [vmem:[#allocation19_spill] sm:$0xff]  ;;  %v369_v8 = vmul.f32 0.8660254, %v1848_v3 }
  0x7c   : > { %vm2241_vm3 = vmand %vm2127_vm14, %vm4403_vm2  ;;  %vm4408_vm2 = vcmp.gt.f32.partialorder %v2117_v46, 0.5497665  ;;  %4422 = vst [vmem:[#allocation23_spill] sm:$0xff] %v2310_v33  ;;  %vm4442_vm14 = vcmp.lt.f32.partialorder %v1947_v38, 2.1157024  ;;  %v4467_v46 = vld [vmem:[#allocation20_spill] sm:$0xff] }
  0x7d   : > { %vm2253_vm10 = vmand %vm2145_vm1, %vm410_vm13  ;;  %vm4415_vm1 = vcmp.gt.f32.partialorder %v2121_v56, 0.5497665  ;;  %4424 = vst [vmem:[#allocation24_spill] sm:$0xff] %v2313_v34  ;;  %vm4436_vm13 = vcmp.lt.f32.partialorder %v1945_v37, 2.1157024  ;;  %v4455_v25 = vld [vmem:[#allocation60_spill] sm:$0xff] }
  0x7e   : > { %vm2265_vm11 = vmand %vm2163_vm4, %vm4408_vm2  ;;  %4426 = vst [vmem:[#allocation25_spill] sm:$0xff] %v2316_v15  ;;  %vm435_vm2 = vcmp.lt.f32.partialorder %v2290_v57, 0.0 }
  0x7f   : > { %vm2285_vm4 = vmand %vm2174_vm6, %vm4415_vm1  ;;  %4428 = vst [vmem:[#allocation26_spill] sm:$0xff] %v2319_v63  ;;  %vm4445_vm1 = vcmp.lt.f32.partialorder %v1949_v39, 2.1157024 }
  0x80   : > { %vm2305_vm6 = vmand %vm2190_vm12, %vm413_vm15  ;;  %4431 = vst [vmem:[#allocation66_spill] sm:$0xff] %v2330_v52  ;;  %vm4483_vm15 = vcmp.ge.f32.partialorder %v2057_v47, 0.0 }
  0x81   : > { %vm2325_vm12 = vmand %vm2202_vm7, %vm414_vm0  ;;  %4433 = vst [vmem:[#allocation27_spill] sm:$0xff] %v2333_v23  ;;  %vm4448_vm0 = vcmp.lt.f32.partialorder %v1951_v40, 2.1157024 }
  0x82   : > { %4434 = vst [vmem:[#allocation67_spill] sm:$0xff] %v2336_v50  ;;  %4435 = vst [vmem:[#allocation68_spill] sm:$0xff] %v2339_v29 }
  0x83   : > { %vm2345_vm7 = vmand %vm2215_vm5, %vm4436_vm13  ;;  %vm431_vm13 = vcmp.lt.f32.partialorder %v2270_v21, 0.0  ;;  %vm4456_vm5 = vcmp.lt.f32.partialorder %v4455_v25, 2.1157024 }
  0x84   : > { %vm2357_vm8 = vmand %vm2228_vm9, %vm4442_vm14  ;;  %v632_v45 = vsel %vm2345_vm7, %v1842_v1, 0.0  ;;  %v656_v51 = vsel %vm2345_vm7, %v1854_v5, 0.0  ;;  %vm4451_vm14 = vcmp.lt.f32.partialorder %v2151_v7, 2.1157024 }
  0x85   : > { %vm2373_vm9 = vmand %vm2241_vm3, %vm4445_vm1  ;;  %v633_v32 = vsel %vm2357_vm8, %v1845_v2, 0.0  ;;  %v657_v35 = vsel %vm2357_vm8, %v1857_v6, 0.0  ;;  %v681_v61 = vsel %vm2357_vm8, %v1947_v38, 0.0  ;;  %v4477_v6 = vld [vmem:[#allocation21_spill] sm:$0xff] }
  0x86   : > { %vm2390_vm3 = vmand %vm2253_vm10, %vm4448_vm0  ;;  %v634_v13 = vsel %vm2373_vm9, %v1848_v3, 0.0  ;;  %v640_v55 = vadd.f32 %v633_v32, %v632_v45  ;;  %v658_v59 = vsel %vm2373_vm9, %v1867_v10, 0.0  ;;  %v664_v62 = vadd.f32 %v657_v35, %v656_v51  ;;  %v4462_v35 = vld [vmem:[#allocation13_spill] sm:$0xff] }
  0x87   : > { %vm2405_vm10 = vmand %vm2265_vm11, %vm4451_vm14  ;;  %v635_v12 = vsel %vm2390_vm3, %v1851_v4, 0.0  ;;  %v659_v14 = vsel %vm2390_vm3, %v1870_v11, 0.0  ;;  %vm4459_vm0 = vcmp.lt.f32.partialorder %v2169_v20, 2.1157024  ;;  %v682_v19 = vsel %vm2373_vm9, %v1949_v39, 0.0  ;;  %v4546_v32 = vld [vmem:[#allocation33_spill] sm:$0xff] }
  0x88   : > { %vm2422_vm11 = vmand %vm2285_vm4, %vm4456_vm5  ;;  %v641_v45 = vadd.f32 %v640_v55, %v634_v13  ;;  %v665_v51 = vadd.f32 %v664_v62, %v658_v59  ;;  %v636_v22 = vsel %vm2405_vm10, %v4462_v35, 0.0  ;;  %v660_v13 = vsel %vm2405_vm10, %v4463_v60, 0.0 }
  0x89   : > { %vm2432_vm1 = vmand %vm2305_vm6, %vm4459_vm0  ;;  %v680_v55 = vsel %vm2345_vm7, %v1945_v37, 0.0  ;;  %vm4464_vm4 = vcmp.lt.f32.partialorder %v2183_v31, 2.1157024  ;;  %v637_v56 = vsel %vm2422_vm11, %v1880_v16, 0.0  ;;  %v661_v60 = vsel %vm2422_vm11, %v4467_v46, 0.0 }
  0x8a   : > { %vm2452_vm6 = vmand %vm2325_vm12, %vm4464_vm4  ;;  %v642_v62 = vadd.f32 %v641_v45, %v635_v12  ;;  %v666_v0 = vadd.f32 %v665_v51, %v659_v14  ;;  %v4468_v11 = vmov 0.0   ;;  %vm4469_vm12 = vcmp.ge.f32.partialorder %v4439_v27, 0.0  ;;  %v4476_v27 = vld [vmem:[#allocation17_spill] sm:$0xff] }
  0x8b   : > { %v704_v12 = vsel %vm2345_vm7, 1.0, %v4468_v11  ;;  %vm2474_vm4 = vmand %vm4469_vm12, %vm431_vm13  ;;  %v688_v10 = vadd.f32 %v681_v61, %v680_v55  ;;  %v705_v46 = vsel %vm2357_vm8, 1.0, %v4468_v11  ;;  %vm4472_vm0 = vcmp.lt.f32.partialorder %v2273_v9, 0.0 }
  0x8c   : > { %v643_v45 = vadd.f32 %v642_v62, %v636_v22  ;;  %v667_v51 = vadd.f32 %v666_v0, %v660_v13  ;;  %vm4473_vm5 = vcmp.ge.f32.partialorder %v4440_v30, 0.0  ;;  %v638_v21 = vsel %vm2432_vm1, %v4476_v27, 0.0  ;;  %v4572_v22 = vld [vmem:[#allocation39_spill] sm:$0xff] }
  0x8d   : > { %vm2485_vm7 = vmand %vm4473_vm5, %vm4472_vm0  ;;  %v662_v0 = vsel %vm2432_vm1, %v4477_v6, 0.0  ;;  %v683_v24 = vsel %vm2390_vm3, %v1951_v40, 0.0  ;;  %vm4478_vm8 = vcmp.lt.f32.partialorder %v2276_v17, 0.0  ;;  %vm4479_vm13 = vcmp.ge.f32.partialorder %v4441_v43, 0.0  ;;  %v4486_v43 = vld [vmem:[#allocation18_spill] sm:$0xff] }
  0x8e   : > { %vm2502_vm5 = vmand %vm4479_vm13, %vm4478_vm8  ;;  %v644_v13 = vadd.f32 %v643_v45, %v637_v56  ;;  %v668_v55 = vadd.f32 %v667_v51, %v661_v60  ;;  %v689_v61 = vadd.f32 %v688_v10, %v682_v19  ;;  %v706_v62 = vsel %vm2373_vm9, 1.0, %v4468_v11  ;;  %v4487_v17 = vld [vmem:[#allocation22_spill] sm:$0xff] }
  0x8f   : > { %vm4482_vm12 = vcmp.lt.f32.partialorder %v2279_v18, 0.0  ;;  %v639_v6 = vsel %vm2452_vm6, %v4486_v43, 0.0  ;;  %v663_v10 = vsel %vm2452_vm6, %v4487_v17, 0.0  ;;  %v684_v56 = vsel %vm2405_vm10, %v2151_v7, 0.0 }
  0x90   : > { %vm2514_vm14 = vmand %vm4483_vm15, %vm4482_vm12  ;;  %v712_v60 = vadd.f32 %v705_v46, %v704_v12  ;;  %vm4488_vm15 = vcmp.ge.f32.partialorder %v2067_v48, 0.0  ;;  %v645_v19 = vadd.f32 %v644_v13, %v638_v21  ;;  %v669_v45 = vadd.f32 %v668_v55, %v662_v0  ;;  %v703_v48 = vld [vmem:[%s1833_s18 + $0x3] sm:$0x1] }
  0x91   : > { %vm2531_vm9 = vmand %vm4488_vm15, %vm435_vm2  ;;  %v690_v51 = vadd.f32 %v689_v61, %v683_v24  ;;  %v707_v47 = vsel %vm2390_vm3, 1.0, %v4468_v11  ;;  %vm4491_vm8 = vcmp.lt.f32.partialorder %v2293_v58, 0.0  ;;  %vm4492_vm13 = vcmp.ge.f32.partialorder %v2072_v49, 0.0  ;;  %v4526_v49 = vld [vmem:[#allocation29_spill] sm:$0xff] }
  0x92   : > { %vm2542_vm12 = vmand %vm4492_vm13, %vm4491_vm8  ;;  %v685_v12 = vsel %vm2422_vm11, %v4455_v25, 0.0  ;;  %v686_v21 = vsel %vm2432_vm1, %v2169_v20, 0.0  ;;  %v708_v36 = vsel %vm2405_vm10, 1.0, %v4468_v11  ;;  %v713_v0 = vadd.f32 %v712_v60, %v706_v62 }
  0x93   : > { %vm4495_vm2 = vcmp.lt.f32.partialorder %v2296_v41, 0.0  ;;  %vm4496_vm3 = vcmp.ge.f32.partialorder %v2076_v44, 0.0  ;;  %v646_v13 = vadd.f32 %v645_v19, %v639_v6  ;;  %v670_v55 = vadd.f32 %v669_v45, %v663_v10  ;;  %v4564_v44 = vld [vmem:[#allocation20_spill] sm:$0xff] }
  0x94   : > { %vm2559_vm15 = vmand %vm4496_vm3, %vm4495_vm2  ;;  %v691_v61 = vadd.f32 %v690_v51, %v684_v56  ;;  %vm4499_vm8 = vcmp.lt.f32.partialorder %v2299_v42, 0.0  ;;  %vm4500_vm13 = vcmp.ge.f32.partialorder %v4454_v53, 0.0  ;;  %v687_v54 = vsel %vm2452_vm6, %v2183_v31, 0.0  ;;  %v4562_v53 = vld [vmem:[#allocation61_spill] sm:$0xff] }
  0x95   : > { %vm2567_vm0 = vmand %vm4500_vm13, %vm4499_vm8  ;;  %v709_v6 = vsel %vm2422_vm11, 1.0, %v4468_v11  ;;  %v714_v62 = vadd.f32 %v713_v0, %v707_v47  ;;  %vm4503_vm3 = vcmp.gt.f32.partialorder %v2310_v33, 0.5497665  ;;  %v647_v56 = vrot.slane %v646_v13, 4 }
  0x96   : > { %vm2583_vm8 = vmand %vm2474_vm4, %vm4503_vm3  ;;  %v671_v60 = vrot.slane %v670_v55, 4  ;;  %v692_v19 = vadd.f32 %v691_v61, %v685_v12  ;;  %vm451_vm13 = vcmp.gt.f32.partialorder %v2330_v52, 0.5497665  ;;  %vm4506_vm10 = vcmp.gt.f32.partialorder %v2313_v34, 0.5497665  ;;  %v4556_v61 = vld [vmem:[#allocation12_spill] sm:$0xff] }
  0x97   : > { %vm2592_vm11 = vmand %vm2485_vm7, %vm4506_vm10  ;;  %v710_v28 = vsel %vm2432_vm1, 1.0, %v4468_v11  ;;  %v711_v14 = vsel %vm2452_vm6, 1.0, %v4468_v11  ;;  %v715_v45 = vadd.f32 %v714_v62, %v708_v36  ;;  %vm452_vm4 = vcmp.gt.f32.partialorder %v2333_v23, 0.5497665 }
  0x98   : > { %vm4509_vm3 = vcmp.gt.f32.partialorder %v2316_v15, 0.5497665  ;;  %v648_v51 = vadd.f32 %v647_v56, %v646_v13  ;;  %v672_v12 = vadd.f32 %v671_v60, %v670_v55  ;;  %v693_v0 = vadd.f32 %v692_v19, %v686_v21 }
  0x99   : > { %vm2607_vm2 = vmand %vm2502_vm5, %vm4509_vm3  ;;  %vm453_vm1 = vcmp.gt.f32.partialorder %v2336_v50, 0.5497665  ;;  %vm4512_vm7 = vcmp.gt.f32.partialorder %v2319_v63, 0.5497665  ;;  %v716_v59 = vadd.f32 %v715_v45, %v709_v6  ;;  %vm454_vm10 = vcmp.gt.f32.partialorder %v2339_v29, 0.5497665 }
  0x9a   : > { %vm2616_vm6 = vmand %vm2514_vm14, %vm4512_vm7  ;;  %v367_v21 = vmul.f32 0.8660254, %v1842_v1  ;;  %v368_v36 = vmul.f32 0.8660254, %v1845_v2  ;;  %v649_v13 = vrot.slane %v648_v51, 2  ;;  %v673_v55 = vrot.slane %v672_v12, 2 }
  0x9b   : > { %vm2623_vm5 = vmand %vm2531_vm9, %vm451_vm13  ;;  %v694_v30 = vadd.f32 %v693_v0, %v687_v54  ;;  %v717_v6 = vadd.f32 %v716_v59, %v710_v28  ;;  %v370_v56 = vmul.f32 0.8660254, %v1851_v4  ;;  %v371_v54 = vmul.f32 0.8660254, %v4462_v35 }
  0x9c   : > { %vm2633_vm14 = vmand %vm2542_vm12, %vm452_vm4  ;;  %v372_v60 = vmul.f32 0.8660254, %v1880_v16  ;;  %v650_v46 = vadd.f32 %v649_v13, %v648_v51  ;;  %v674_v19 = vadd.f32 %v673_v55, %v672_v12  ;;  %v2656_v28 = vmul.f32 0.8660254, %v4476_v27  ;;  %v4528_v13 = vld [vmem:[#allocation30_spill] sm:$0xff] }
  0x9d   : > { %vm2640_vm9 = vmand %vm2559_vm15, %vm453_vm1  ;;  %v695_v45 = vrot.slane %v694_v30, 4  ;;  %v718_v0 = vadd.f32 %v717_v6, %v711_v14  ;;  %vm4523_vm15 = vcmp.lt.f32.partialorder %v1945_v37, 2.1157024  ;;  %v2667_v12 = vmul.f32 0.8660254, %v4486_v43 }
  0x9e   : > { %vm2651_vm12 = vmand %vm2567_vm0, %vm454_vm10  ;;  %v2670_v59 = vadd.f32 %v367_v21, %v4526_v49  ;;  %v2673_v55 = vadd.f32 %v368_v36, %v4528_v13  ;;  %v651_v29 = vrot.slane %v650_v46, 1  ;;  %v675_v50 = vrot.slane %v674_v19, 1  ;;  %v631_v21 = vld [vmem:[%s1833_s18] sm:$0x1]  ;;  %v655_v49 = vld [vmem:[%s1833_s18 + $0x1] sm:$0x1] }
  0x9f   : > { %vm2662_vm13 = vmand %vm2583_vm8, %vm4523_vm15  ;;  %v696_v14 = vadd.f32 %v695_v45, %v694_v30  ;;  %vm4530_vm0 = vcmp.lt.f32.partialorder %v1947_v38, 2.1157024  ;;  %v719_v23 = vrot.slane %v718_v0, 4  ;;  %vm4533_vm4 = vcmp.lt.f32.partialorder %v1949_v39, 2.1157024  ;;  %v4536_v30 = vld [vmem:[#allocation31_spill] sm:$0xff] }
  0xa0   : > { %4527 = vst [vmem:[#allocation60_spill] sm:$0xff] %v2670_v59  ;;  %4529 = vst [vmem:[#allocation17_spill] sm:$0xff] %v2673_v55  ;;  %v736_v6 = vsel %vm2662_vm13, %v1842_v1, 0.0  ;;  %v2700_v45 = vadd.f32 %v369_v8, %v4536_v30  ;;  %v4538_v13 = vld [vmem:[#allocation32_spill] sm:$0xff]  ;;  %v652_v63 = vadd.f32 %v651_v29, %v650_v46  ;;  %v676_v15 = vadd.f32 %v675_v50, %v674_v19  ;;  %v4548_v46 = vld [vmem:[#allocation34_spill] sm:$0xff] }
  0xa1   : > { %vm2679_vm8 = vmand %vm2592_vm11, %vm4530_vm0  ;;  %v2703_v52 = vadd.f32 %v370_v56, %v4538_v13  ;;  %v697_v34 = vrot.slane %v696_v14, 2  ;;  %vm4540_vm11 = vcmp.lt.f32.partialorder %v1951_v40, 2.1157024  ;;  %v720_v8 = vadd.f32 %v719_v23, %v718_v0  ;;  %v4567_v36 = vld [vmem:[#allocation28_spill] sm:$0xff] }
  0xa2   : > { %vm2692_vm3 = vmand %vm2607_vm2, %vm4533_vm4  ;;  %v737_v47 = vsel %vm2679_vm8, %v1845_v2, 0.0  ;;  %4537 = vst [vmem:[#allocation18_spill] sm:$0xff] %v2700_v45  ;;  %vm4543_vm1 = vcmp.lt.f32.partialorder %v2151_v7, 2.1157024  ;;  %v2725_v56 = vadd.f32 %v371_v54, %v4546_v32  ;;  %v2728_v19 = vadd.f32 %v372_v60, %v4548_v46 }
  0xa3   : > { %4539 = vst [vmem:[#allocation22_spill] sm:$0xff] %v2703_v52  ;;  %vm2709_vm2 = vmand %vm2616_vm6, %vm4540_vm11  ;;  %v738_v33 = vsel %vm2692_vm3, %v1848_v3, 0.0  ;;  %v744_v29 = vadd.f32 %v737_v47, %v736_v6  ;;  %v653_v30 = vadd.f32 %v652_v63, %v631_v21  ;;  %v677_v13 = vadd.f32 %v676_v15, %v655_v49  ;;  %v679_v49 = vld [vmem:[%s1833_s18 + $0x2] sm:$0x1] }
  0xa4   : > { %vm2720_vm7 = vmand %vm2623_vm5, %vm4543_vm1  ;;  %4547 = vst [vmem:[#allocation29_spill] sm:$0xff] %v2725_v56  ;;  %v698_v23 = vadd.f32 %v697_v34, %v696_v14  ;;  %vm4550_vm6 = vcmp.lt.f32.partialorder %v4455_v25, 2.1157024  ;;  %v739_v54 = vsel %vm2709_vm2, %v1851_v4, 0.0  ;;  %v721_v0 = vrot.slane %v720_v8, 2 }
  0xa5   : > { %4549 = vst [vmem:[#allocation30_spill] sm:$0xff] %v2728_v19  ;;  %vm2734_vm10 = vmand %vm2633_vm14, %vm4550_vm6  ;;  %vm4553_vm5 = vcmp.lt.f32.partialorder %v2169_v20, 2.1157024  ;;  %v745_v34 = vadd.f32 %v744_v29, %v738_v33  ;;  %v760_v63 = vsel %vm2662_vm13, %v1854_v5, 0.0  ;;  %v761_v60 = vsel %vm2679_vm8, %v4556_v61, 0.0  ;;  %v4557_v33 = vld [vmem:[#allocation14_spill] sm:$0xff] }
  0xa6   : > { %vm2745_vm15 = vmand %vm2640_vm9, %vm4553_vm5  ;;  %654 = vst [vmem:[%s1833_s18] sm:$0x1] %v653_v30  ;;  %v699_v14 = vrot.slane %v698_v23, 1  ;;  %v740_v62 = vsel %vm2720_vm7, %v4462_v35, 0.0  ;;  %v741_v6 = vsel %vm2734_vm10, %v1880_v16, 0.0  ;;  %v762_v21 = vsel %vm2692_vm3, %v4557_v33, 0.0  ;;  %v4561_v30 = vld [vmem:[#allocation15_spill] sm:$0xff] }
  0xa7   : > { %678 = vst [vmem:[%s1833_s18 + $0x1] sm:$0x1] %v677_v13  ;;  %v722_v47 = vadd.f32 %v721_v0, %v720_v8  ;;  %vm4558_vm14 = vcmp.lt.f32.partialorder %v2183_v31, 2.1157024  ;;  %v742_v32 = vsel %vm2745_vm15, %v4476_v27, 0.0  ;;  %v746_v46 = vadd.f32 %v745_v34, %v739_v54  ;;  %v4563_v0 = vld [vmem:[#allocation19_spill] sm:$0xff] }
  0xa8   : > { %vm2771_vm9 = vmand %vm2651_vm12, %vm4558_vm14  ;;  %v763_v13 = vsel %vm2709_vm2, %v4561_v30, 0.0  ;;  %vm463_vm0 = vcmp.ge.f32.partialorder %v4562_v53, 0.0  ;;  %v700_v8 = vadd.f32 %v699_v14, %v698_v23  ;;  %v764_v24 = vsel %vm2720_vm7, %v4563_v0, 0.0  ;;  %v4565_v14 = vld [vmem:[#allocation63_spill] sm:$0xff] }
  0xa9   : > { %v765_v16 = vsel %vm2734_vm10, %v4564_v44, 0.0  ;;  %v768_v35 = vadd.f32 %v761_v60, %v760_v63  ;;  %vm464_vm12 = vcmp.ge.f32.partialorder %v2273_v9, 0.0  ;;  %v723_v27 = vrot.slane %v722_v47, 1  ;;  %v4566_v60 = vld [vmem:[#allocation21_spill] sm:$0xff] }
  0xaa   : > { %v747_v54 = vadd.f32 %v746_v46, %v740_v62  ;;  %v784_v34 = vsel %vm2662_vm13, %v1945_v37, 0.0  ;;  %v785_v23 = vsel %vm2679_vm8, %v1947_v38, 0.0  ;;  %vm465_vm4 = vcmp.ge.f32.partialorder %v4565_v14, 0.0 }
  0xab   : > { %v701_v0 = vadd.f32 %v700_v8, %v679_v49  ;;  %v743_v63 = vsel %vm2771_vm9, %v4486_v43, 0.0  ;;  %v766_v62 = vsel %vm2745_vm15, %v4566_v60, 0.0  ;;  %v769_v46 = vadd.f32 %v768_v35, %v762_v21 }
  0xac   : > { %vm466_vm11 = vcmp.ge.f32.partialorder %v2279_v18, 0.0  ;;  %v724_v44 = vadd.f32 %v723_v27, %v722_v47  ;;  %v748_v30 = vadd.f32 %v747_v54, %v741_v6  ;;  %v767_v4 = vsel %vm2771_vm9, %v4487_v17, 0.0 }
  0xad   : > { %v786_v49 = vsel %vm2692_vm3, %v1949_v39, 0.0  ;;  %vm467_vm1 = vcmp.ge.f32.partialorder %v2290_v57, 0.0  ;;  %702 = vst [vmem:[%s1833_s18 + $0x2] sm:$0x1] %v701_v0  ;;  %v770_v43 = vadd.f32 %v769_v46, %v763_v13  ;;  %v787_v35 = vsel %vm2709_vm2, %v1951_v40, 0.0 }
  0xae   : > { %v788_v6 = vsel %vm2720_vm7, %v2151_v7, 0.0  ;;  %v792_v21 = vadd.f32 %v785_v23, %v784_v34  ;;  %v725_v47 = vadd.f32 %v724_v44, %v703_v48  ;;  %v749_v8 = vadd.f32 %v748_v30, %v742_v32 }
  0xaf   : > { %v808_v27 = vsel %vm2662_vm13, 1.0, %v4468_v11  ;;  %v809_v0 = vsel %vm2679_vm8, 1.0, %v4468_v11  ;;  %v771_v13 = vadd.f32 %v770_v43, %v764_v24  ;;  %v789_v54 = vsel %vm2734_vm10, %v4455_v25, 0.0 }
  0xb0   : > { %v790_v46 = vsel %vm2745_vm15, %v2169_v20, 0.0  ;;  %v793_v34 = vadd.f32 %v792_v21, %v786_v49  ;;  %726 = vst [vmem:[%s1833_s18 + $0x3] sm:$0x1] %v725_v47  ;;  %v750_v44 = vadd.f32 %v749_v8, %v743_v63  ;;  %v791_v48 = vsel %vm2771_vm9, %v2183_v31, 0.0  ;;  %v4568_v47 = vld [vmem:[#allocation37_spill] sm:$0xff]  ;;  %v4573_v8 = vld [vmem:[#allocation42_spill] sm:$0xff] }
  0xb1   : > { %v810_v51 = vsel %vm2692_vm3, 1.0, %v4468_v11  ;;  %v811_v10 = vsel %vm2709_vm2, 1.0, %v4468_v11  ;;  %v772_v32 = vadd.f32 %v771_v13, %v765_v16  ;;  %v812_v24 = vsel %vm2720_vm7, 1.0, %v4468_v11  ;;  %v4576_v13 = vld [vmem:[#allocation43_spill] sm:$0xff]  ;;  %v3333_v16 = vld [vmem:[%s1819_s5] sm:$0xff] }
  0xb2   : > { %v794_v30 = vadd.f32 %v793_v34, %v787_v35  ;;  %v816_v23 = vadd.f32 %v809_v0, %v808_v27  ;;  %v751_v63 = vrot.slane %v750_v44, 4  ;;  %v813_v49 = vsel %vm2734_vm10, 1.0, %v4468_v11  ;;  %v4571_v35 = vld [vmem:[#allocation38_spill] sm:$0xff] }
  0xb3   : > { %vm471_vm8 = vcmp.gt.f32.partialorder %v4567_v36, 0.0  ;;  %v773_v43 = vadd.f32 %v772_v32, %v766_v62  ;;  %vm472_vm3 = vcmp.gt.f32.partialorder %v4568_v47, 0.0  ;;  %vm473_vm7 = vcmp.gt.f32.partialorder %v4571_v35, 0.0 }
  0xb4   : > { %v795_v21 = vadd.f32 %v794_v30, %v788_v6  ;;  %v817_v26 = vadd.f32 %v816_v23, %v810_v51  ;;  %vm2851_vm2 = vmand %vm463_vm0, %vm471_vm8  ;;  %v752_v50 = vadd.f32 %v751_v63, %v750_v44  ;;  %vm474_vm6 = vcmp.gt.f32.partialorder %v4572_v22, 0.0  ;;  %v4579_v51 = vld [vmem:[#allocation46_spill] sm:$0xff]  ;;  %v4582_v30 = vld [vmem:[#allocation47_spill] sm:$0xff] }
  0xb5   : > { %vm475_vm10 = vcmp.gt.f32.partialorder %v4573_v8, 0.0  ;;  %vm2860_vm5 = vmand %vm464_vm12, %vm472_vm3  ;;  %v774_v6 = vadd.f32 %v773_v43, %v767_v4  ;;  %vm476_vm14 = vcmp.gt.f32.partialorder %v4576_v13, 0.0  ;;  %vm469_vm8 = vcmp.ge.f32.partialorder %v2296_v41, 0.0  ;;  %v4640_v4 = vld [vmem:[#allocation13_spill] sm:$0xff] }
  0xb6   : > { %v796_v27 = vadd.f32 %v795_v21, %v789_v54  ;;  %v818_v0 = vadd.f32 %v817_v26, %v811_v10  ;;  %vm2867_vm0 = vmand %vm465_vm4, %vm473_vm7  ;;  %v753_v44 = vrot.slane %v752_v50, 2  ;;  %vm470_vm13 = vcmp.ge.f32.partialorder %v2299_v42, 0.0  ;;  %v4585_v21 = vld [vmem:[#allocation35_spill] sm:$0xff] }
  0xb7   : > { %vm477_vm12 = vcmp.gt.f32.partialorder %v4579_v51, 0.0  ;;  %vm2876_vm3 = vmand %vm466_vm11, %vm474_vm6  ;;  %v775_v54 = vrot.slane %v774_v6, 4  ;;  %vm478_vm4 = vcmp.gt.f32.partialorder %v4582_v30, 0.0  ;;  %v814_v43 = vsel %vm2745_vm15, 1.0, %v4468_v11 }
  0xb8   : > { %v797_v10 = vadd.f32 %v796_v27, %v790_v46  ;;  %v819_v32 = vadd.f32 %v818_v0, %v812_v24  ;;  %vm2885_vm7 = vmand %vm467_vm1, %vm475_vm10  ;;  %v754_v63 = vadd.f32 %v753_v44, %v752_v50  ;;  %v2894_v46 = vadd.f32 %v2656_v28, %v4585_v21  ;;  %v4592_v44 = vld [vmem:[#allocation36_spill] sm:$0xff] }
  0xb9   : > { %vm4587_vm11 = vcmp.ge.f32.partialorder %v2293_v58, 0.0  ;;  %vm487_vm1 = vcmp.gt.f32.partialorder %v2670_v59, 0.5497665  ;;  %v776_v26 = vadd.f32 %v775_v54, %v774_v6  ;;  %vm2909_vm15 = vmand %vm469_vm8, %vm477_vm12  ;;  %vm488_vm10 = vcmp.gt.f32.partialorder %v2673_v55, 0.5497665 }
  0xba   : > { %4586 = vst [vmem:[#allocation31_spill] sm:$0xff] %v2894_v46  ;;  %vm2900_vm6 = vmand %vm4587_vm11, %vm476_vm14  ;;  %v798_v50 = vadd.f32 %v797_v10, %v791_v48  ;;  %v820_v27 = vadd.f32 %v819_v32, %v813_v49  ;;  %v755_v15 = vrot.slane %v754_v63, 1  ;;  %v815_v0 = vsel %vm2771_vm9, 1.0, %v4468_v11  ;;  %v735_v49 = vld [vmem:[%s1833_s18 + $0x4] sm:$0x1] }
  0xbb   : > { %v2919_v6 = vadd.f32 %v2667_v12, %v4592_v44  ;;  %vm2925_vm14 = vmand %vm470_vm13, %vm478_vm4  ;;  %vm489_vm8 = vcmp.gt.f32.partialorder %v2700_v45, 0.5497665  ;;  %v777_v54 = vrot.slane %v776_v26, 2  ;;  %vm490_vm9 = vcmp.gt.f32.partialorder %v2703_v52, 0.5497665 }
  0xbc   : > { %v799_v10 = vrot.slane %v798_v50, 4  ;;  %v821_v32 = vadd.f32 %v820_v27, %v814_v43  ;;  %vm2936_vm12 = vmand %vm2851_vm2, %vm487_vm1  ;;  %v756_v12 = vadd.f32 %v755_v15, %v754_v63  ;;  %vm491_vm13 = vcmp.gt.f32.partialorder %v2725_v56, 0.5497665 }
  0xbd   : > { %4593 = vst [vmem:[#allocation32_spill] sm:$0xff] %v2919_v6  ;;  %vm2943_vm4 = vmand %vm2860_vm5, %vm488_vm10  ;;  %v778_v43 = vadd.f32 %v777_v54, %v776_v26  ;;  %vm492_vm11 = vcmp.gt.f32.partialorder %v2728_v19, 0.5497665  ;;  %vm493_vm1 = vcmp.gt.f32.partialorder %v2894_v46, 0.5497665  ;;  %v4661_v48 = vmov 0 }
  0xbe   : > { %v800_v21 = vadd.f32 %v799_v10, %v798_v50  ;;  %v822_v27 = vadd.f32 %v821_v32, %v815_v0  ;;  %vm2950_vm2 = vmand %vm2867_vm0, %vm489_vm8  ;;  %v757_v63 = vadd.f32 %v756_v12, %v735_v49  ;;  %vm494_vm10 = vcmp.gt.f32.partialorder %v2919_v6, 0.5497665  ;;  %v759_v0 = vld [vmem:[%s1833_s18 + $0x5] sm:$0x1] }
  0xbf   : > { %vm2957_vm5 = vmand %vm2876_vm3, %vm490_vm9  ;;  %v779_v26 = vrot.slane %v778_v43, 1  ;;  %v4615_v12 = vld [vmem:[#allocation40_spill] sm:$0xff]  ;;  %v4692_v62 = vmov 0 }
  0xc0   : > { %v801_v50 = vrot.slane %v800_v21, 2  ;;  %v823_v15 = vrot.slane %v822_v27, 4  ;;  %vm2964_vm0 = vmand %vm2885_vm7, %vm491_vm13  ;;  %758 = vst [vmem:[%s1833_s18 + $0x4] sm:$0x1] %v757_v63  ;;  %v4619_v63 = vld [vmem:[#allocation41_spill] sm:$0xff] }
  0xc1   : > { %vm2972_vm3 = vmand %vm2900_vm6, %vm492_vm11  ;;  %v780_v44 = vadd.f32 %v779_v26, %v778_v43  ;;  %vm503_vm6 = vcmp.le.f32.partialorder %v4567_v36, 0.0  ;;  %v783_v43 = vld [vmem:[%s1833_s18 + $0x6] sm:$0x1] }
  0xc2   : > { %v802_v49 = vadd.f32 %v801_v50, %v800_v21  ;;  %v824_v54 = vadd.f32 %v823_v15, %v822_v27  ;;  %vm2978_vm8 = vmand %vm2909_vm15, %vm493_vm1  ;;  %vm4612_vm15 = vcmp.lt.f32.partialorder %v1945_v37, 2.1157024  ;;  %vm511_vm1 = vcmp.gt.f32.partialorder %v4615_v12, 0.0  ;;  %v4620_v26 = vld [vmem:[#allocation44_spill] sm:$0xff]  ;;  %v4678_v15 = vld [vmem:[#allocation54_spill] sm:$0xff] }
  0xc3   : > { %vm2984_vm7 = vmand %vm2925_vm14, %vm494_vm10  ;;  %v781_v24 = vadd.f32 %v780_v44, %v759_v0  ;;  %vm4616_vm10 = vcmp.lt.f32.partialorder %v1947_v38, 2.1157024  ;;  %vm4624_vm14 = vcmp.lt.f32.partialorder %v1951_v40, 2.1157024 }
  0xc4   : > { %v803_v32 = vrot.slane %v802_v49, 1  ;;  %v825_v28 = vrot.slane %v824_v54, 2  ;;  %vm2995_vm11 = vmand %vm2936_vm12, %vm4612_vm15  ;;  %vm4637_vm15 = vcmp.lt.f32.partialorder %v2169_v20, 2.1157024 }
  0xc5   : > { %vm3006_vm13 = vmand %vm2943_vm4, %vm4616_vm10  ;;  %v840_v11 = vsel %vm2995_vm11, %v1842_v1, 0.0  ;;  %v864_v27 = vsel %vm2995_vm11, %v1854_v5, 0.0  ;;  %782 = vst [vmem:[%s1833_s18 + $0x5] sm:$0x1] %v781_v24  ;;  %vm4621_vm4 = vcmp.lt.f32.partialorder %v1949_v39, 2.1157024 }
  0xc6   : > { %v804_v29 = vadd.f32 %v803_v32, %v802_v49  ;;  %v826_v50 = vadd.f32 %v825_v28, %v824_v54  ;;  %vm3024_vm10 = vmand %vm2950_vm2, %vm4621_vm4  ;;  %v841_v1 = vsel %vm3006_vm13, %v1845_v2, 0.0  ;;  %v865_v5 = vsel %vm3006_vm13, %v4556_v61, 0.0  ;;  %v4631_v32 = vld [vmem:[#allocation15_spill] sm:$0xff]  ;;  %v807_v28 = vld [vmem:[%s1833_s18 + $0x7] sm:$0x1] }
  0xc7   : > { %vm3039_vm9 = vmand %vm2957_vm5, %vm4624_vm14  ;;  %v842_v0 = vsel %vm3024_vm10, %v1848_v3, 0.0  ;;  %v848_v44 = vadd.f32 %v841_v1, %v840_v11  ;;  %v866_v2 = vsel %vm3024_vm10, %v4557_v33, 0.0  ;;  %v872_v61 = vadd.f32 %v865_v5, %v864_v27  ;;  %v4630_v3 = vld [vmem:[#allocation11_spill] sm:$0xff]  ;;  %v4635_v27 = vld [vmem:[#allocation45_spill] sm:$0xff] }
  0xc8   : > { %v805_v49 = vadd.f32 %v804_v29, %v783_v43  ;;  %v827_v54 = vrot.slane %v826_v50, 1  ;;  %vm4627_vm5 = vcmp.lt.f32.partialorder %v2151_v7, 2.1157024  ;;  %v843_v24 = vsel %vm3039_vm9, %v4630_v3, 0.0  ;;  %v4636_v29 = vld [vmem:[#allocation48_spill] sm:$0xff]  ;;  %vm3081_vm4 = vmand %vm2978_vm8, %vm4637_vm15 }
  0xc9   : > { %vm3054_vm14 = vmand %vm2964_vm0, %vm4627_vm5  ;;  %v867_v33 = vsel %vm3039_vm9, %v4631_v32, 0.0  ;;  %vm4632_vm2 = vcmp.lt.f32.partialorder %v4455_v25, 2.1157024  ;;  %v849_v43 = vadd.f32 %v848_v44, %v842_v0  ;;  %v873_v11 = vadd.f32 %v872_v61, %v866_v2  ;;  %v4641_v0 = vld [vmem:[#allocation19_spill] sm:$0xff]  ;;  %v4642_v2 = vld [vmem:[#allocation49_spill] sm:$0xff] }
  0xca   : > { %vm3070_vm12 = vmand %vm2972_vm3, %vm4632_vm2  ;;  %vm514_vm0 = vcmp.gt.f32.partialorder %v4635_v27, 0.0  ;;  %806 = vst [vmem:[%s1833_s18 + $0x6] sm:$0x1] %v805_v49  ;;  %v828_v1 = vadd.f32 %v827_v54, %v826_v50  ;;  %v844_v3 = vsel %vm3054_vm14, %v4640_v4, 0.0  ;;  %v868_v44 = vsel %vm3054_vm14, %v4641_v0, 0.0  ;;  %v4646_v4 = vld [vmem:[#allocation16_spill] sm:$0xff] }
  0xcb   : > { %vm4643_vm2 = vcmp.lt.f32.partialorder %v2183_v31, 2.1157024  ;;  %v850_v50 = vadd.f32 %v849_v43, %v843_v24  ;;  %v874_v61 = vadd.f32 %v873_v11, %v867_v33  ;;  %v888_v49 = vsel %vm2995_vm11, %v1945_v37, 0.0  ;;  %v4647_v0 = vld [vmem:[#allocation20_spill] sm:$0xff]  ;;  %v4648_v24 = vld [vmem:[#allocation50_spill] sm:$0xff] }
  0xcc   : > { %vm3096_vm5 = vmand %vm2984_vm7, %vm4643_vm2  ;;  %v889_v54 = vsel %vm3006_vm13, %v1947_v38, 0.0  ;;  %v829_v32 = vadd.f32 %v828_v1, %v807_v28  ;;  %v845_v10 = vsel %vm3070_vm12, %v4646_v4, 0.0  ;;  %v869_v6 = vsel %vm3070_vm12, %v4647_v0, 0.0  ;;  %v4651_v1 = vld [vmem:[#allocation51_spill] sm:$0xff] }
  0xcd   : > { %vm3117_vm7 = vmand %vm503_vm6, %vm511_vm1  ;;  %v851_v43 = vadd.f32 %v850_v50, %v844_v3  ;;  %v875_v28 = vadd.f32 %v874_v61, %v868_v44  ;;  %v890_v11 = vsel %vm3024_vm10, %v1949_v39, 0.0  ;;  %vm4652_vm2 = vcmp.gt.f32.partialorder %v4619_v63, 0.0  ;;  %v3135_v0 = vld [vmem:[%s1819_s5 + $0x30] sm:$0xff]  ;;  %v3144_v61 = vld [vmem:[%s1833_s18 + $0x8] sm:$0xff] }
  0xce   : > { %vm4653_vm8 = vcmp.le.f32.partialorder %v4568_v47, 0.0  ;;  %830 = vst [vmem:[%s1833_s18 + $0x7] sm:$0x1] %v829_v32  ;;  %v846_v3 = vsel %vm3081_vm4, %v3135_v0, 0.0  ;;  %v870_v44 = vsel %vm3081_vm4, %v4566_v60, 0.0  ;;  %v896_v50 = vadd.f32 %v889_v54, %v888_v49  ;;  %v3172_v54 = vld [vmem:[%s1819_s5 + $0x38] sm:$0xff] }
  0xcf   : > { %vm3129_vm3 = vmand %vm4653_vm8, %vm4652_vm2  ;;  %v912_v46 = vsel %vm2995_vm11, 1.0, %v3144_v61  ;;  %vm4656_vm6 = vcmp.gt.f32.partialorder %v4620_v26, 0.0  ;;  %vm4657_vm1 = vcmp.le.f32.partialorder %v4571_v35, 0.0  ;;  %v852_v19 = vadd.f32 %v851_v43, %v845_v10  ;;  %4663 = vst [vmem:[#allocation33_spill] sm:$0xff] %v3172_v54 }
  0xd0   : > { %vm3153_vm8 = vmand %vm4657_vm1, %vm4656_vm6  ;;  %v876_v56 = vadd.f32 %v875_v28, %v869_v6  ;;  %v891_v60 = vsel %vm3039_vm9, %v1951_v40, 0.0  ;;  %v913_v49 = vsel %vm3006_vm13, 1.0, %v3144_v61  ;;  %vm4660_vm11 = vcmp.le.f32.partialorder %v4572_v22, 0.0  ;;  %v4668_v28 = vld [vmem:[#allocation52_spill] sm:$0xff] }
  0xd1   : > { %vm3167_vm2 = vmand %vm4660_vm11, %vm514_vm0  ;;  %v847_v6 = vsel %vm3096_vm5, %v3172_v54, 0.0  ;;  %v871_v10 = vsel %vm3096_vm5, %v4487_v17, 0.0  ;;  %v897_v21 = vadd.f32 %v896_v50, %v890_v11  ;;  %vm4664_vm13 = vcmp.gt.f32.partialorder %v4636_v29, 0.0  ;;  %v3461_v22 = vld [vmem:[%s1826_s7 + $0x18] sm:$0xff] }
  0xd2   : > { %v4662_v48 = vsel %vm3167_vm2, 4294967295, %v4661_v48  ;;  %vm4665_vm6 = vcmp.le.f32.partialorder %v4573_v8, 0.0  ;;  %v4666_v43 = vmov 0  ;;  %v853_v52 = vadd.f32 %v852_v19, %v846_v3  ;;  %v4677_v19 = vld [vmem:[#allocation53_spill] sm:$0xff]  ;;  %v4694_v8 = vld [vmem:[#allocation58_spill] sm:$0xff] }
  0xd3   : > { %vm3184_vm1 = vmand %vm4665_vm6, %vm4664_vm13  ;;  %v877_v45 = vadd.f32 %v876_v56, %v870_v44  ;;  %v892_v55 = vsel %vm3054_vm14, %v2151_v7, 0.0  ;;  %v914_v17 = vsel %vm3024_vm10, 1.0, %v3144_v61  ;;  %vm4669_vm11 = vcmp.gt.f32.partialorder %v4642_v2, 0.0 }
  0xd4   : > { %v4667_v43 = vsel %vm3184_vm1, 4294967295, %v4666_v43  ;;  %vm4670_vm15 = vcmp.le.f32.partialorder %v4576_v13, 0.0  ;;  %v898_v50 = vadd.f32 %v897_v21, %v891_v60  ;;  %v920_v59 = vadd.f32 %v913_v49, %v912_v46 }
  0xd5   : > { %vm3199_vm13 = vmand %vm4670_vm15, %vm4669_vm11  ;;  %vm4673_vm6 = vcmp.gt.f32.partialorder %v4648_v24, 0.0  ;;  %vm4674_vm0 = vcmp.le.f32.partialorder %v4579_v51, 0.0  ;;  %vm528_vm10 = vcmp.lt.f32.partialorder %v4677_v19, -0.5497665  ;;  %v854_v3 = vadd.f32 %v853_v52, %v847_v6  ;;  %v4683_v6 = vld [vmem:[#allocation55_spill] sm:$0xff]  ;;  %v4687_v51 = vld [vmem:[#allocation56_spill] sm:$0xff] }
  0xd6   : > { %vm3207_vm1 = vmand %vm4674_vm0, %vm4673_vm6  ;;  %v878_v44 = vadd.f32 %v877_v45, %v871_v10  ;;  %v893_v13 = vsel %vm3070_vm12, %v4455_v25, 0.0  ;;  %v915_v46 = vsel %vm3039_vm9, 1.0, %v3144_v61  ;;  %vm4679_vm15 = vcmp.gt.f32.partialorder %v4651_v1, 0.0 }
  0xd7   : > { %vm4680_vm0 = vcmp.le.f32.partialorder %v4582_v30, 0.0  ;;  %v894_v52 = vsel %vm3081_vm4, %v2169_v20, 0.0  ;;  %v899_v45 = vadd.f32 %v898_v50, %v892_v55  ;;  %v921_v49 = vadd.f32 %v920_v59, %v914_v17  ;;  %v4690_v17 = vld [vmem:[#allocation57_spill] sm:$0xff] }
  0xd8   : > { %vm3223_vm11 = vmand %vm4680_vm0, %vm4679_vm15  ;;  %vm530_vm6 = vcmp.lt.f32.partialorder %v4683_v6, -0.5497665  ;;  %vm4684_vm2 = vcmp.lt.f32.partialorder %v4668_v28, -0.5497665  ;;  %v855_v10 = vrot.slane %v854_v3, 4  ;;  %v879_v21 = vrot.slane %v878_v44, 4 }
  0xd9   : > { %vm3235_vm9 = vmand %vm3117_vm7, %vm4684_vm2  ;;  %v916_v30 = vsel %vm3054_vm14, 1.0, %v3144_v61  ;;  %v4688_v59 = vmov 0  ;;  %v895_v55 = vsel %vm3096_vm5, %v2183_v31, 0.0  ;;  %v900_v33 = vadd.f32 %v899_v45, %v893_v13 }
  0xda   : > { %vm3247_vm0 = vmand %vm3129_vm3, %vm528_vm10  ;;  %v922_v28 = vadd.f32 %v921_v49, %v915_v46  ;;  %vm532_vm7 = vcmp.lt.f32.partialorder %v4690_v17, -0.5497665  ;;  %vm4691_vm14 = vcmp.lt.f32.partialorder %v4678_v15, -0.5497665  ;;  %v856_v4 = vadd.f32 %v855_v10, %v854_v3  ;;  %v4698_v46 = vld [vmem:[#allocation59_spill] sm:$0xff] }
  0xdb   : > { %v4689_v59 = vsel %vm3247_vm0, 4294967295, %v4688_v59  ;;  %vm3259_vm2 = vmand %vm3153_vm8, %vm4691_vm14  ;;  %v880_v50 = vadd.f32 %v879_v21, %v878_v44  ;;  %v917_v19 = vsel %vm3070_vm12, 1.0, %v3144_v61  ;;  %vm533_vm3 = vcmp.lt.f32.partialorder %v4694_v8, -0.5497665 }
  0xdc   : > { %v4693_v62 = vsel %vm3259_vm2, 4294967295, %v4692_v62  ;;  %vm4695_vm10 = vnez %v4662_v48  ;;  %v901_v32 = vadd.f32 %v900_v33, %v894_v52  ;;  %v923_v15 = vadd.f32 %v922_v28, %v916_v30  ;;  %vm3289_vm12 = vmand %vm3199_vm13, %vm532_vm7  ;;  %v863_v33 = vld [vmem:[%s1833_s18 + $0x9] sm:$0x1] }
  0xdd   : > { %vm3271_vm15 = vmand %vm4695_vm10, %vm530_vm6  ;;  %vm534_vm8 = vcmp.lt.f32.partialorder %v4698_v46, -0.5497665  ;;  %vm4699_vm14 = vcmp.lt.f32.partialorder %v4687_v51, -0.5497665  ;;  %vm4700_vm2 = vnez %v4667_v43  ;;  %v857_v8 = vrot.slane %v856_v4, 2 }
  0xde   : > { %vm3280_vm0 = vmand %vm4700_vm2, %vm4699_vm14  ;;  %v881_v3 = vrot.slane %v880_v50, 2  ;;  %v918_v48 = vsel %vm3081_vm4, 1.0, %v3144_v61  ;;  %vm543_vm6 = vcmp.le.f32.partialorder %v4615_v12, 0.0  ;;  %v902_v51 = vadd.f32 %v901_v32, %v895_v55  ;;  %v839_v55 = vld [vmem:[%s1833_s18 + $0x8] sm:$0x1] }
  0xdf   : > { %v919_v43 = vsel %vm3096_vm5, 1.0, %v3144_v61  ;;  %v924_v44 = vadd.f32 %v923_v15, %v917_v19  ;;  %vm3299_vm2 = vmand %vm3207_vm1, %vm533_vm3  ;;  %v858_v5 = vadd.f32 %v857_v8, %v856_v4  ;;  %vm551_vm7 = vcmp.gt.f32.partialorder %v4562_v53, 0.0  ;;  %v3351_v4 = vld [vmem:[%s1819_s5 + $0x8] sm:$0xff]  ;;  %v3367_v15 = vld [vmem:[%s1819_s5 + $0x10] sm:$0xff] }
  0xe0   : > { %v882_v11 = vadd.f32 %v881_v3, %v880_v50  ;;  %vm3306_vm13 = vmand %vm3223_vm11, %vm534_vm8  ;;  %v903_v23 = vrot.slane %v902_v51, 4  ;;  %vm4709_vm3 = vcmp.lt.f32.partialorder %v1945_v37, 2.1157024  ;;  %vm553_vm8 = vcmp.gt.f32.partialorder %v4565_v14, 0.0 }
  0xe1   : > { %v925_v56 = vadd.f32 %v924_v44, %v918_v48  ;;  %vm3317_vm10 = vmand %vm3235_vm9, %vm4709_vm3  ;;  %v859_v49 = vrot.slane %v858_v5, 1  ;;  %vm4712_vm5 = vcmp.lt.f32.partialorder %v1947_v38, 2.1157024  ;;  %vm4713_vm4 = vnez %v4689_v59 }
  0xe2   : > { %v883_v6 = vrot.slane %v882_v11, 1  ;;  %vm3328_vm1 = vmand %vm4713_vm4, %vm4712_vm5  ;;  %v944_v21 = vsel %vm3317_vm10, %v3333_v16, 0.0  ;;  %v904_v28 = vadd.f32 %v903_v23, %v902_v51  ;;  %vm4716_vm4 = vcmp.lt.f32.partialorder %v1949_v39, 2.1157024  ;;  %v3382_v51 = vld [vmem:[%s1819_s5 + $0x18] sm:$0xff]  ;;  %v3398_v23 = vld [vmem:[%s1826_s7] sm:$0xff] }
  0xe3   : > { %v926_v17 = vadd.f32 %v925_v56, %v919_v43  ;;  %vm4717_vm5 = vnez %v4693_v62  ;;  %v945_v50 = vsel %vm3328_vm1, %v3351_v4, 0.0  ;;  %v860_v19 = vadd.f32 %v859_v49, %v858_v5 }
  0xe4   : > { %vm3346_vm11 = vmand %vm4717_vm5, %vm4716_vm4  ;;  %v884_v32 = vadd.f32 %v883_v6, %v882_v11  ;;  %vm4720_vm14 = vcmp.lt.f32.partialorder %v1951_v40, 2.1157024  ;;  %v952_v8 = vadd.f32 %v945_v50, %v944_v21  ;;  %v905_v3 = vrot.slane %v904_v28, 2  ;;  %v3412_v21 = vld [vmem:[%s1819_s5 + $0x20] sm:$0xff]  ;;  %v4735_v50 = vld [vmem:[#allocation23_spill] sm:$0xff] }
  0xe5   : > { %vm3362_vm4 = vmand %vm3271_vm15, %vm4720_vm14  ;;  %v946_v46 = vsel %vm3346_vm11, %v3367_v15, 0.0  ;;  %v927_v48 = vrot.slane %v926_v17, 4  ;;  %vm4723_vm9 = vcmp.lt.f32.partialorder %v2151_v7, 2.1157024  ;;  %v861_v44 = vadd.f32 %v860_v19, %v839_v55  ;;  %v4736_v19 = vld [vmem:[#allocation24_spill] sm:$0xff] }
  0xe6   : > { %vm3377_vm15 = vmand %vm3280_vm0, %vm4723_vm9  ;;  %v947_v43 = vsel %vm3362_vm4, %v3382_v51, 0.0  ;;  %v885_v5 = vadd.f32 %v884_v32, %v863_v33  ;;  %vm4726_vm0 = vcmp.lt.f32.partialorder %v4455_v25, 2.1157024  ;;  %v953_v11 = vadd.f32 %v952_v8, %v946_v46  ;;  %v3418_v33 = vld [vmem:[%s1826_s7 + $0x8] sm:$0xff] }
  0xe7   : > { %vm3393_vm9 = vmand %vm3289_vm12, %vm4726_vm0  ;;  %v968_v56 = vsel %vm3317_vm10, %v3398_v23, 0.0  ;;  %v906_v49 = vadd.f32 %v905_v3, %v904_v28  ;;  %v928_v6 = vadd.f32 %v927_v48, %v926_v17  ;;  %vm4729_vm14 = vcmp.lt.f32.partialorder %v2169_v20, 2.1157024  ;;  %862 = vst [vmem:[%s1833_s18 + $0x8] sm:$0x1] %v861_v44  ;;  %v3437_v8 = vld [vmem:[%s1819_s5 + $0x28] sm:$0xff] }
  0xe8   : > { %vm3407_vm5 = vmand %vm3299_vm2, %vm4729_vm14  ;;  %v948_v55 = vsel %vm3377_vm15, %v3412_v21, 0.0  ;;  %v969_v28 = vsel %vm3328_vm1, %v3418_v33, 0.0  ;;  %886 = vst [vmem:[%s1833_s18 + $0x9] sm:$0x1] %v885_v5  ;;  %vm4732_vm12 = vcmp.lt.f32.partialorder %v2183_v31, 2.1157024  ;;  %v954_v17 = vadd.f32 %v953_v11, %v947_v43 }
  0xe9   : > { %vm3429_vm2 = vmand %vm3306_vm13, %vm4732_vm12  ;;  %v907_v32 = vrot.slane %v906_v49, 1  ;;  %v929_v46 = vrot.slane %v928_v6, 2  ;;  %v949_v45 = vsel %vm3393_vm9, %v3437_v8, 0.0  ;;  %v3443_v3 = vld [vmem:[%s1826_s7 + $0x10] sm:$0xff]  ;;  %v887_v44 = vld [vmem:[%s1833_s18 + $0xa] sm:$0x1]  ;;  %v976_v47 = vadd.f32 %v969_v28, %v968_v56 }
  0xea   : > { %v970_v48 = vsel %vm3346_vm11, %v3443_v3, 0.0  ;;  %vm3452_vm13 = vmand %vm543_vm6, %vm551_vm7  ;;  %v950_v5 = vsel %vm3407_vm5, %v3135_v0, 0.0  ;;  %v955_v11 = vadd.f32 %v954_v17, %v948_v55  ;;  %v971_v35 = vsel %vm3362_vm4, %v3461_v22, 0.0  ;;  %v3495_v28 = vld [vmem:[%s1826_s7 + $0x28] sm:$0xff] }
  0xeb   : > { %vm4739_vm12 = vcmp.gt.f32.partialorder %v2273_v9, 0.0  ;;  %vm4740_vm6 = vcmp.le.f32.partialorder %v4619_v63, 0.0  ;;  %v908_v36 = vadd.f32 %v907_v32, %v906_v49  ;;  %v930_v53 = vadd.f32 %v929_v46, %v928_v6  ;;  %v3489_v49 = vld [vmem:[%s1826_s7 + $0x20] sm:$0xff]  ;;  %4746 = vst [vmem:[#allocation34_spill] sm:$0xff] %v3495_v28  ;;  %v4773_v43 = vld [vmem:[#allocation26_spill] sm:$0xff] }
  0xec   : > { %vm3470_vm7 = vmand %vm4740_vm6, %vm4739_vm12  ;;  %v992_v55 = vsel %vm3317_vm10, %v1945_v37, 0.0  ;;  %v993_v17 = vsel %vm3328_vm1, %v1947_v38, 0.0  ;;  %vm4743_vm3 = vcmp.le.f32.partialorder %v4620_v26, 0.0  ;;  %v4744_v63 = vmov 0 }
  0xed   : > { %vm3484_vm12 = vmand %vm4743_vm3, %vm553_vm8  ;;  %v956_v56 = vadd.f32 %v955_v11, %v949_v45  ;;  %v972_v6 = vsel %vm3377_vm15, %v3489_v49, 0.0  ;;  %v973_v32 = vsel %vm3393_vm9, %v3495_v28, 0.0  ;;  %v977_v26 = vadd.f32 %v976_v47, %v970_v48 }
  0xee   : > { %v4745_v63 = vsel %vm3484_vm12, 4294967295, %v4744_v63  ;;  %vm4747_vm8 = vcmp.gt.f32.partialorder %v2279_v18, 0.0  ;;  %vm4748_vm3 = vcmp.le.f32.partialorder %v4635_v27, 0.0  ;;  %v4749_v46 = vmov 0  ;;  %v911_v27 = vld [vmem:[%s1833_s18 + $0xb] sm:$0x1] }
  0xef   : > { %vm3504_vm6 = vmand %vm4748_vm3, %vm4747_vm8  ;;  %v909_v45 = vadd.f32 %v908_v36, %v887_v44  ;;  %v931_v11 = vrot.slane %v930_v53, 1  ;;  %v951_v14 = vsel %vm3429_vm2, %v3172_v54, 0.0  ;;  %v994_v9 = vsel %vm3346_vm11, %v1949_v39, 0.0  ;;  %v3524_v36 = vld [vmem:[%s1826_s7 + $0x30] sm:$0xff]  ;;  %v3539_v54 = vld [vmem:[%s1826_s7 + $0x38] sm:$0xff] }
  0xf0   : > { %v4750_v46 = vsel %vm3504_vm6, 4294967295, %v4749_v46  ;;  %vm4751_vm0 = vcmp.gt.f32.partialorder %v2290_v57, 0.0  ;;  %vm4752_vm14 = vcmp.le.f32.partialorder %v4636_v29, 0.0  ;;  %v957_v48 = vadd.f32 %v956_v56, %v950_v5  ;;  %4759 = vst [vmem:[#allocation12_spill] sm:$0xff] %v3539_v54 }
  0xf1   : > { %vm3518_vm12 = vmand %vm4752_vm14, %vm4751_vm0  ;;  %v974_v44 = vsel %vm3407_vm5, %v3524_v36, 0.0  ;;  %v978_v18 = vadd.f32 %v977_v26, %v971_v35  ;;  %v1000_v28 = vadd.f32 %v993_v17, %v992_v55  ;;  %vm4755_vm8 = vcmp.gt.f32.partialorder %v2293_v58, 0.0  ;;  %910 = vst [vmem:[%s1833_s18 + $0xa] sm:$0x1] %v909_v45 }
  0xf2   : > { %vm4756_vm3 = vcmp.le.f32.partialorder %v4642_v2, 0.0  ;;  %v4757_v29 = vmov 0  ;;  %v932_v57 = vadd.f32 %v931_v11, %v930_v53  ;;  %v975_v5 = vsel %vm3429_vm2, %v3539_v54, 0.0  ;;  %v4778_v11 = vld [vmem:[#allocation27_spill] sm:$0xff] }
  0xf3   : > { %vm3533_vm6 = vmand %vm4756_vm3, %vm4755_vm8  ;;  %v995_v35 = vsel %vm3362_vm4, %v1951_v40, 0.0  ;;  %v1016_v2 = vsel %vm3317_vm10, 1.0, %v3144_v61  ;;  %vm4760_vm14 = vcmp.gt.f32.partialorder %v2296_v41, 0.0  ;;  %vm4761_vm0 = vcmp.le.f32.partialorder %v4648_v24, 0.0 }
  0xf4   : > { %v4758_v29 = vsel %vm3533_vm6, 4294967295, %v4757_v29  ;;  %vm3554_vm8 = vmand %vm4761_vm0, %vm4760_vm14  ;;  %v958_v55 = vadd.f32 %v957_v48, %v951_v14  ;;  %v979_v17 = vadd.f32 %v978_v18, %v972_v6  ;;  %v1001_v56 = vadd.f32 %v1000_v28, %v994_v9  ;;  %v4774_v28 = vld [vmem:[#allocation66_spill] sm:$0xff] }
  0xf5   : > { %v1017_v26 = vsel %vm3328_vm1, 1.0, %v3144_v61  ;;  %vm4764_vm3 = vcmp.gt.f32.partialorder %v2299_v42, 0.0  ;;  %vm4765_vm10 = vcmp.le.f32.partialorder %v4651_v1, 0.0  ;;  %v4766_v60 = vmov 0 }
  0xf6   : > { %vm3565_vm6 = vmand %vm4765_vm10, %vm4764_vm3  ;;  %v933_v24 = vadd.f32 %v932_v57, %v911_v27  ;;  %v996_v45 = vsel %vm3377_vm15, %v2151_v7, 0.0  ;;  %v997_v9 = vsel %vm3393_vm9, %v4455_v25, 0.0  ;;  %v1018_v18 = vsel %vm3346_vm11, 1.0, %v3144_v61 }
  0xf7   : > { %v4767_v60 = vsel %vm3565_vm6, 4294967295, %v4766_v60  ;;  %vm4768_vm1 = vcmp.lt.f32.partialorder %v4735_v50, -0.5497665  ;;  %v959_v14 = vrot.slane %v958_v55, 4  ;;  %v980_v1 = vadd.f32 %v979_v17, %v973_v32  ;;  %v4772_v50 = vld [vmem:[#allocation25_spill] sm:$0xff] }
  0xf8   : > { %vm575_vm14 = vmand %vm3452_vm13, %vm4768_vm1  ;;  %v1002_v57 = vadd.f32 %v1001_v56, %v995_v35  ;;  %v1019_v10 = vsel %vm3362_vm4, 1.0, %v3144_v61  ;;  %vm4769_vm0 = vcmp.lt.f32.partialorder %v4736_v19, -0.5497665  ;;  %934 = vst [vmem:[%s1833_s18 + $0xb] sm:$0x1] %v933_v24  ;;  %v1024_v59 = vadd.f32 %v1017_v26, %v1016_v2  ;;  %v4786_v26 = vld [vmem:[#allocation68_spill] sm:$0xff] }
  0xf9   : > { %vm3589_vm3 = vmand %vm3470_vm7, %vm4769_vm0  ;;  %vm569_vm11 = vcmp.lt.f32.partialorder %v4772_v50, -0.5497665  ;;  %vm570_vm13 = vcmp.lt.f32.partialorder %v4773_v43, -0.5497665  ;;  %vm4775_vm1 = vcmp.lt.f32.partialorder %v1945_v37, 2.1157024  ;;  %v960_v19 = vadd.f32 %v959_v14, %v958_v55 }
  0xfa   : > { %vm3599_vm6 = vmand %vm575_vm14, %vm4775_vm1  ;;  %v981_v12 = vadd.f32 %v980_v1, %v974_v44  ;;  %v1003_v32 = vadd.f32 %v1002_v57, %v996_v45  ;;  %vm572_vm4 = vcmp.lt.f32.partialorder %v4778_v11, -0.5497665  ;;  %vm4779_vm7 = vnez %v4745_v63  ;;  %v4782_v55 = vld [vmem:[#allocation67_spill] sm:$0xff] }
  0xfb   : > { %vm3606_vm0 = vmand %vm4779_vm7, %vm569_vm11  ;;  %v4780_v27 = vmov 0  ;;  %v998_v48 = vsel %vm3407_vm5, %v2169_v20, 0.0  ;;  %v1020_v35 = vsel %vm3377_vm15, 1.0, %v3144_v61  ;;  %v1025_v2 = vadd.f32 %v1024_v59, %v1018_v18 }
  0xfc   : > { %v4781_v27 = vsel %vm3606_vm0, 4294967295, %v4780_v27  ;;  %vm573_vm14 = vcmp.lt.f32.partialorder %v4782_v55, -0.5497665  ;;  %vm4783_vm1 = vnez %v4750_v46  ;;  %v961_v63 = vrot.slane %v960_v19, 2 }
  0xfd   : > { %vm3619_vm10 = vmand %vm4783_vm1, %vm570_vm13  ;;  %v982_v17 = vadd.f32 %v981_v12, %v975_v5  ;;  %v1004_v56 = vadd.f32 %v1003_v32, %v997_v9  ;;  %vm574_vm11 = vcmp.lt.f32.partialorder %v4786_v26, -0.5497665  ;;  %vm4787_vm7 = vcmp.lt.f32.partialorder %v4774_v28, -0.5497665 }
  0xfe   : > { %vm3628_vm0 = vmand %vm3518_vm12, %vm4787_vm7  ;;  %v999_v46 = vsel %vm3429_vm2, %v2183_v31, 0.0  ;;  %v1026_v24 = vadd.f32 %v1025_v2, %v1019_v10  ;;  %vm4790_vm15 = vnez %v4758_v29  ;;  %v962_v45 = vadd.f32 %v961_v63, %v960_v19 }
  0xff   : > { %vm3637_vm13 = vmand %vm4790_vm15, %vm572_vm4  ;;  %v983_v9 = vrot.slane %v982_v17, 4  ;;  %v1005_v18 = vadd.f32 %v1004_v56, %v998_v48  ;;  %v1021_v47 = vsel %vm3393_vm9, 1.0, %v3144_v61  ;;  %v1022_v29 = vsel %vm3407_vm5, 1.0, %v3144_v61 }
 0x100   : > { %vm3646_vm12 = vmand %vm3554_vm8, %vm573_vm14  ;;  %v1027_v1 = vadd.f32 %v1026_v24, %v1020_v35  ;;  %vm4795_vm4 = vnez %v4767_v60  ;;  %v963_v10 = vrot.slane %v962_v45, 1  ;;  %vm4798_vm9 = vcmp.lt.f32.partialorder %v1947_v38, 2.1157024  ;;  %v943_v60 = vld [vmem:[%s1833_s18 + $0xc] sm:$0x1] }
 0x101   : > { %vm3655_vm1 = vmand %vm4795_vm4, %vm574_vm11  ;;  %v984_v34 = vadd.f32 %v983_v9, %v982_v17  ;;  %v1006_v59 = vadd.f32 %v1005_v18, %v999_v46  ;;  %v1048_v30 = vsel %vm3599_vm6, %v3333_v16, 0.0  ;;  %v1023_v50 = vsel %vm3429_vm2, 1.0, %v3144_v61 }
 0x102   : > { %vm3663_vm8 = vmand %vm3589_vm3, %vm4798_vm9  ;;  %v1028_v43 = vadd.f32 %v1027_v1, %v1021_v47  ;;  %vm4801_vm5 = vcmp.lt.f32.partialorder %v1949_v39, 2.1157024  ;;  %vm4802_vm14 = vnez %v4781_v27  ;;  %v964_v19 = vadd.f32 %v963_v10, %v962_v45 }
 0x103   : > { %vm3678_vm11 = vmand %vm4802_vm14, %vm4801_vm5  ;;  %v1049_v28 = vsel %vm3663_vm8, %v3351_v4, 0.0  ;;  %v985_v12 = vrot.slane %v984_v34, 2  ;;  %v1007_v32 = vrot.slane %v1006_v59, 4  ;;  %vm4805_vm3 = vcmp.lt.f32.partialorder %v1951_v40, 2.1157024 }
 0x104   : > { %vm3689_vm2 = vmand %vm3619_vm10, %vm4805_vm3  ;;  %v1050_v11 = vsel %vm3678_vm11, %v3367_v15, 0.0  ;;  %v1029_v27 = vadd.f32 %v1028_v43, %v1022_v29  ;;  %vm4808_vm7 = vcmp.lt.f32.partialorder %v2151_v7, 2.1157024  ;;  %v1056_v35 = vadd.f32 %v1049_v28, %v1048_v30  ;;  %v967_v29 = vld [vmem:[%s1833_s18 + $0xd] sm:$0x1] }
 0x105   : > { %vm3700_vm15 = vmand %vm3628_vm0, %vm4808_vm7  ;;  %v1072_v2 = vsel %vm3599_vm6, %v3398_v23, 0.0  ;;  %v1096_v55 = vsel %vm3599_vm6, %v1945_v37, 0.0  ;;  %v965_v44 = vadd.f32 %v964_v19, %v943_v60  ;;  %v986_v63 = vadd.f32 %v985_v12, %v984_v34 }
 0x106   : > { %v1008_v17 = vadd.f32 %v1007_v32, %v1006_v59  ;;  %vm4811_vm10 = vcmp.lt.f32.partialorder %v4455_v25, 2.1157024  ;;  %v1051_v26 = vsel %vm3689_vm2, %v3382_v51, 0.0  ;;  %v1030_v13 = vadd.f32 %v1029_v27, %v1023_v50  ;;  %v4820_v32 = vld [vmem:[#allocation61_spill] sm:$0xff] }
 0x107   : > { %vm3714_vm0 = vmand %vm3637_vm13, %vm4811_vm10  ;;  %vm4814_vm4 = vcmp.lt.f32.partialorder %v2169_v20, 2.1157024  ;;  %v1057_v24 = vadd.f32 %v1056_v35, %v1050_v11  ;;  %v1073_v5 = vsel %vm3663_vm8, %v3418_v33, 0.0  ;;  %v1120_v45 = vsel %vm3599_vm6, 1.0, %v3144_v61  ;;  %966 = vst [vmem:[%s1833_s18 + $0xc] sm:$0x1] %v965_v44 }
 0x108   : > { %vm3725_vm9 = vmand %vm3646_vm12, %vm4814_vm4  ;;  %v987_v9 = vrot.slane %v986_v63, 1  ;;  %v1009_v18 = vrot.slane %v1008_v17, 2  ;;  %v1052_v47 = vsel %vm3700_vm15, %v3412_v21, 0.0  ;;  %v1097_v14 = vsel %vm3663_vm8, %v1947_v38, 0.0  ;;  %v4821_v35 = vld [vmem:[#allocation33_spill] sm:$0xff] }
 0x109   : > { %v1031_v1 = vrot.slane %v1030_v13, 4  ;;  %vm4817_vm13 = vcmp.lt.f32.partialorder %v2183_v31, 2.1157024  ;;  %v1053_v10 = vsel %vm3714_vm0, %v3437_v8, 0.0  ;;  %v1058_v34 = vadd.f32 %v1057_v24, %v1051_v26  ;;  %v4823_v26 = vld [vmem:[#allocation62_spill] sm:$0xff] }
 0x10a   : > { %vm3747_vm12 = vmand %vm3655_vm1, %vm4817_vm13  ;;  %v1074_v59 = vsel %vm3678_vm11, %v3443_v3, 0.0  ;;  %v988_v30 = vadd.f32 %v987_v9, %v986_v63  ;;  %v1010_v60 = vadd.f32 %v1009_v18, %v1008_v17  ;;  %v1054_v57 = vsel %vm3725_vm9, %v3135_v0, 0.0  ;;  %v4822_v63 = vld [vmem:[#allocation34_spill] sm:$0xff] }
 0x10b   : > { %v1075_v50 = vsel %vm3689_vm2, %v3461_v22, 0.0  ;;  %v1032_v43 = vadd.f32 %v1031_v1, %v1030_v13  ;;  %v1059_v28 = vadd.f32 %v1058_v34, %v1052_v47  ;;  %v1076_v19 = vsel %vm3700_vm15, %v3489_v49, 0.0  ;;  %v991_v13 = vld [vmem:[%s1833_s18 + $0xe] sm:$0x1] }
 0x10c   : > { %v1080_v12 = vadd.f32 %v1073_v5, %v1072_v2  ;;  %vm583_vm6 = vcmp.le.f32.partialorder %v4820_v32, 0.0  ;;  %v989_v11 = vadd.f32 %v988_v30, %v967_v29  ;;  %v1011_v27 = vrot.slane %v1010_v60, 1  ;;  %v4824_v5 = vld [vmem:[#allocation63_spill] sm:$0xff]  ;;  %v4825_v30 = vld [vmem:[#allocation64_spill] sm:$0xff] }
 0x10d   : > { %v1055_v44 = vsel %vm3747_vm12, %v4821_v35, 0.0  ;;  %v1077_v17 = vsel %vm3714_vm0, %v4822_v63, 0.0  ;;  %vm584_vm1 = vcmp.le.f32.partialorder %v4823_v26, 0.0  ;;  %v1033_v24 = vrot.slane %v1032_v43, 2 }
 0x10e   : > { %v1060_v9 = vadd.f32 %v1059_v28, %v1053_v10  ;;  %v1081_v18 = vadd.f32 %v1080_v12, %v1074_v59  ;;  %v1098_v2 = vsel %vm3678_vm11, %v1949_v39, 0.0  ;;  %vm585_vm5 = vcmp.le.f32.partialorder %v4824_v5, 0.0  ;;  %990 = vst [vmem:[%s1833_s18 + $0xd] sm:$0x1] %v989_v11  ;;  %v4826_v12 = vld [vmem:[#allocation65_spill] sm:$0xff] }
 0x10f   : > { %v1012_v47 = vadd.f32 %v1011_v27, %v1010_v60  ;;  %v1078_v29 = vsel %vm3725_vm9, %v3524_v36, 0.0  ;;  %v1079_v1 = vsel %vm3747_vm12, %v3539_v54, 0.0  ;;  %v1104_v34 = vadd.f32 %v1097_v14, %v1096_v55 }
 0x110   : > { %vm586_vm14 = vcmp.le.f32.partialorder %v4825_v30, 0.0  ;;  %v1034_v10 = vadd.f32 %v1033_v24, %v1032_v43  ;;  %v1061_v59 = vadd.f32 %v1060_v9, %v1054_v57  ;;  %v1082_v28 = vadd.f32 %v1081_v18, %v1075_v50 }
 0x111   : > { %v1099_v60 = vsel %vm3689_vm2, %v1951_v40, 0.0  ;;  %vm587_vm3 = vcmp.le.f32.partialorder %v4826_v12, 0.0  ;;  %v1013_v11 = vadd.f32 %v1012_v47, %v991_v13  ;;  %v1100_v27 = vsel %vm3700_vm15, %v2151_v7, 0.0  ;;  %v1015_v13 = vld [vmem:[%s1833_s18 + $0xf] sm:$0x1] }
 0x112   : > { %v1105_v54 = vadd.f32 %v1104_v34, %v1098_v2  ;;  %v1121_v55 = vsel %vm3663_vm8, 1.0, %v3144_v61  ;;  %v1035_v14 = vrot.slane %v1034_v10, 1  ;;  %v1062_v57 = vadd.f32 %v1061_v59, %v1055_v44 }
 0x113   : > { %v1083_v50 = vadd.f32 %v1082_v28, %v1076_v19  ;;  %v1101_v43 = vsel %vm3714_vm0, %v4455_v25, 0.0  ;;  %1014 = vst [vmem:[%s1833_s18 + $0xe] sm:$0x1] %v1013_v11  ;;  %v1102_v24 = vsel %vm3725_vm9, %v2169_v20, 0.0  ;;  %v1103_v53 = vsel %vm3747_vm12, %v2183_v31, 0.0  ;;  %v4827_v11 = vld [vmem:[#allocation28_spill] sm:$0xff] }
 0x114   : > { %v1106_v9 = vadd.f32 %v1105_v54, %v1099_v60  ;;  %v1122_v44 = vsel %vm3678_vm11, 1.0, %v3144_v61  ;;  %v1036_v19 = vadd.f32 %v1035_v14, %v1034_v10  ;;  %v1063_v18 = vrot.slane %v1062_v57, 4  ;;  %v4828_v14 = vld [vmem:[#allocation37_spill] sm:$0xff] }
 0x115   : > { %v1084_v2 = vadd.f32 %v1083_v50, %v1077_v17  ;;  %v1128_v47 = vadd.f32 %v1121_v55, %v1120_v45  ;;  %v1123_v59 = vsel %vm3689_vm2, 1.0, %v3144_v61  ;;  %v1124_v28 = vsel %vm3700_vm15, 1.0, %v3144_v61  ;;  %v4829_v17 = vld [vmem:[#allocation38_spill] sm:$0xff]  ;;  %v4830_v45 = vld [vmem:[#allocation39_spill] sm:$0xff] }
 0x116   : > { %v1107_v34 = vadd.f32 %v1106_v9, %v1100_v27  ;;  %vm591_vm8 = vcmp.lt.f32.partialorder %v4827_v11, 0.0  ;;  %v1037_v54 = vadd.f32 %v1036_v19, %v1015_v13  ;;  %v1064_v60 = vadd.f32 %v1063_v18, %v1062_v57  ;;  %v4833_v57 = vld [vmem:[#allocation42_spill] sm:$0xff] }
 0x117   : > { %v1085_v6 = vadd.f32 %v1084_v2, %v1078_v29  ;;  %v1129_v35 = vadd.f32 %v1128_v47, %v1122_v44  ;;  %vm592_vm11 = vcmp.lt.f32.partialorder %v4828_v14, 0.0  ;;  %vm593_vm10 = vcmp.lt.f32.partialorder %v4829_v17, 0.0  ;;  %vm3824_vm2 = vmand %vm583_vm6, %vm591_vm8  ;;  %v4839_v9 = vld [vmem:[#allocation46_spill] sm:$0xff]  ;;  %v4842_v44 = vld [vmem:[#allocation47_spill] sm:$0xff] }
 0x118   : > { %v1108_v10 = vadd.f32 %v1107_v34, %v1101_v43  ;;  %vm594_vm4 = vcmp.lt.f32.partialorder %v4830_v45, 0.0  ;;  %1038 = vst [vmem:[%s1833_s18 + $0xf] sm:$0x1] %v1037_v54  ;;  %v1065_v48 = vrot.slane %v1064_v60, 2  ;;  %vm595_vm15 = vcmp.lt.f32.partialorder %v4833_v57, 0.0  ;;  %vm3832_vm13 = vmand %vm584_vm1, %vm592_vm11  ;;  %v4836_v43 = vld [vmem:[#allocation43_spill] sm:$0xff] }
 0x119   : > { %v1086_v27 = vadd.f32 %v1085_v6, %v1079_v1  ;;  %v1130_v55 = vadd.f32 %v1129_v35, %v1123_v59  ;;  %v1125_v32 = vsel %vm3714_vm0, 1.0, %v3144_v61  ;;  %vm589_vm6 = vcmp.le.f32.partialorder %v2296_v41, 0.0  ;;  %vm3843_vm7 = vmand %vm585_vm5, %vm593_vm10  ;;  %v1047_v47 = vld [vmem:[%s1833_s18 + $0x10] sm:$0x1]  ;;  %v4867_v35 = vld [vmem:[#allocation32_spill] sm:$0xff] }
 0x11a   : > { %v1109_v50 = vadd.f32 %v1108_v10, %v1102_v24  ;;  %vm596_vm8 = vcmp.lt.f32.partialorder %v4836_v43, 0.0  ;;  %v1066_v26 = vadd.f32 %v1065_v48, %v1064_v60  ;;  %vm597_vm1 = vcmp.lt.f32.partialorder %v4839_v9, 0.0  ;;  %vm3852_vm0 = vmand %vm586_vm14, %vm594_vm4  ;;  %v4854_v60 = vld [vmem:[#allocation18_spill] sm:$0xff] }
 0x11b   : > { %v1087_v1 = vrot.slane %v1086_v27, 4  ;;  %v1131_v13 = vadd.f32 %v1130_v55, %v1124_v28  ;;  %v1126_v5 = vsel %vm3725_vm9, 1.0, %v3144_v61  ;;  %vm590_vm5 = vcmp.le.f32.partialorder %v2299_v42, 0.0  ;;  %vm3865_vm10 = vmand %vm587_vm3, %vm595_vm15  ;;  %v4855_v6 = vld [vmem:[#allocation22_spill] sm:$0xff]  ;;  %v4858_v42 = vld [vmem:[#allocation29_spill] sm:$0xff] }
 0x11c   : > { %v1110_v24 = vadd.f32 %v1109_v50, %v1103_v53  ;;  %vm598_vm11 = vcmp.lt.f32.partialorder %v4842_v44, 0.0  ;;  %v1067_v30 = vrot.slane %v1066_v26, 1  ;;  %vm4845_vm14 = vcmp.le.f32.partialorder %v2293_v58, 0.0  ;;  %v4848_v53 = vld [vmem:[#allocation60_spill] sm:$0xff]  ;;  %vm3886_vm3 = vmand %vm589_vm6, %vm597_vm1  ;;  %v4851_v58 = vld [vmem:[#allocation17_spill] sm:$0xff] }
 0x11d   : > { %v1088_v18 = vadd.f32 %v1087_v1, %v1086_v27  ;;  %v1132_v2 = vadd.f32 %v1131_v13, %v1125_v32  ;;  %vm3873_vm9 = vmand %vm4845_vm14, %vm596_vm8  ;;  %vm607_vm4 = vcmp.lt.f32.partialorder %v4848_v53, -0.5497665  ;;  %v1127_v12 = vsel %vm3747_vm12, 1.0, %v3144_v61  ;;  %v4861_v55 = vld [vmem:[#allocation30_spill] sm:$0xff]  ;;  %v4864_v32 = vld [vmem:[#allocation31_spill] sm:$0xff] }
 0x11e   : > { %v1111_v34 = vrot.slane %v1110_v24, 4  ;;  %vm608_vm15 = vcmp.lt.f32.partialorder %v4851_v58, -0.5497665  ;;  %v1068_v28 = vadd.f32 %v1067_v30, %v1066_v26  ;;  %vm3895_vm8 = vmand %vm590_vm5, %vm598_vm11  ;;  %vm609_vm12 = vcmp.lt.f32.partialorder %v4854_v60, -0.5497665 }
 0x11f   : > { %v1089_v11 = vrot.slane %v1088_v18, 2  ;;  %v1133_v54 = vadd.f32 %v1132_v2, %v1126_v5  ;;  %vm610_vm6 = vcmp.lt.f32.partialorder %v4855_v6, -0.5497665  ;;  %vm3903_vm1 = vmand %vm3824_vm2, %vm607_vm4  ;;  %vm611_vm5 = vcmp.lt.f32.partialorder %v4858_v42, -0.5497665 }
 0x120   : > { %v1112_v41 = vadd.f32 %v1111_v34, %v1110_v24  ;;  %v1069_v14 = vadd.f32 %v1068_v28, %v1047_v47  ;;  %vm3910_vm11 = vmand %vm3832_vm13, %vm608_vm15  ;;  %vm612_vm14 = vcmp.lt.f32.partialorder %v4861_v55, -0.5497665  ;;  %vm613_vm4 = vcmp.lt.f32.partialorder %v4864_v32, -0.5497665  ;;  %v1071_v43 = vld [vmem:[%s1833_s18 + $0x11] sm:$0x1] }
 0x121   : > { %v1090_v17 = vadd.f32 %v1089_v11, %v1088_v18  ;;  %v1134_v45 = vadd.f32 %v1133_v54, %v1127_v12  ;;  %vm3917_vm2 = vmand %vm3843_vm7, %vm609_vm12  ;;  %vm614_vm7 = vcmp.lt.f32.partialorder %v4867_v35, -0.5497665  ;;  %v1095_v19 = vld [vmem:[%s1833_s18 + $0x12] sm:$0x1] }
 0x122   : > { %v1113_v27 = vrot.slane %v1112_v41, 2  ;;  %1070 = vst [vmem:[%s1833_s18 + $0x10] sm:$0x1] %v1069_v14  ;;  %vm3925_vm13 = vmand %vm3852_vm0, %vm610_vm6 }
 0x123   : > { %v1091_v57 = vrot.slane %v1090_v17, 1  ;;  %v1135_v50 = vrot.slane %v1134_v45, 4  ;;  %vm3933_vm15 = vmand %vm3865_vm10, %vm611_vm5 }
 0x124   : > { %v1114_v26 = vadd.f32 %v1113_v27, %v1112_v41  ;;  %vm3939_vm12 = vmand %vm3873_vm9, %vm612_vm14  ;;  %vm4876_vm9 = vcmp.lt.f32.partialorder %v1945_v37, 2.1157024 }
 0x125   : > { %v1092_v13 = vadd.f32 %v1091_v57, %v1090_v17  ;;  %v1136_v9 = vadd.f32 %v1135_v50, %v1134_v45  ;;  %vm3945_vm0 = vmand %vm3886_vm3, %vm613_vm4  ;;  %vm4879_vm3 = vcmp.lt.f32.partialorder %v1947_v38, 2.1157024 }
 0x126   : > { %v1115_v24 = vrot.slane %v1114_v26, 1  ;;  %vm3952_vm10 = vmand %vm3895_vm8, %vm614_vm7 }
 0x127   : > { %v1093_v44 = vadd.f32 %v1092_v13, %v1071_v43  ;;  %v1137_v30 = vrot.slane %v1136_v9, 2  ;;  %vm3960_vm6 = vmand %vm3903_vm1, %vm4876_vm9  ;;  %vm4882_vm1 = vcmp.lt.f32.partialorder %v1949_v39, 2.1157024 }
 0x128   : > { %v1116_v2 = vadd.f32 %v1115_v24, %v1114_v26  ;;  %vm3969_vm8 = vmand %vm3910_vm11, %vm4879_vm3  ;;  %v1152_v34 = vsel %vm3960_vm6, %v3333_v16, 0.0  ;;  %v1176_v12 = vsel %vm3960_vm6, %v3398_v23, 0.0  ;;  %vm4885_vm11 = vcmp.lt.f32.partialorder %v1951_v40, 2.1157024  ;;  %v4901_v24 = vld [vmem:[#allocation12_spill] sm:$0xff] }
 0x129   : > { %1094 = vst [vmem:[%s1833_s18 + $0x11] sm:$0x1] %v1093_v44  ;;  %v1138_v53 = vadd.f32 %v1137_v30, %v1136_v9  ;;  %vm3983_vm5 = vmand %vm3917_vm2, %vm4882_vm1  ;;  %v1153_v28 = vsel %vm3969_vm8, %v3351_v4, 0.0  ;;  %v1177_v16 = vsel %vm3969_vm8, %v3418_v33, 0.0  ;;  %v1119_v33 = vld [vmem:[%s1833_s18 + $0x13] sm:$0x1] }
 0x12a   : > { %v1117_v59 = vadd.f32 %v1116_v2, %v1095_v19  ;;  %vm3997_vm14 = vmand %vm3925_vm13, %vm4885_vm11  ;;  %v1154_v54 = vsel %vm3983_vm5, %v3367_v15, 0.0  ;;  %v1160_v62 = vadd.f32 %v1153_v28, %v1152_v34  ;;  %v1178_v4 = vsel %vm3983_vm5, %v3443_v3, 0.0 }
 0x12b   : > { %v1139_v11 = vrot.slane %v1138_v53, 1  ;;  %vm4888_vm2 = vcmp.lt.f32.partialorder %v2151_v7, 2.1157024  ;;  %v1155_v41 = vsel %vm3997_vm14, %v3382_v51, 0.0  ;;  %v1184_v15 = vadd.f32 %v1177_v16, %v1176_v12 }
 0x12c   : > { %1118 = vst [vmem:[%s1833_s18 + $0x12] sm:$0x1] %v1117_v59  ;;  %vm4013_vm4 = vmand %vm3933_vm15, %vm4888_vm2  ;;  %vm4891_vm13 = vcmp.lt.f32.partialorder %v4455_v25, 2.1157024  ;;  %v1161_v10 = vadd.f32 %v1160_v62, %v1154_v54  ;;  %v1179_v14 = vsel %vm3997_vm14, %v3461_v22, 0.0  ;;  %v1200_v42 = vsel %vm3960_vm6, %v1945_v37, 0.0 }
 0x12d   : > { %v1140_v6 = vadd.f32 %v1139_v11, %v1138_v53  ;;  %vm4024_vm7 = vmand %vm3939_vm12, %vm4891_vm13  ;;  %vm4894_vm15 = vcmp.lt.f32.partialorder %v2169_v20, 2.1157024  ;;  %v1156_v17 = vsel %vm4013_vm4, %v3412_v21, 0.0  ;;  %v1185_v45 = vadd.f32 %v1184_v15, %v1178_v4 }
 0x12e   : > { %vm4035_vm9 = vmand %vm3945_vm0, %vm4894_vm15  ;;  %v1162_v27 = vadd.f32 %v1161_v10, %v1155_v41  ;;  %v1180_v22 = vsel %vm4013_vm4, %v3489_v49, 0.0  ;;  %v1201_v55 = vsel %vm3969_vm8, %v1947_v38, 0.0  ;;  %v1157_v52 = vsel %vm4024_vm7, %v3437_v8, 0.0 }
 0x12f   : > { %v1141_v48 = vadd.f32 %v1140_v6, %v1119_v33  ;;  %v1186_v21 = vadd.f32 %v1185_v45, %v1179_v14  ;;  %vm4897_vm12 = vcmp.lt.f32.partialorder %v2183_v31, 2.1157024  ;;  %v1158_v49 = vsel %vm4035_vm9, %v3135_v0, 0.0  ;;  %v1151_v45 = vld [vmem:[%s1833_s18 + $0x14] sm:$0x1] }
 0x130   : > { %vm4059_vm0 = vmand %vm3952_vm10, %vm4897_vm12  ;;  %v1163_v57 = vadd.f32 %v1162_v27, %v1156_v17  ;;  %v1181_v38 = vsel %vm4024_vm7, %v4822_v63, 0.0  ;;  %v1202_v8 = vsel %vm3983_vm5, %v1949_v39, 0.0  ;;  %v1208_v32 = vadd.f32 %v1201_v55, %v1200_v42  ;;  %v4900_v39 = vld [vmem:[#allocation33_spill] sm:$0xff]  ;;  %v1175_v27 = vld [vmem:[%s1833_s18 + $0x15] sm:$0x1] }
 0x131   : > { %1142 = vst [vmem:[%s1833_s18 + $0x13] sm:$0x1] %v1141_v48  ;;  %v1187_v50 = vadd.f32 %v1186_v21, %v1180_v22  ;;  %v1224_v29 = vsel %vm3960_vm6, 1.0, %v3144_v61  ;;  %v1225_v43 = vsel %vm3969_vm8, 1.0, %v3144_v61  ;;  %v1182_v26 = vsel %vm4035_vm9, %v3524_v36, 0.0 }
 0x132   : > { %v1164_v0 = vadd.f32 %v1163_v57, %v1157_v52  ;;  %v1203_v63 = vsel %vm3997_vm14, %v1951_v40, 0.0  ;;  %v1159_v35 = vsel %vm4059_vm0, %v4900_v39, 0.0  ;;  %v1209_v13 = vadd.f32 %v1208_v32, %v1202_v8  ;;  %v1199_v8 = vld [vmem:[%s1833_s18 + $0x16] sm:$0x1] }
 0x133   : > { %v1188_v1 = vadd.f32 %v1187_v50, %v1181_v38  ;;  %v1226_v9 = vsel %vm3983_vm5, 1.0, %v3144_v61  ;;  %v1183_v5 = vsel %vm4059_vm0, %v4901_v24, 0.0  ;;  %v1204_v36 = vsel %vm4013_vm4, %v2151_v7, 0.0 }
 0x134   : > { %v1165_v56 = vadd.f32 %v1164_v0, %v1158_v49  ;;  %v1232_v40 = vadd.f32 %v1225_v43, %v1224_v29  ;;  %v1210_v19 = vadd.f32 %v1209_v13, %v1203_v63  ;;  %v1227_v30 = vsel %vm3997_vm14, 1.0, %v3144_v61  ;;  %v1223_v0 = vld [vmem:[%s1833_s18 + $0x17] sm:$0x1] }
 0x135   : > { %v1189_v44 = vadd.f32 %v1188_v1, %v1182_v26  ;;  %v1205_v2 = vsel %vm4024_vm7, %v4455_v25, 0.0  ;;  %v1228_v34 = vsel %vm4013_vm4, 1.0, %v3144_v61  ;;  %v1206_v12 = vsel %vm4035_vm9, %v2169_v20, 0.0 }
 0x136   : > { %v1166_v18 = vadd.f32 %v1165_v56, %v1159_v35  ;;  %v1233_v46 = vadd.f32 %v1232_v40, %v1226_v9  ;;  %v1211_v47 = vadd.f32 %v1210_v19, %v1204_v36  ;;  %v1229_v16 = vsel %vm4024_vm7, 1.0, %v3144_v61 }
 0x137   : > { %v1190_v53 = vadd.f32 %v1189_v44, %v1183_v5  ;;  %v1207_v11 = vsel %vm4059_vm0, %v2183_v31, 0.0  ;;  %v1230_v20 = vsel %vm4035_vm9, 1.0, %v3144_v61  ;;  %v1231_v15 = vsel %vm4059_vm0, 1.0, %v3144_v61 }
 0x138   : > { %v1167_v7 = vrot.slane %v1166_v18, 4  ;;  %v1234_v59 = vadd.f32 %v1233_v46, %v1227_v30  ;;  %v1212_v28 = vadd.f32 %v1211_v47, %v1205_v2 }
 0x139   : > { %v1191_v58 = vrot.slane %v1190_v53, 4 }
 0x13a   : > { %v1168_v25 = vadd.f32 %v1167_v7, %v1166_v18  ;;  %v1235_v23 = vadd.f32 %v1234_v59, %v1228_v34  ;;  %v1213_v62 = vadd.f32 %v1212_v28, %v1206_v12 }
 0x13b   : > { %v1192_v54 = vadd.f32 %v1191_v58, %v1190_v53 }
 0x13c   : > { %v1169_v4 = vrot.slane %v1168_v25, 2  ;;  %v1236_v33 = vadd.f32 %v1235_v23, %v1229_v16  ;;  %v1214_v41 = vadd.f32 %v1213_v62, %v1207_v11 }
 0x13d   : > { %v1193_v60 = vrot.slane %v1192_v54, 2 }
 0x13e   : > { %v1170_v6 = vadd.f32 %v1169_v4, %v1168_v25  ;;  %v1237_v3 = vadd.f32 %v1236_v33, %v1230_v20  ;;  %v1215_v10 = vrot.slane %v1214_v41, 4 }
 0x13f   : > { %v1194_v31 = vadd.f32 %v1193_v60, %v1192_v54 }
 0x140   : > { %v1171_v14 = vrot.slane %v1170_v6, 1  ;;  %v1238_v17 = vadd.f32 %v1237_v3, %v1231_v15  ;;  %v1216_v42 = vadd.f32 %v1215_v10, %v1214_v41 }
 0x141   : > { %v1195_v51 = vrot.slane %v1194_v31, 1 }
 0x142   : > { %v1172_v48 = vadd.f32 %v1171_v14, %v1170_v6  ;;  %v1239_v22 = vrot.slane %v1238_v17, 4  ;;  %v1217_v52 = vrot.slane %v1216_v42, 2 }
 0x143   : > { %v1196_v55 = vadd.f32 %v1195_v51, %v1194_v31 }
 0x144   : > { %v1173_v61 = vadd.f32 %v1172_v48, %v1151_v45  ;;  %v1240_v21 = vadd.f32 %v1239_v22, %v1238_v17  ;;  %v1218_v49 = vadd.f32 %v1217_v52, %v1216_v42 }
 0x145   : > { %v1197_v37 = vadd.f32 %v1196_v55, %v1175_v27 }
 0x146   : > { %1174 = vst [vmem:[%s1833_s18 + $0x14] sm:$0x1] %v1173_v61  ;;  %v1241_v57 = vrot.slane %v1240_v21, 2  ;;  %v1219_v38 = vrot.slane %v1218_v49, 1 }
 0x147   : > { %1198 = vst [vmem:[%s1833_s18 + $0x15] sm:$0x1] %v1197_v37 }
 0x148   : > { %v1242_v50 = vadd.f32 %v1241_v57, %v1240_v21  ;;  %v1220_v32 = vadd.f32 %v1219_v38, %v1218_v49 }
 0x14a   : > { %v1243_v29 = vrot.slane %v1242_v50, 1  ;;  %v1221_v43 = vadd.f32 %v1220_v32, %v1199_v8 }
 0x14c   : > { %v1244_v26 = vadd.f32 %v1243_v29, %v1242_v50  ;;  %1222 = vst [vmem:[%s1833_s18 + $0x16] sm:$0x1] %v1221_v43 }
 0x14e   : > { %v1245_v63 = vadd.f32 %v1244_v26, %v1223_v0 }
 0x150   : > { %1246 = vst [vmem:[%s1833_s18 + $0x17] sm:$0x1] %v1245_v63 }
 0x151   : > { %1549 = shalt.err (!%p1546_p11)
}
 0x152   : > { %s1550_s27 = scalar_lea.hbm %s4132_s3, 384  ;;  %s1554_s5 = scalar_lea.hbm %s4186_s2, 768 }
 0x153   : > { %p1551_p1 = scmp.ne.s32.totalorder %s4132_s3, %s1550_s27  ;;  %p1555_p5 = scmp.lt.u32.totalorder %s4132_s3, %s4186_s2 }
 0x154   : > { %p1556_p4 = scmp.lt.u32.totalorder %s1554_s5, %s1550_s27  ;;  %p1558_p0 = scmp.lt.u32.totalorder %s1550_s27, %s4132_s3 }
 0x155   : > { %p1552_p6 = pnand %p1551_p1, %p4902_p3 }
 0x156   : > { %p1557_p8 = por %p1556_p4, %p1555_p5 }
 0x157   : > { %p1553_p2 = pneg %p1552_p6 }
 0x158   : > { %p1559_p12 = por %p1558_p0, %p1557_p8 }
 0x15a   : > { %p1560_p13 = pnand %p1559_p12, %p1553_p2 }
 0x15c   : > { %1563 = shalt.err (!%p1560_p13)
}
 0x15d   : > { %s1630_s8 = smov 128   ;;  %s1631_s18 = smov 8  }
 0x15e   : > { %1391 = dma.vmem_to_hbm [thread:$0]  (%p4902_p3), %s4134_s19, 384, %s4132_s3, %s1248_s15, %s1630_s8, %s1630_s8, %s1631_s18  }
 0x15f PF: > { %s1276_s21 = sand.u32 1, %s1602_s9   ;;  %p4903_p7 = scmp.ne.s32.totalorder %s4325_s24, 0 }
 0x160   : > { %p4904_p10 = scmp.ge.s32.totalorder %s1622_s14, 2  ;;  %s1277_s28 = scalar_lea.sflag [#allocation4], %s1276_s21 }
 0x162   : > { %p1401_p9 = pnand %p4904_p10, %p4903_p7 }
 0x164   : > { %1597 = dma.done.wait (!%p1401_p9), %s1277_s28, 384  }
 0x165   : > { %1599 = vsyncadd (!%p1401_p9), %s1277_s28, 4294966912  ;;  %s21_s14 = sadd.s32 1, %s1622_s14   ;;  %s4905_s9 = smov %s1606_s10 }
 0x166   : > { %p18_p11 = scmp.ge.s32.totalorder %s21_s14, 4   ;;  %s4906_s10 = smov %s1610_s11 }
 0x167   : > { %s4907_s11 = smov %s1703_s23  ;;  %s4908_s12 = smov %s1618_s13 }
 0x168   : > { %s4909_s13 = smov %s4911_s17  ;;  %20 = sbr.rel (!%p18_p11) target bundleno = 8 (0x8), region = 90 }
 0x16f   :  { %1282 = vsyncpa [#allocation3], 1 }
 0x170   :  { %1284 = vsyncpa [#allocation3 + $0x1], 1 }
 0x171   :  { %1285 = vsyncpa [#allocation6], 1 }
 0x172   :  { %1287 = vsyncpa [#allocation6 + $0x1], 1 }
 0x173   :  { %1288 = vsyncpa [#allocation4], 1 }
 0x174   :  { %1290 = vsyncpa [#allocation4 + $0x1], 1 }

</bundles_post_ra>
